<compile_context>
chip_gen: v7x
topology: tpu7x:2x2x1
jax: 0.10.0
libtpu: 0.0.40
codegen_flags: <defaults>
</compile_context>

<pallas_src>
import functools

import jax
import jax.numpy as jnp
from jax.experimental import pallas as pl
from jax.experimental.pallas import tpu as pltpu


# --------------------------------------------------------------------------------- #
# Generation-aware configuration helpers
# --------------------------------------------------------------------------------- #
def _device_kind():
    try:
        return jax.devices()[0].device_kind.lower()
    except Exception:
        return ""


def _has_bf16_vector_units(kind):
    # v6e / v7x have bf16 VPU + EUP paths; v5e and older do not.
    return bool(kind) and not any(o in kind for o in ("v2", "v3", "v4", "v5"))


def _num_tensorcores(kind):
    # v7x has 2 TensorCores per chip sharing the "parallel" grid axis.
    return 2 if ("v7" in kind or "7x" in kind) else 1


def _vmem_budget_bytes():
    """~7/8 of physical VMEM, capped at 112 MiB.
    v5e/v6e (128 MiB physical) -> 112 MiB; v7x (64 MiB physical) -> 56 MiB."""
    try:
        cap = int(pltpu.get_tpu_info().vmem_capacity_bytes)
        return int(min(cap * 7 // 8, 112 * 1024 * 1024))
    except Exception:
        return 64 * 1024 * 1024  # conservative fallback when the query is unavailable


def _single_buffer_supported():
    try:
        pl.BlockSpec((8, 128), lambda i: (0, 0), pipeline_mode=pl.Buffered(1))
        return True
    except Exception:
        return False


_SINGLE_BUFFER_OK = _single_buffer_supported()


# --------------------------------------------------------------------------------- #
# Kernel
# --------------------------------------------------------------------------------- #
def _layernorm_f32(x, gamma, beta, eps=1e-5):
    """LayerNorm computed in float32 (matches the fp16-safe LayerNorm subclass)."""
    xf = x.astype(jnp.float32)
    mu = jnp.mean(xf, axis=-1, keepdims=True)
    var = jnp.mean((xf - mu) ** 2, axis=-1, keepdims=True)
    return (xf - mu) * jax.lax.rsqrt(var + eps) * gamma + beta


def _block_kernel(
    x_ref,
    ln1_g_ref, ln1_b_ref,
    w_qkv_ref, b_qkv_ref,
    w_o_ref, b_o_ref,
    ln2_g_ref, ln2_b_ref,
    w_fc_ref, b_fc_ref,
    w_pr_ref, b_pr_ref,
    out_ref,
    *, seq_len: int, n_head: int, compute_dtype, gelu_dtype,
):
    x = x_ref[...].astype(jnp.float32)            # (R, D), R = B_TILE * L
    R, D = x.shape
    L = seq_len
    B = R // L
    H = n_head
    hd = D // H
    scale = 1.0 / float(hd) ** 0.5
    cdt = compute_dtype

    # ---------------- ln_1 + fused QKV projection (one wide MXU matmul) ----------- #
    h = _layernorm_f32(x, ln1_g_ref[...], ln1_b_ref[...])
    qkv = jnp.dot(h.astype(cdt), w_qkv_ref[...],
                  preferred_element_type=jnp.float32) + b_qkv_ref[...]
    # Slice, scale (q only), reshape to (B, L, D) while still f32 (8-aligned sublanes),
    # then cast ONCE to the compute dtype for the whole attention section.
    q = (qkv[:, :D] * scale).reshape(B, L, D).astype(cdt)
    k = qkv[:, D:2 * D].reshape(B, L, D).astype(cdt)
    v = qkv[:, 2 * D:].reshape(B, L, D).astype(cdt)

    # ------- attention: sequence-batched NT dots per head (no K transpose) -------- #
    head_outs = []
    for hh in range(H):                           # H static & small (<= 16)
        c0 = hh * hd
        qs = q[:, :, c0:c0 + hd]
        ks = k[:, :, c0:c0 + hd]
        vs = v[:, :, c0:c0 + hd]
        s = jnp.einsum("bld,bmd->blm", qs, ks,
                       preferred_element_type=jnp.float32)      # (B, L, L) f32
        s = s - jnp.max(s, axis=-1, keepdims=True)
        p = jnp.exp(s)
        p = p * pl.reciprocal(jnp.sum(p, axis=-1, keepdims=True), approx=True)
        o = jnp.einsum("blm,bmd->bld", p.astype(cdt), vs,
                       preferred_element_type=jnp.float32)      # (B, L, hd) f32
        head_outs.append(o)

    # Lane-dense assembly: one concatenate, then one cast, then ONE (R,D)x(D,D) matmul.
    attn_in = jnp.concatenate(head_outs, axis=-1).reshape(R, D).astype(cdt)
    attn = jnp.dot(attn_in, w_o_ref[...],
                   preferred_element_type=jnp.float32) + b_o_ref[...]
    x = x + attn

    # ---------------- ln_2 + MLP (c_fc -> QuickGELU -> c_proj) -------------------- #
    h2 = _layernorm_f32(x, ln2_g_ref[...], ln2_b_ref[...])
    f = jnp.dot(h2.astype(cdt), w_fc_ref[...],
                preferred_element_type=jnp.float32) + b_fc_ref[...]
    g = f.astype(gelu_dtype)
    g = g * jax.nn.sigmoid(1.702 * g)             # QuickGELU (bf16 on v6e/v7x, f32 on v5e)
    m = jnp.dot(g.astype(cdt), w_pr_ref[...],
                preferred_element_type=jnp.float32) + b_pr_ref[...]

    out_ref[...] = (x + m).astype(out_ref.dtype)


# --------------------------------------------------------------------------------- #
# Host-side wrappers
# --------------------------------------------------------------------------------- #
def prepare_params(params, compute_dtype=jnp.bfloat16):
    """Fuse the QKV projection and cast matmul weights to the compute dtype ONCE.
    Call at init time and reuse the result so the per-forward path does no host-side
    weight concatenation / casting (pure HBM overhead otherwise)."""
    if "w_qkv" in params:
        return params
    cdt = jnp.dtype(compute_dtype)
    p = dict(params)
    p["w_qkv"] = jnp.concatenate(
        [params["w_q"], params["w_k"], params["w_v"]], axis=1).astype(cdt)
    p["b_qkv"] = jnp.concatenate(
        [params["b_q"], params["b_k"], params["b_v"]], axis=1).astype(jnp.float32)
    p["w_o_c"] = params["w_o"].astype(cdt)
    p["w_fc_c"] = params["w_fc"].astype(cdt)
    p["w_pr_c"] = params["w_pr"].astype(cdt)
    return p


def _pick_batch_tile(N, L, D, *, act_itemsize, weight_bytes, vmem_budget,
                     n_tc=1, max_tile=64):
    """Largest per-step batch tile whose activation footprint fits the VMEM budget,
    preferring a step count that is a multiple of the number of TensorCores."""
    # Rough per-row footprint: f32 x/residual/LN temps, f32+bf16 qkv, f32+bf16 MLP
    # hidden, double-buffered input/output blocks.
    per_row = (6 * D * 4
               + 3 * D * (4 + 2)
               + 4 * D * (4 + 2)
               + 4 * D * act_itemsize)
    avail = max(vmem_budget - weight_bytes, per_row * L)
    row_cap = avail // per_row

    candidates = []
    for d in range(min(N, max_tile), 0, -1):
        if N % d:
            continue
        rows = d * L
        if rows % 8 != 0 and d != N:
            continue                      # block sublane dim must be 8-aligned or full
        if rows > row_cap and d != 1:
            continue
        candidates.append(d)
    if not candidates:
        candidates = [1]
    for d in candidates:                  # prefer step count multiple of #TensorCores
        steps = N // d
        if steps >= n_tc and steps % n_tc == 0:
            return d
    return candidates[0]


def residual_attention_block_nld(x_nld, params, n_head, *,
                                 compute_dtype=jnp.bfloat16, batch_tile=None):
    """x_nld: (N, L, D).  Returns (N, L, D).  attn_mask=None path of the module."""
    N, L, D = x_nld.shape
    assert D % n_head == 0
    cdt = jnp.dtype(compute_dtype)
    p = prepare_params(params, compute_dtype=cdt)

    kind = _device_kind()
    vmem_budget = _vmem_budget_bytes()
    n_tc = _num_tensorcores(kind)
    gelu_dtype = (cdt if (_has_bf16_vector_units(kind)
                          and cdt == jnp.dtype(jnp.bfloat16)) else jnp.float32)

    w_itemsize = cdt.itemsize
    weight_bytes = 12 * D * D * w_itemsize + (3 * D + D + 4 * D + D + 4 * D) * 4
    if not _SINGLE_BUFFER_OK:
        weight_bytes *= 2                 # default double-buffering of resident blocks

    if batch_tile is None:
        batch_tile = _pick_batch_tile(
            N, L, D, act_itemsize=x_nld.dtype.itemsize,
            weight_bytes=weight_bytes, vmem_budget=vmem_budget, n_tc=n_tc)
    assert N % batch_tile == 0
    R = batch_tile * L

    x2d = x_nld.reshape(N * L, D)         # free row-major collapse

    kernel = functools.partial(_block_kernel, seq_len=L, n_head=n_head,
                               compute_dtype=cdt, gelu_dtype=gelu_dtype)

    hd = D // n_head
    flops = int(2 * N * L * D * 12 * D + 4 * N * n_head * L * L * hd)
    transcendentals = int(N * n_head * L * L + 4 * N * L * D)
    bytes_accessed = int(weight_bytes + 2 * N * L * D * x_nld.dtype.itemsize)

    def build(single_buffer):
        def const_spec(shape):
            # Grid-invariant parameter block (same tile every grid step).
            if single_buffer:
                return pl.BlockSpec(shape, lambda i: (0, 0),
                                    pipeline_mode=pl.Buffered(1))
            return pl.BlockSpec(shape, lambda i: (0, 0))

        in_specs = [
            pl.BlockSpec((R, D), lambda i: (i, 0)),          # x: batch-tile row slab
            const_spec((1, D)), const_spec((1, D)),          # ln_1 gamma / beta
            const_spec((D, 3 * D)), const_spec((1, 3 * D)),  # fused in-proj W, b
            const_spec((D, D)), const_spec((1, D)),          # out-proj W, b
            const_spec((1, D)), const_spec((1, D)),          # ln_2 gamma / beta
            const_spec((D, 4 * D)), const_spec((1, 4 * D)),  # c_fc W, b
            const_spec((4 * D, D)), const_spec((1, D)),      # c_proj W, b
        ]
        return pl.pallas_call(
            kernel,
            out_shape=jax.ShapeDtypeStruct((N * L, D), x_nld.dtype),
            grid=(N // batch_tile,),
            in_specs=in_specs,
            out_specs=pl.BlockSpec((R, D), lambda i: (i, 0)),
            compiler_params=pltpu.CompilerParams(
                dimension_semantics=("parallel",),
                vmem_limit_bytes=int(vmem_budget)),
            cost_estimate=pl.CostEstimate(
                flops=flops, transcendentals=transcendentals,
                bytes_accessed=bytes_accessed),
        )

    args = (x2d,
            p["ln1_g"], p["ln1_b"],
            p["w_qkv"], p["b_qkv"],
            p["w_o_c"], p["b_o"],
            p["ln2_g"], p["ln2_b"],
            p["w_fc_c"], p["b_fc"],
            p["w_pr_c"], p["b_pr"])

    if _SINGLE_BUFFER_OK:
        try:
            out2d = build(True)(*args)
        except Exception:
            out2d = build(False)(*args)   # fall back to default double-buffering
    else:
        out2d = build(False)(*args)
    return out2d.reshape(N, L, D)


def residual_attention_block(x, params, n_head, **kw):
    """PyTorch nn.MultiheadAttention convention: x is (L, N, D)."""
    # TODO(synk): callers already holding (N, L, D) activations should use
    # residual_attention_block_nld directly and skip these two HBM transposes.
    out_nld = residual_attention_block_nld(
        jnp.transpose(x, (1, 0, 2)), params, n_head, **kw)
    return jnp.transpose(out_nld, (1, 0, 2))


# --------------------------------------------------------------------------------- #
# Deterministic synthetic parameters + pure-JAX reference
# --------------------------------------------------------------------------------- #
def _init_params(key, d_model):
    """Deterministic synthetic parameters matching the PyTorch module's shapes.
    nn.Linear / in_proj weights are pre-transposed to (in, out) so the kernel does x @ W."""
    ks = jax.random.split(key, 8)
    D = d_model
    s = 0.02
    w_q = s * jax.random.normal(ks[0], (D, D), jnp.float32)
    w_k = s * jax.random.normal(ks[1], (D, D), jnp.float32)
    w_v = s * jax.random.normal(ks[2], (D, D), jnp.float32)
    w_o = s * jax.random.normal(ks[3], (D, D), jnp.float32)
    w_fc = s * jax.random.normal(ks[4], (D, 4 * D), jnp.float32)
    w_pr = s * jax.random.normal(ks[5], (4 * D, D), jnp.float32)
    b_q = s * jax.random.normal(ks[6], (1, D), jnp.float32)
    b_k = jnp.zeros((1, D), jnp.float32)
    b_v = s * jax.random.normal(ks[7], (1, D), jnp.float32)
    return dict(
        ln1_g=jnp.ones((1, D), jnp.float32), ln1_b=jnp.zeros((1, D), jnp.float32),
        w_q=w_q, w_k=w_k, w_v=w_v,
        b_q=b_q, b_k=b_k, b_v=b_v,
        w_o=w_o, b_o=jnp.zeros((1, D), jnp.float32),
        ln2_g=jnp.ones((1, D), jnp.float32), ln2_b=jnp.zeros((1, D), jnp.float32),
        w_fc=w_fc, b_fc=jnp.zeros((1, 4 * D), jnp.float32),
        w_pr=w_pr, b_pr=jnp.zeros((1, D), jnp.float32),
    )


def _reference(x, p, n_head):
    """Pure-JAX f32 reference of the same forward pass."""
    L, N, D = x.shape
    hd = D // n_head
    scale = 1.0 / float(hd) ** 0.5

    def ln(v, g, b):
        mu = jnp.mean(v, -1, keepdims=True)
        var = jnp.mean((v - mu) ** 2, -1, keepdims=True)
        return (v - mu) * jax.lax.rsqrt(var + 1e-5) * g + b

    h = ln(x, p["ln1_g"][0], p["ln1_b"][0])
    q = h @ p["w_q"] + p["b_q"][0]
    k = h @ p["w_k"] + p["b_k"][0]
    v = h @ p["w_v"] + p["b_v"][0]

    def split(t):
        return jnp.transpose(t.reshape(L, N, n_head, hd), (1, 2, 0, 3))

    qh, kh, vh = split(q) * scale, split(k), split(v)
    s = jnp.einsum("nhld,nhmd->nhlm", qh, kh)
    pw = jax.nn.softmax(s, axis=-1)
    o = jnp.einsum("nhlm,nhmd->nhld", pw, vh)
    o = jnp.transpose(o, (2, 0, 1, 3)).reshape(L, N, D)
    x = x + o @ p["w_o"] + p["b_o"][0]
    h2 = ln(x, p["ln2_g"][0], p["ln2_b"][0])
    f = h2 @ p["w_fc"] + p["b_fc"][0]
    f = f * jax.nn.sigmoid(1.702 * f)
    return x + f @ p["w_pr"] + p["b_pr"][0]


if __name__ == "__main__":
    L, N, D, H = 8, 4, 32, 4          # seq=8, batch=4, d_model=32, n_head=4
    key = jax.random.PRNGKey(0)
    kx, kp = jax.random.split(key)
    x = jax.random.normal(kx, (L, N, D), jnp.float32)
    params = _init_params(kp, D)
    prepared = prepare_params(params)   # weight fusion/casting hoisted out of the call

    out = residual_attention_block(x, prepared, n_head=H)
    out = jax.block_until_ready(out)

    ref = _reference(x, params, H)
    assert out.shape == (L, N, D)
    err = float(jnp.max(jnp.abs(out - ref)))
    # bf16 matmul operands (f32 accumulation) -> relaxed tolerance vs the f32 reference.
    assert err < 1e-2, err
    print("KERNEL_OK")
</pallas_src>

<mosaic_0001>
module attributes {stable_mosaic.version = 11 : i64} {
  func.func @_block_kernel(%arg0: i32, %arg1: memref<32x32xf32, #tpu.memory_space<vmem>>, %arg2: memref<1x32xf32, #tpu.memory_space<vmem>>, %arg3: memref<1x32xf32, #tpu.memory_space<vmem>>, %arg4: memref<32x96xbf16, #tpu.memory_space<vmem>>, %arg5: memref<1x96xf32, #tpu.memory_space<vmem>>, %arg6: memref<32x32xbf16, #tpu.memory_space<vmem>>, %arg7: memref<1x32xf32, #tpu.memory_space<vmem>>, %arg8: memref<1x32xf32, #tpu.memory_space<vmem>>, %arg9: memref<1x32xf32, #tpu.memory_space<vmem>>, %arg10: memref<32x128xbf16, #tpu.memory_space<vmem>>, %arg11: memref<1x128xf32, #tpu.memory_space<vmem>>, %arg12: memref<128x32xbf16, #tpu.memory_space<vmem>>, %arg13: memref<1x32xf32, #tpu.memory_space<vmem>>, %arg14: memref<32x32xf32, #tpu.memory_space<vmem>>) attributes {dimension_semantics = [#tpu.dimension_semantics<parallel>], iteration_bounds = array<i64: 1>, scalar_prefetch = 0 : i64, scratch_operands = 0 : i64, tpu.core_type = #tpu.core_type<tc>, window_params = [{transform_indices = @transform_0, window_bounds = array<i64: 32, 32>}, {pipeline_mode = #tpu.pipeline_mode<synchronous>, transform_indices = @transform_1, window_bounds = array<i64: 1, 32>}, {pipeline_mode = #tpu.pipeline_mode<synchronous>, transform_indices = @transform_2, window_bounds = array<i64: 1, 32>}, {pipeline_mode = #tpu.pipeline_mode<synchronous>, transform_indices = @transform_3, window_bounds = array<i64: 32, 96>}, {pipeline_mode = #tpu.pipeline_mode<synchronous>, transform_indices = @transform_4, window_bounds = array<i64: 1, 96>}, {pipeline_mode = #tpu.pipeline_mode<synchronous>, transform_indices = @transform_5, window_bounds = array<i64: 32, 32>}, {pipeline_mode = #tpu.pipeline_mode<synchronous>, transform_indices = @transform_6, window_bounds = array<i64: 1, 32>}, {pipeline_mode = #tpu.pipeline_mode<synchronous>, transform_indices = @transform_7, window_bounds = array<i64: 1, 32>}, {pipeline_mode = #tpu.pipeline_mode<synchronous>, transform_indices = @transform_8, window_bounds = array<i64: 1, 32>}, {pipeline_mode = #tpu.pipeline_mode<synchronous>, transform_indices = @transform_9, window_bounds = array<i64: 32, 128>}, {pipeline_mode = #tpu.pipeline_mode<synchronous>, transform_indices = @transform_10, window_bounds = array<i64: 1, 128>}, {pipeline_mode = #tpu.pipeline_mode<synchronous>, transform_indices = @transform_11, window_bounds = array<i64: 128, 32>}, {pipeline_mode = #tpu.pipeline_mode<synchronous>, transform_indices = @transform_12, window_bounds = array<i64: 1, 32>}, {transform_indices = @transform_13, window_bounds = array<i64: 32, 32>}]} {
    %c0 = arith.constant 0 : index
    %c0_0 = arith.constant 0 : index
    %0 = vector.load %arg1[%c0, %c0_0] : memref<32x32xf32, #tpu.memory_space<vmem>>, vector<32x32xf32>
    %c0_1 = arith.constant 0 : index
    %c0_2 = arith.constant 0 : index
    %1 = vector.load %arg2[%c0_1, %c0_2] : memref<1x32xf32, #tpu.memory_space<vmem>>, vector<1x32xf32>
    %c0_3 = arith.constant 0 : index
    %c0_4 = arith.constant 0 : index
    %2 = vector.load %arg3[%c0_3, %c0_4] : memref<1x32xf32, #tpu.memory_space<vmem>>, vector<1x32xf32>
    %cst = arith.constant dense<0.000000e+00> : vector<32xf32>
    %3 = vector.multi_reduction <add>, %0, %cst [1] : vector<32x32xf32> to vector<32xf32>
    %4 = vector.shape_cast %3 : vector<32xf32> to vector<32x1xf32>
    %cst_5 = arith.constant 3.200000e+01 : f32
    %5 = vector.broadcast %cst_5 : f32 to vector<32x1xf32>
    %6 = arith.divf %4, %5 : vector<32x1xf32>
    %7 = vector.broadcast %6 : vector<32x1xf32> to vector<32x32xf32>
    %8 = arith.subf %0, %7 : vector<32x32xf32>
    %9 = arith.mulf %8, %8 : vector<32x32xf32>
    %cst_6 = arith.constant dense<0.000000e+00> : vector<32xf32>
    %10 = vector.multi_reduction <add>, %9, %cst_6 [1] : vector<32x32xf32> to vector<32xf32>
    %11 = vector.shape_cast %10 : vector<32xf32> to vector<32x1xf32>
    %cst_7 = arith.constant 3.200000e+01 : f32
    %12 = vector.broadcast %cst_7 : f32 to vector<32x1xf32>
    %13 = arith.divf %11, %12 : vector<32x1xf32>
    %14 = vector.broadcast %6 : vector<32x1xf32> to vector<32x32xf32>
    %15 = arith.subf %0, %14 : vector<32x32xf32>
    %cst_8 = arith.constant 9.99999974E-6 : f32
    %16 = vector.broadcast %cst_8 : f32 to vector<32x1xf32>
    %17 = arith.addf %13, %16 : vector<32x1xf32>
    %18 = math.rsqrt %17 : vector<32x1xf32>
    %19 = vector.broadcast %18 : vector<32x1xf32> to vector<32x32xf32>
    %20 = arith.mulf %15, %19 : vector<32x32xf32>
    %21 = vector.broadcast %1 : vector<1x32xf32> to vector<32x32xf32>
    %22 = arith.mulf %20, %21 : vector<32x32xf32>
    %23 = vector.broadcast %2 : vector<1x32xf32> to vector<32x32xf32>
    %24 = arith.addf %22, %23 : vector<32x32xf32>
    %25 = arith.truncf %24 : vector<32x32xf32> to vector<32x32xbf16>
    %c0_9 = arith.constant 0 : index
    %c0_10 = arith.constant 0 : index
    %26 = vector.load %arg4[%c0_9, %c0_10] : memref<32x96xbf16, #tpu.memory_space<vmem>>, vector<32x96xbf16>
    %cst_11 = arith.constant dense<0.000000e+00> : vector<32x96xf32>
    %27 = tpu.matmul %25, %26, %cst_11 {dimension_numbers = #tpu.dot_dimension_numbers<[1], [0], [0], [1], [0, 0, 1, 1], [], []>} : vector<32x32xbf16>, vector<32x96xbf16>, vector<32x96xf32> -> vector<32x96xf32>
    %c0_12 = arith.constant 0 : index
    %c0_13 = arith.constant 0 : index
    %28 = vector.load %arg5[%c0_12, %c0_13] : memref<1x96xf32, #tpu.memory_space<vmem>>, vector<1x96xf32>
    %29 = vector.broadcast %28 : vector<1x96xf32> to vector<32x96xf32>
    %30 = arith.addf %27, %29 : vector<32x96xf32>
    %31 = vector.extract_strided_slice %30 {offsets = [0, 0], sizes = [32, 32], strides = [1, 1]} : vector<32x96xf32> to vector<32x32xf32>
    %cst_14 = arith.constant 0.353553385 : f32
    %32 = vector.broadcast %cst_14 : f32 to vector<32x32xf32>
    %33 = arith.mulf %31, %32 : vector<32x32xf32>
    %34 = vector.shape_cast %33 : vector<32x32xf32> to vector<4x8x32xf32>
    %35 = arith.truncf %34 : vector<4x8x32xf32> to vector<4x8x32xbf16>
    %36 = vector.extract_strided_slice %30 {offsets = [0, 32], sizes = [32, 32], strides = [1, 1]} : vector<32x96xf32> to vector<32x32xf32>
    %37 = vector.shape_cast %36 : vector<32x32xf32> to vector<4x8x32xf32>
    %38 = arith.truncf %37 : vector<4x8x32xf32> to vector<4x8x32xbf16>
    %39 = vector.extract_strided_slice %30 {offsets = [0, 64], sizes = [32, 32], strides = [1, 1]} : vector<32x96xf32> to vector<32x32xf32>
    %40 = vector.shape_cast %39 : vector<32x32xf32> to vector<4x8x32xf32>
    %41 = arith.truncf %40 : vector<4x8x32xf32> to vector<4x8x32xbf16>
    %42 = vector.extract_strided_slice %35 {offsets = [0, 0, 0], sizes = [4, 8, 8], strides = [1, 1, 1]} : vector<4x8x32xbf16> to vector<4x8x8xbf16>
    %43 = vector.extract_strided_slice %38 {offsets = [0, 0, 0], sizes = [4, 8, 8], strides = [1, 1, 1]} : vector<4x8x32xbf16> to vector<4x8x8xbf16>
    %44 = vector.extract_strided_slice %41 {offsets = [0, 0, 0], sizes = [4, 8, 8], strides = [1, 1, 1]} : vector<4x8x32xbf16> to vector<4x8x8xbf16>
    "tpu.trace_start"() <{level = 10 : i32, message = "bld,bmd->blm"}> : () -> ()
    %cst_15 = arith.constant dense<0.000000e+00> : vector<4x8x8xf32>
    %45 = tpu.matmul %42, %43, %cst_15 {dimension_numbers = #tpu.dot_dimension_numbers<[2], [2], [1], [1], [0, 0, 0, 1, 1, 1], [0], [0]>} : vector<4x8x8xbf16>, vector<4x8x8xbf16>, vector<4x8x8xf32> -> vector<4x8x8xf32>
    "tpu.trace_stop"() : () -> ()
    %cst_16 = arith.constant dense<0xFF800000> : vector<4x8xf32>
    %46 = vector.multi_reduction <maximumf>, %45, %cst_16 [2] : vector<4x8x8xf32> to vector<4x8xf32>
    %47 = vector.shape_cast %46 : vector<4x8xf32> to vector<4x8x1xf32>
    %48 = vector.broadcast %47 : vector<4x8x1xf32> to vector<4x8x8xf32>
    %49 = arith.subf %45, %48 : vector<4x8x8xf32>
    %50 = math.exp %49 : vector<4x8x8xf32>
    %cst_17 = arith.constant dense<0.000000e+00> : vector<4x8xf32>
    %51 = vector.multi_reduction <add>, %50, %cst_17 [2] : vector<4x8x8xf32> to vector<4x8xf32>
    %52 = vector.shape_cast %51 : vector<4x8xf32> to vector<4x8x1xf32>
    %53 = tpu.reciprocal %52 {approx = true} : vector<4x8x1xf32> -> vector<4x8x1xf32>
    %54 = vector.broadcast %53 : vector<4x8x1xf32> to vector<4x8x8xf32>
    %55 = arith.mulf %50, %54 : vector<4x8x8xf32>
    %56 = arith.truncf %55 : vector<4x8x8xf32> to vector<4x8x8xbf16>
    "tpu.trace_start"() <{level = 10 : i32, message = "blm,bmd->bld"}> : () -> ()
    %cst_18 = arith.constant dense<0.000000e+00> : vector<4x8x8xf32>
    %57 = tpu.matmul %56, %44, %cst_18 {dimension_numbers = #tpu.dot_dimension_numbers<[2], [1], [1], [2], [0, 0, 0, 1, 1, 2], [0], [0]>} : vector<4x8x8xbf16>, vector<4x8x8xbf16>, vector<4x8x8xf32> -> vector<4x8x8xf32>
    "tpu.trace_stop"() : () -> ()
    %58 = vector.extract_strided_slice %35 {offsets = [0, 0, 8], sizes = [4, 8, 8], strides = [1, 1, 1]} : vector<4x8x32xbf16> to vector<4x8x8xbf16>
    %59 = vector.extract_strided_slice %38 {offsets = [0, 0, 8], sizes = [4, 8, 8], strides = [1, 1, 1]} : vector<4x8x32xbf16> to vector<4x8x8xbf16>
    %60 = vector.extract_strided_slice %41 {offsets = [0, 0, 8], sizes = [4, 8, 8], strides = [1, 1, 1]} : vector<4x8x32xbf16> to vector<4x8x8xbf16>
    "tpu.trace_start"() <{level = 10 : i32, message = "bld,bmd->blm"}> : () -> ()
    %cst_19 = arith.constant dense<0.000000e+00> : vector<4x8x8xf32>
    %61 = tpu.matmul %58, %59, %cst_19 {dimension_numbers = #tpu.dot_dimension_numbers<[2], [2], [1], [1], [0, 0, 0, 1, 1, 1], [0], [0]>} : vector<4x8x8xbf16>, vector<4x8x8xbf16>, vector<4x8x8xf32> -> vector<4x8x8xf32>
    "tpu.trace_stop"() : () -> ()
    %cst_20 = arith.constant dense<0xFF800000> : vector<4x8xf32>
    %62 = vector.multi_reduction <maximumf>, %61, %cst_20 [2] : vector<4x8x8xf32> to vector<4x8xf32>
    %63 = vector.shape_cast %62 : vector<4x8xf32> to vector<4x8x1xf32>
    %64 = vector.broadcast %63 : vector<4x8x1xf32> to vector<4x8x8xf32>
    %65 = arith.subf %61, %64 : vector<4x8x8xf32>
    %66 = math.exp %65 : vector<4x8x8xf32>
    %cst_21 = arith.constant dense<0.000000e+00> : vector<4x8xf32>
    %67 = vector.multi_reduction <add>, %66, %cst_21 [2] : vector<4x8x8xf32> to vector<4x8xf32>
    %68 = vector.shape_cast %67 : vector<4x8xf32> to vector<4x8x1xf32>
    %69 = tpu.reciprocal %68 {approx = true} : vector<4x8x1xf32> -> vector<4x8x1xf32>
    %70 = vector.broadcast %69 : vector<4x8x1xf32> to vector<4x8x8xf32>
    %71 = arith.mulf %66, %70 : vector<4x8x8xf32>
    %72 = arith.truncf %71 : vector<4x8x8xf32> to vector<4x8x8xbf16>
    "tpu.trace_start"() <{level = 10 : i32, message = "blm,bmd->bld"}> : () -> ()
    %cst_22 = arith.constant dense<0.000000e+00> : vector<4x8x8xf32>
    %73 = tpu.matmul %72, %60, %cst_22 {dimension_numbers = #tpu.dot_dimension_numbers<[2], [1], [1], [2], [0, 0, 0, 1, 1, 2], [0], [0]>} : vector<4x8x8xbf16>, vector<4x8x8xbf16>, vector<4x8x8xf32> -> vector<4x8x8xf32>
    "tpu.trace_stop"() : () -> ()
    %74 = vector.extract_strided_slice %35 {offsets = [0, 0, 16], sizes = [4, 8, 8], strides = [1, 1, 1]} : vector<4x8x32xbf16> to vector<4x8x8xbf16>
    %75 = vector.extract_strided_slice %38 {offsets = [0, 0, 16], sizes = [4, 8, 8], strides = [1, 1, 1]} : vector<4x8x32xbf16> to vector<4x8x8xbf16>
    %76 = vector.extract_strided_slice %41 {offsets = [0, 0, 16], sizes = [4, 8, 8], strides = [1, 1, 1]} : vector<4x8x32xbf16> to vector<4x8x8xbf16>
    "tpu.trace_start"() <{level = 10 : i32, message = "bld,bmd->blm"}> : () -> ()
    %cst_23 = arith.constant dense<0.000000e+00> : vector<4x8x8xf32>
    %77 = tpu.matmul %74, %75, %cst_23 {dimension_numbers = #tpu.dot_dimension_numbers<[2], [2], [1], [1], [0, 0, 0, 1, 1, 1], [0], [0]>} : vector<4x8x8xbf16>, vector<4x8x8xbf16>, vector<4x8x8xf32> -> vector<4x8x8xf32>
    "tpu.trace_stop"() : () -> ()
    %cst_24 = arith.constant dense<0xFF800000> : vector<4x8xf32>
    %78 = vector.multi_reduction <maximumf>, %77, %cst_24 [2] : vector<4x8x8xf32> to vector<4x8xf32>
    %79 = vector.shape_cast %78 : vector<4x8xf32> to vector<4x8x1xf32>
    %80 = vector.broadcast %79 : vector<4x8x1xf32> to vector<4x8x8xf32>
    %81 = arith.subf %77, %80 : vector<4x8x8xf32>
    %82 = math.exp %81 : vector<4x8x8xf32>
    %cst_25 = arith.constant dense<0.000000e+00> : vector<4x8xf32>
    %83 = vector.multi_reduction <add>, %82, %cst_25 [2] : vector<4x8x8xf32> to vector<4x8xf32>
    %84 = vector.shape_cast %83 : vector<4x8xf32> to vector<4x8x1xf32>
    %85 = tpu.reciprocal %84 {approx = true} : vector<4x8x1xf32> -> vector<4x8x1xf32>
    %86 = vector.broadcast %85 : vector<4x8x1xf32> to vector<4x8x8xf32>
    %87 = arith.mulf %82, %86 : vector<4x8x8xf32>
    %88 = arith.truncf %87 : vector<4x8x8xf32> to vector<4x8x8xbf16>
    "tpu.trace_start"() <{level = 10 : i32, message = "blm,bmd->bld"}> : () -> ()
    %cst_26 = arith.constant dense<0.000000e+00> : vector<4x8x8xf32>
    %89 = tpu.matmul %88, %76, %cst_26 {dimension_numbers = #tpu.dot_dimension_numbers<[2], [1], [1], [2], [0, 0, 0, 1, 1, 2], [0], [0]>} : vector<4x8x8xbf16>, vector<4x8x8xbf16>, vector<4x8x8xf32> -> vector<4x8x8xf32>
    "tpu.trace_stop"() : () -> ()
    %90 = vector.extract_strided_slice %35 {offsets = [0, 0, 24], sizes = [4, 8, 8], strides = [1, 1, 1]} : vector<4x8x32xbf16> to vector<4x8x8xbf16>
    %91 = vector.extract_strided_slice %38 {offsets = [0, 0, 24], sizes = [4, 8, 8], strides = [1, 1, 1]} : vector<4x8x32xbf16> to vector<4x8x8xbf16>
    %92 = vector.extract_strided_slice %41 {offsets = [0, 0, 24], sizes = [4, 8, 8], strides = [1, 1, 1]} : vector<4x8x32xbf16> to vector<4x8x8xbf16>
    "tpu.trace_start"() <{level = 10 : i32, message = "bld,bmd->blm"}> : () -> ()
    %cst_27 = arith.constant dense<0.000000e+00> : vector<4x8x8xf32>
    %93 = tpu.matmul %90, %91, %cst_27 {dimension_numbers = #tpu.dot_dimension_numbers<[2], [2], [1], [1], [0, 0, 0, 1, 1, 1], [0], [0]>} : vector<4x8x8xbf16>, vector<4x8x8xbf16>, vector<4x8x8xf32> -> vector<4x8x8xf32>
    "tpu.trace_stop"() : () -> ()
    %cst_28 = arith.constant dense<0xFF800000> : vector<4x8xf32>
    %94 = vector.multi_reduction <maximumf>, %93, %cst_28 [2] : vector<4x8x8xf32> to vector<4x8xf32>
    %95 = vector.shape_cast %94 : vector<4x8xf32> to vector<4x8x1xf32>
    %96 = vector.broadcast %95 : vector<4x8x1xf32> to vector<4x8x8xf32>
    %97 = arith.subf %93, %96 : vector<4x8x8xf32>
    %98 = math.exp %97 : vector<4x8x8xf32>
    %cst_29 = arith.constant dense<0.000000e+00> : vector<4x8xf32>
    %99 = vector.multi_reduction <add>, %98, %cst_29 [2] : vector<4x8x8xf32> to vector<4x8xf32>
    %100 = vector.shape_cast %99 : vector<4x8xf32> to vector<4x8x1xf32>
    %101 = tpu.reciprocal %100 {approx = true} : vector<4x8x1xf32> -> vector<4x8x1xf32>
    %102 = vector.broadcast %101 : vector<4x8x1xf32> to vector<4x8x8xf32>
    %103 = arith.mulf %98, %102 : vector<4x8x8xf32>
    %104 = arith.truncf %103 : vector<4x8x8xf32> to vector<4x8x8xbf16>
    "tpu.trace_start"() <{level = 10 : i32, message = "blm,bmd->bld"}> : () -> ()
    %cst_30 = arith.constant dense<0.000000e+00> : vector<4x8x8xf32>
    %105 = tpu.matmul %104, %92, %cst_30 {dimension_numbers = #tpu.dot_dimension_numbers<[2], [1], [1], [2], [0, 0, 0, 1, 1, 2], [0], [0]>} : vector<4x8x8xbf16>, vector<4x8x8xbf16>, vector<4x8x8xf32> -> vector<4x8x8xf32>
    "tpu.trace_stop"() : () -> ()
    %106 = tpu.concatenate %57, %73, %89, %105 in 2 : vector<4x8x8xf32>, vector<4x8x8xf32>, vector<4x8x8xf32>, vector<4x8x8xf32> -> vector<4x8x32xf32>
    %107 = vector.shape_cast %106 : vector<4x8x32xf32> to vector<32x32xf32>
    %108 = arith.truncf %107 : vector<32x32xf32> to vector<32x32xbf16>
    %c0_31 = arith.constant 0 : index
    %c0_32 = arith.constant 0 : index
    %109 = vector.load %arg6[%c0_31, %c0_32] : memref<32x32xbf16, #tpu.memory_space<vmem>>, vector<32x32xbf16>
    %cst_33 = arith.constant dense<0.000000e+00> : vector<32x32xf32>
    %110 = tpu.matmul %108, %109, %cst_33 {dimension_numbers = #tpu.dot_dimension_numbers<[1], [0], [0], [1], [0, 0, 1, 1], [], []>} : vector<32x32xbf16>, vector<32x32xbf16>, vector<32x32xf32> -> vector<32x32xf32>
    %c0_34 = arith.constant 0 : index
    %c0_35 = arith.constant 0 : index
    %111 = vector.load %arg7[%c0_34, %c0_35] : memref<1x32xf32, #tpu.memory_space<vmem>>, vector<1x32xf32>
    %112 = vector.broadcast %111 : vector<1x32xf32> to vector<32x32xf32>
    %113 = arith.addf %110, %112 : vector<32x32xf32>
    %114 = arith.addf %0, %113 : vector<32x32xf32>
    %c0_36 = arith.constant 0 : index
    %c0_37 = arith.constant 0 : index
    %115 = vector.load %arg8[%c0_36, %c0_37] : memref<1x32xf32, #tpu.memory_space<vmem>>, vector<1x32xf32>
    %c0_38 = arith.constant 0 : index
    %c0_39 = arith.constant 0 : index
    %116 = vector.load %arg9[%c0_38, %c0_39] : memref<1x32xf32, #tpu.memory_space<vmem>>, vector<1x32xf32>
    %cst_40 = arith.constant dense<0.000000e+00> : vector<32xf32>
    %117 = vector.multi_reduction <add>, %114, %cst_40 [1] : vector<32x32xf32> to vector<32xf32>
    %118 = vector.shape_cast %117 : vector<32xf32> to vector<32x1xf32>
    %cst_41 = arith.constant 3.200000e+01 : f32
    %119 = vector.broadcast %cst_41 : f32 to vector<32x1xf32>
    %120 = arith.divf %118, %119 : vector<32x1xf32>
    %121 = vector.broadcast %120 : vector<32x1xf32> to vector<32x32xf32>
    %122 = arith.subf %114, %121 : vector<32x32xf32>
    %123 = arith.mulf %122, %122 : vector<32x32xf32>
    %cst_42 = arith.constant dense<0.000000e+00> : vector<32xf32>
    %124 = vector.multi_reduction <add>, %123, %cst_42 [1] : vector<32x32xf32> to vector<32xf32>
    %125 = vector.shape_cast %124 : vector<32xf32> to vector<32x1xf32>
    %cst_43 = arith.constant 3.200000e+01 : f32
    %126 = vector.broadcast %cst_43 : f32 to vector<32x1xf32>
    %127 = arith.divf %125, %126 : vector<32x1xf32>
    %128 = vector.broadcast %120 : vector<32x1xf32> to vector<32x32xf32>
    %129 = arith.subf %114, %128 : vector<32x32xf32>
    %cst_44 = arith.constant 9.99999974E-6 : f32
    %130 = vector.broadcast %cst_44 : f32 to vector<32x1xf32>
    %131 = arith.addf %127, %130 : vector<32x1xf32>
    %132 = math.rsqrt %131 : vector<32x1xf32>
    %133 = vector.broadcast %132 : vector<32x1xf32> to vector<32x32xf32>
    %134 = arith.mulf %129, %133 : vector<32x32xf32>
    %135 = vector.broadcast %115 : vector<1x32xf32> to vector<32x32xf32>
    %136 = arith.mulf %134, %135 : vector<32x32xf32>
    %137 = vector.broadcast %116 : vector<1x32xf32> to vector<32x32xf32>
    %138 = arith.addf %136, %137 : vector<32x32xf32>
    %139 = arith.truncf %138 : vector<32x32xf32> to vector<32x32xbf16>
    %c0_45 = arith.constant 0 : index
    %c0_46 = arith.constant 0 : index
    %140 = vector.load %arg10[%c0_45, %c0_46] : memref<32x128xbf16, #tpu.memory_space<vmem>>, vector<32x128xbf16>
    %cst_47 = arith.constant dense<0.000000e+00> : vector<32x128xf32>
    %141 = tpu.matmul %139, %140, %cst_47 {dimension_numbers = #tpu.dot_dimension_numbers<[1], [0], [0], [1], [0, 0, 1, 1], [], []>} : vector<32x32xbf16>, vector<32x128xbf16>, vector<32x128xf32> -> vector<32x128xf32>
    %c0_48 = arith.constant 0 : index
    %c0_49 = arith.constant 0 : index
    %142 = vector.load %arg11[%c0_48, %c0_49] : memref<1x128xf32, #tpu.memory_space<vmem>>, vector<1x128xf32>
    %143 = vector.broadcast %142 : vector<1x128xf32> to vector<32x128xf32>
    %144 = arith.addf %141, %143 : vector<32x128xf32>
    %145 = arith.truncf %144 : vector<32x128xf32> to vector<32x128xbf16>
    %cst_50 = arith.constant 1.703130e+00 : bf16
    %146 = vector.broadcast %cst_50 : bf16 to vector<32x128xbf16>
    %147 = arith.mulf %146, %145 : vector<32x128xbf16>
    %148 = arith.negf %147 : vector<32x128xbf16>
    %149 = math.exp %148 : vector<32x128xbf16>
    %cst_51 = arith.constant 1.000000e+00 : bf16
    %150 = vector.broadcast %cst_51 : bf16 to vector<32x128xbf16>
    %151 = arith.addf %150, %149 : vector<32x128xbf16>
    %152 = arith.divf %150, %151 : vector<32x128xbf16>
    %153 = arith.mulf %145, %152 : vector<32x128xbf16>
    %c0_52 = arith.constant 0 : index
    %c0_53 = arith.constant 0 : index
    %154 = vector.load %arg12[%c0_52, %c0_53] : memref<128x32xbf16, #tpu.memory_space<vmem>>, vector<128x32xbf16>
    %cst_54 = arith.constant dense<0.000000e+00> : vector<32x32xf32>
    %155 = tpu.matmul %153, %154, %cst_54 {dimension_numbers = #tpu.dot_dimension_numbers<[1], [0], [0], [1], [0, 0, 1, 1], [], []>} : vector<32x128xbf16>, vector<128x32xbf16>, vector<32x32xf32> -> vector<32x32xf32>
    %c0_55 = arith.constant 0 : index
    %c0_56 = arith.constant 0 : index
    %156 = vector.load %arg13[%c0_55, %c0_56] : memref<1x32xf32, #tpu.memory_space<vmem>>, vector<1x32xf32>
    %157 = vector.broadcast %156 : vector<1x32xf32> to vector<32x32xf32>
    %158 = arith.addf %155, %157 : vector<32x32xf32>
    %159 = arith.addf %114, %158 : vector<32x32xf32>
    %c0_57 = arith.constant 0 : index
    %c0_58 = arith.constant 0 : index
    %160 = vector.load %arg14[%c0_57, %c0_58] : memref<32x32xf32, #tpu.memory_space<vmem>>, vector<32x32xf32>
    tpu.vector_store %arg14[%c0_57, %c0_58], %159 {strides = array<i32>} : memref<32x32xf32, #tpu.memory_space<vmem>>, vector<32x32xf32>,
    return
  }
  func.func @transform_0(%arg0: i32) -> (i32, i32) {
    %c0_i32 = arith.constant 0 : i32
    %c0_i32_0 = arith.constant 0 : i32
    return %arg0, %c0_i32 : i32, i32
  }
  func.func @transform_1(%arg0: i32) -> (i32, i32) {
    %c0_i32 = arith.constant 0 : i32
    %c0_i32_0 = arith.constant 0 : i32
    %c0_i32_1 = arith.constant 0 : i32
    return %c0_i32, %c0_i32_0 : i32, i32
  }
  func.func @transform_2(%arg0: i32) -> (i32, i32) {
    %c0_i32 = arith.constant 0 : i32
    %c0_i32_0 = arith.constant 0 : i32
    %c0_i32_1 = arith.constant 0 : i32
    return %c0_i32, %c0_i32_0 : i32, i32
  }
  func.func @transform_3(%arg0: i32) -> (i32, i32) {
    %c0_i32 = arith.constant 0 : i32
    %c0_i32_0 = arith.constant 0 : i32
    %c0_i32_1 = arith.constant 0 : i32
    return %c0_i32, %c0_i32_0 : i32, i32
  }
  func.func @transform_4(%arg0: i32) -> (i32, i32) {
    %c0_i32 = arith.constant 0 : i32
    %c0_i32_0 = arith.constant 0 : i32
    %c0_i32_1 = arith.constant 0 : i32
    return %c0_i32, %c0_i32_0 : i32, i32
  }
  func.func @transform_5(%arg0: i32) -> (i32, i32) {
    %c0_i32 = arith.constant 0 : i32
    %c0_i32_0 = arith.constant 0 : i32
    %c0_i32_1 = arith.constant 0 : i32
    return %c0_i32, %c0_i32_0 : i32, i32
  }
  func.func @transform_6(%arg0: i32) -> (i32, i32) {
    %c0_i32 = arith.constant 0 : i32
    %c0_i32_0 = arith.constant 0 : i32
    %c0_i32_1 = arith.constant 0 : i32
    return %c0_i32, %c0_i32_0 : i32, i32
  }
  func.func @transform_7(%arg0: i32) -> (i32, i32) {
    %c0_i32 = arith.constant 0 : i32
    %c0_i32_0 = arith.constant 0 : i32
    %c0_i32_1 = arith.constant 0 : i32
    return %c0_i32, %c0_i32_0 : i32, i32
  }
  func.func @transform_8(%arg0: i32) -> (i32, i32) {
    %c0_i32 = arith.constant 0 : i32
    %c0_i32_0 = arith.constant 0 : i32
    %c0_i32_1 = arith.constant 0 : i32
    return %c0_i32, %c0_i32_0 : i32, i32
  }
  func.func @transform_9(%arg0: i32) -> (i32, i32) {
    %c0_i32 = arith.constant 0 : i32
    %c0_i32_0 = arith.constant 0 : i32
    %c0_i32_1 = arith.constant 0 : i32
    return %c0_i32, %c0_i32_0 : i32, i32
  }
  func.func @transform_10(%arg0: i32) -> (i32, i32) {
    %c0_i32 = arith.constant 0 : i32
    %c0_i32_0 = arith.constant 0 : i32
    %c0_i32_1 = arith.constant 0 : i32
    return %c0_i32, %c0_i32_0 : i32, i32
  }
  func.func @transform_11(%arg0: i32) -> (i32, i32) {
    %c0_i32 = arith.constant 0 : i32
    %c0_i32_0 = arith.constant 0 : i32
    %c0_i32_1 = arith.constant 0 : i32
    return %c0_i32, %c0_i32_0 : i32, i32
  }
  func.func @transform_12(%arg0: i32) -> (i32, i32) {
    %c0_i32 = arith.constant 0 : i32
    %c0_i32_0 = arith.constant 0 : i32
    %c0_i32_1 = arith.constant 0 : i32
    return %c0_i32, %c0_i32_0 : i32, i32
  }
  func.func @transform_13(%arg0: i32) -> (i32, i32) {
    %c0_i32 = arith.constant 0 : i32
    %c0_i32_0 = arith.constant 0 : i32
    return %arg0, %c0_i32 : i32, i32
  }
}

module attributes {stable_mosaic.version = 11 : i64} {
  func.func @_block_kernel(%arg0: i32, %arg1: memref<32x32xf32, #tpu.memory_space<vmem>>, %arg2: memref<1x32xf32, #tpu.memory_space<vmem>>, %arg3: memref<1x32xf32, #tpu.memory_space<vmem>>, %arg4: memref<32x96xbf16, #tpu.memory_space<vmem>>, %arg5: memref<1x96xf32, #tpu.memory_space<vmem>>, %arg6: memref<32x32xbf16, #tpu.memory_space<vmem>>, %arg7: memref<1x32xf32, #tpu.memory_space<vmem>>, %arg8: memref<1x32xf32, #tpu.memory_space<vmem>>, %arg9: memref<1x32xf32, #tpu.memory_space<vmem>>, %arg10: memref<32x128xbf16, #tpu.memory_space<vmem>>, %arg11: memref<1x128xf32, #tpu.memory_space<vmem>>, %arg12: memref<128x32xbf16, #tpu.memory_space<vmem>>, %arg13: memref<1x32xf32, #tpu.memory_space<vmem>>, %arg14: memref<32x32xf32, #tpu.memory_space<vmem>>) attributes {dimension_semantics = [#tpu.dimension_semantics<parallel>], iteration_bounds = array<i64: 1>, scalar_prefetch = 0 : i64, scratch_operands = 0 : i64, tpu.core_type = #tpu.core_type<tc>, window_params = [{transform_indices = @transform_0, window_bounds = array<i64: 32, 32>}, {pipeline_mode = #tpu.pipeline_mode<synchronous>, transform_indices = @transform_1, window_bounds = array<i64: 1, 32>}, {pipeline_mode = #tpu.pipeline_mode<synchronous>, transform_indices = @transform_2, window_bounds = array<i64: 1, 32>}, {pipeline_mode = #tpu.pipeline_mode<synchronous>, transform_indices = @transform_3, window_bounds = array<i64: 32, 96>}, {pipeline_mode = #tpu.pipeline_mode<synchronous>, transform_indices = @transform_4, window_bounds = array<i64: 1, 96>}, {pipeline_mode = #tpu.pipeline_mode<synchronous>, transform_indices = @transform_5, window_bounds = array<i64: 32, 32>}, {pipeline_mode = #tpu.pipeline_mode<synchronous>, transform_indices = @transform_6, window_bounds = array<i64: 1, 32>}, {pipeline_mode = #tpu.pipeline_mode<synchronous>, transform_indices = @transform_7, window_bounds = array<i64: 1, 32>}, {pipeline_mode = #tpu.pipeline_mode<synchronous>, transform_indices = @transform_8, window_bounds = array<i64: 1, 32>}, {pipeline_mode = #tpu.pipeline_mode<synchronous>, transform_indices = @transform_9, window_bounds = array<i64: 32, 128>}, {pipeline_mode = #tpu.pipeline_mode<synchronous>, transform_indices = @transform_10, window_bounds = array<i64: 1, 128>}, {pipeline_mode = #tpu.pipeline_mode<synchronous>, transform_indices = @transform_11, window_bounds = array<i64: 128, 32>}, {pipeline_mode = #tpu.pipeline_mode<synchronous>, transform_indices = @transform_12, window_bounds = array<i64: 1, 32>}, {transform_indices = @transform_13, window_bounds = array<i64: 32, 32>}]} {
    %c0 = arith.constant 0 : index
    %c0_0 = arith.constant 0 : index
    %0 = vector.load %arg1[%c0, %c0_0] : memref<32x32xf32, #tpu.memory_space<vmem>>, vector<32x32xf32>
    %c0_1 = arith.constant 0 : index
    %c0_2 = arith.constant 0 : index
    %1 = vector.load %arg2[%c0_1, %c0_2] : memref<1x32xf32, #tpu.memory_space<vmem>>, vector<1x32xf32>
    %c0_3 = arith.constant 0 : index
    %c0_4 = arith.constant 0 : index
    %2 = vector.load %arg3[%c0_3, %c0_4] : memref<1x32xf32, #tpu.memory_space<vmem>>, vector<1x32xf32>
    %cst = arith.constant dense<0.000000e+00> : vector<32xf32>
    %3 = vector.multi_reduction <add>, %0, %cst [1] : vector<32x32xf32> to vector<32xf32>
    %4 = vector.shape_cast %3 : vector<32xf32> to vector<32x1xf32>
    %cst_5 = arith.constant 3.200000e+01 : f32
    %5 = vector.broadcast %cst_5 : f32 to vector<32x1xf32>
    %6 = arith.divf %4, %5 : vector<32x1xf32>
    %7 = vector.broadcast %6 : vector<32x1xf32> to vector<32x32xf32>
    %8 = arith.subf %0, %7 : vector<32x32xf32>
    %9 = arith.mulf %8, %8 : vector<32x32xf32>
    %cst_6 = arith.constant dense<0.000000e+00> : vector<32xf32>
    %10 = vector.multi_reduction <add>, %9, %cst_6 [1] : vector<32x32xf32> to vector<32xf32>
    %11 = vector.shape_cast %10 : vector<32xf32> to vector<32x1xf32>
    %cst_7 = arith.constant 3.200000e+01 : f32
    %12 = vector.broadcast %cst_7 : f32 to vector<32x1xf32>
    %13 = arith.divf %11, %12 : vector<32x1xf32>
    %14 = vector.broadcast %6 : vector<32x1xf32> to vector<32x32xf32>
    %15 = arith.subf %0, %14 : vector<32x32xf32>
    %cst_8 = arith.constant 9.99999974E-6 : f32
    %16 = vector.broadcast %cst_8 : f32 to vector<32x1xf32>
    %17 = arith.addf %13, %16 : vector<32x1xf32>
    %18 = math.rsqrt %17 : vector<32x1xf32>
    %19 = vector.broadcast %18 : vector<32x1xf32> to vector<32x32xf32>
    %20 = arith.mulf %15, %19 : vector<32x32xf32>
    %21 = vector.broadcast %1 : vector<1x32xf32> to vector<32x32xf32>
    %22 = arith.mulf %20, %21 : vector<32x32xf32>
    %23 = vector.broadcast %2 : vector<1x32xf32> to vector<32x32xf32>
    %24 = arith.addf %22, %23 : vector<32x32xf32>
    %25 = arith.truncf %24 : vector<32x32xf32> to vector<32x32xbf16>
    %c0_9 = arith.constant 0 : index
    %c0_10 = arith.constant 0 : index
    %26 = vector.load %arg4[%c0_9, %c0_10] : memref<32x96xbf16, #tpu.memory_space<vmem>>, vector<32x96xbf16>
    %cst_11 = arith.constant dense<0.000000e+00> : vector<32x96xf32>
    %27 = tpu.matmul %25, %26, %cst_11 {dimension_numbers = #tpu.dot_dimension_numbers<[1], [0], [0], [1], [0, 0, 1, 1], [], []>} : vector<32x32xbf16>, vector<32x96xbf16>, vector<32x96xf32> -> vector<32x96xf32>
    %c0_12 = arith.constant 0 : index
    %c0_13 = arith.constant 0 : index
    %28 = vector.load %arg5[%c0_12, %c0_13] : memref<1x96xf32, #tpu.memory_space<vmem>>, vector<1x96xf32>
    %29 = vector.broadcast %28 : vector<1x96xf32> to vector<32x96xf32>
    %30 = arith.addf %27, %29 : vector<32x96xf32>
    %31 = vector.extract_strided_slice %30 {offsets = [0, 0], sizes = [32, 32], strides = [1, 1]} : vector<32x96xf32> to vector<32x32xf32>
    %cst_14 = arith.constant 0.353553385 : f32
    %32 = vector.broadcast %cst_14 : f32 to vector<32x32xf32>
    %33 = arith.mulf %31, %32 : vector<32x32xf32>
    %34 = vector.shape_cast %33 : vector<32x32xf32> to vector<4x8x32xf32>
    %35 = arith.truncf %34 : vector<4x8x32xf32> to vector<4x8x32xbf16>
    %36 = vector.extract_strided_slice %30 {offsets = [0, 32], sizes = [32, 32], strides = [1, 1]} : vector<32x96xf32> to vector<32x32xf32>
    %37 = vector.shape_cast %36 : vector<32x32xf32> to vector<4x8x32xf32>
    %38 = arith.truncf %37 : vector<4x8x32xf32> to vector<4x8x32xbf16>
    %39 = vector.extract_strided_slice %30 {offsets = [0, 64], sizes = [32, 32], strides = [1, 1]} : vector<32x96xf32> to vector<32x32xf32>
    %40 = vector.shape_cast %39 : vector<32x32xf32> to vector<4x8x32xf32>
    %41 = arith.truncf %40 : vector<4x8x32xf32> to vector<4x8x32xbf16>
    %42 = vector.extract_strided_slice %35 {offsets = [0, 0, 0], sizes = [4, 8, 8], strides = [1, 1, 1]} : vector<4x8x32xbf16> to vector<4x8x8xbf16>
    %43 = vector.extract_strided_slice %38 {offsets = [0, 0, 0], sizes = [4, 8, 8], strides = [1, 1, 1]} : vector<4x8x32xbf16> to vector<4x8x8xbf16>
    %44 = vector.extract_strided_slice %41 {offsets = [0, 0, 0], sizes = [4, 8, 8], strides = [1, 1, 1]} : vector<4x8x32xbf16> to vector<4x8x8xbf16>
    "tpu.trace_start"() <{level = 10 : i32, message = "bld,bmd->blm"}> : () -> ()
    %cst_15 = arith.constant dense<0.000000e+00> : vector<4x8x8xf32>
    %45 = tpu.matmul %42, %43, %cst_15 {dimension_numbers = #tpu.dot_dimension_numbers<[2], [2], [1], [1], [0, 0, 0, 1, 1, 1], [0], [0]>} : vector<4x8x8xbf16>, vector<4x8x8xbf16>, vector<4x8x8xf32> -> vector<4x8x8xf32>
    "tpu.trace_stop"() : () -> ()
    %cst_16 = arith.constant dense<0xFF800000> : vector<4x8xf32>
    %46 = vector.multi_reduction <maximumf>, %45, %cst_16 [2] : vector<4x8x8xf32> to vector<4x8xf32>
    %47 = vector.shape_cast %46 : vector<4x8xf32> to vector<4x8x1xf32>
    %48 = vector.broadcast %47 : vector<4x8x1xf32> to vector<4x8x8xf32>
    %49 = arith.subf %45, %48 : vector<4x8x8xf32>
    %50 = math.exp %49 : vector<4x8x8xf32>
    %cst_17 = arith.constant dense<0.000000e+00> : vector<4x8xf32>
    %51 = vector.multi_reduction <add>, %50, %cst_17 [2] : vector<4x8x8xf32> to vector<4x8xf32>
    %52 = vector.shape_cast %51 : vector<4x8xf32> to vector<4x8x1xf32>
    %53 = tpu.reciprocal %52 {approx = true} : vector<4x8x1xf32> -> vector<4x8x1xf32>
    %54 = vector.broadcast %53 : vector<4x8x1xf32> to vector<4x8x8xf32>
    %55 = arith.mulf %50, %54 : vector<4x8x8xf32>
    %56 = arith.truncf %55 : vector<4x8x8xf32> to vector<4x8x8xbf16>
    "tpu.trace_start"() <{level = 10 : i32, message = "blm,bmd->bld"}> : () -> ()
    %cst_18 = arith.constant dense<0.000000e+00> : vector<4x8x8xf32>
    %57 = tpu.matmul %56, %44, %cst_18 {dimension_numbers = #tpu.dot_dimension_numbers<[2], [1], [1], [2], [0, 0, 0, 1, 1, 2], [0], [0]>} : vector<4x8x8xbf16>, vector<4x8x8xbf16>, vector<4x8x8xf32> -> vector<4x8x8xf32>
    "tpu.trace_stop"() : () -> ()
    %58 = vector.extract_strided_slice %35 {offsets = [0, 0, 8], sizes = [4, 8, 8], strides = [1, 1, 1]} : vector<4x8x32xbf16> to vector<4x8x8xbf16>
    %59 = vector.extract_strided_slice %38 {offsets = [0, 0, 8], sizes = [4, 8, 8], strides = [1, 1, 1]} : vector<4x8x32xbf16> to vector<4x8x8xbf16>
    %60 = vector.extract_strided_slice %41 {offsets = [0, 0, 8], sizes = [4, 8, 8], strides = [1, 1, 1]} : vector<4x8x32xbf16> to vector<4x8x8xbf16>
    "tpu.trace_start"() <{level = 10 : i32, message = "bld,bmd->blm"}> : () -> ()
    %cst_19 = arith.constant dense<0.000000e+00> : vector<4x8x8xf32>
    %61 = tpu.matmul %58, %59, %cst_19 {dimension_numbers = #tpu.dot_dimension_numbers<[2], [2], [1], [1], [0, 0, 0, 1, 1, 1], [0], [0]>} : vector<4x8x8xbf16>, vector<4x8x8xbf16>, vector<4x8x8xf32> -> vector<4x8x8xf32>
    "tpu.trace_stop"() : () -> ()
    %cst_20 = arith.constant dense<0xFF800000> : vector<4x8xf32>
    %62 = vector.multi_reduction <maximumf>, %61, %cst_20 [2] : vector<4x8x8xf32> to vector<4x8xf32>
    %63 = vector.shape_cast %62 : vector<4x8xf32> to vector<4x8x1xf32>
    %64 = vector.broadcast %63 : vector<4x8x1xf32> to vector<4x8x8xf32>
    %65 = arith.subf %61, %64 : vector<4x8x8xf32>
    %66 = math.exp %65 : vector<4x8x8xf32>
    %cst_21 = arith.constant dense<0.000000e+00> : vector<4x8xf32>
    %67 = vector.multi_reduction <add>, %66, %cst_21 [2] : vector<4x8x8xf32> to vector<4x8xf32>
    %68 = vector.shape_cast %67 : vector<4x8xf32> to vector<4x8x1xf32>
    %69 = tpu.reciprocal %68 {approx = true} : vector<4x8x1xf32> -> vector<4x8x1xf32>
    %70 = vector.broadcast %69 : vector<4x8x1xf32> to vector<4x8x8xf32>
    %71 = arith.mulf %66, %70 : vector<4x8x8xf32>
    %72 = arith.truncf %71 : vector<4x8x8xf32> to vector<4x8x8xbf16>
    "tpu.trace_start"() <{level = 10 : i32, message = "blm,bmd->bld"}> : () -> ()
    %cst_22 = arith.constant dense<0.000000e+00> : vector<4x8x8xf32>
    %73 = tpu.matmul %72, %60, %cst_22 {dimension_numbers = #tpu.dot_dimension_numbers<[2], [1], [1], [2], [0, 0, 0, 1, 1, 2], [0], [0]>} : vector<4x8x8xbf16>, vector<4x8x8xbf16>, vector<4x8x8xf32> -> vector<4x8x8xf32>
    "tpu.trace_stop"() : () -> ()
    %74 = vector.extract_strided_slice %35 {offsets = [0, 0, 16], sizes = [4, 8, 8], strides = [1, 1, 1]} : vector<4x8x32xbf16> to vector<4x8x8xbf16>
    %75 = vector.extract_strided_slice %38 {offsets = [0, 0, 16], sizes = [4, 8, 8], strides = [1, 1, 1]} : vector<4x8x32xbf16> to vector<4x8x8xbf16>
    %76 = vector.extract_strided_slice %41 {offsets = [0, 0, 16], sizes = [4, 8, 8], strides = [1, 1, 1]} : vector<4x8x32xbf16> to vector<4x8x8xbf16>
    "tpu.trace_start"() <{level = 10 : i32, message = "bld,bmd->blm"}> : () -> ()
    %cst_23 = arith.constant dense<0.000000e+00> : vector<4x8x8xf32>
    %77 = tpu.matmul %74, %75, %cst_23 {dimension_numbers = #tpu.dot_dimension_numbers<[2], [2], [1], [1], [0, 0, 0, 1, 1, 1], [0], [0]>} : vector<4x8x8xbf16>, vector<4x8x8xbf16>, vector<4x8x8xf32> -> vector<4x8x8xf32>
    "tpu.trace_stop"() : () -> ()
    %cst_24 = arith.constant dense<0xFF800000> : vector<4x8xf32>
    %78 = vector.multi_reduction <maximumf>, %77, %cst_24 [2] : vector<4x8x8xf32> to vector<4x8xf32>
    %79 = vector.shape_cast %78 : vector<4x8xf32> to vector<4x8x1xf32>
    %80 = vector.broadcast %79 : vector<4x8x1xf32> to vector<4x8x8xf32>
    %81 = arith.subf %77, %80 : vector<4x8x8xf32>
    %82 = math.exp %81 : vector<4x8x8xf32>
    %cst_25 = arith.constant dense<0.000000e+00> : vector<4x8xf32>
    %83 = vector.multi_reduction <add>, %82, %cst_25 [2] : vector<4x8x8xf32> to vector<4x8xf32>
    %84 = vector.shape_cast %83 : vector<4x8xf32> to vector<4x8x1xf32>
    %85 = tpu.reciprocal %84 {approx = true} : vector<4x8x1xf32> -> vector<4x8x1xf32>
    %86 = vector.broadcast %85 : vector<4x8x1xf32> to vector<4x8x8xf32>
    %87 = arith.mulf %82, %86 : vector<4x8x8xf32>
    %88 = arith.truncf %87 : vector<4x8x8xf32> to vector<4x8x8xbf16>
    "tpu.trace_start"() <{level = 10 : i32, message = "blm,bmd->bld"}> : () -> ()
    %cst_26 = arith.constant dense<0.000000e+00> : vector<4x8x8xf32>
    %89 = tpu.matmul %88, %76, %cst_26 {dimension_numbers = #tpu.dot_dimension_numbers<[2], [1], [1], [2], [0, 0, 0, 1, 1, 2], [0], [0]>} : vector<4x8x8xbf16>, vector<4x8x8xbf16>, vector<4x8x8xf32> -> vector<4x8x8xf32>
    "tpu.trace_stop"() : () -> ()
    %90 = vector.extract_strided_slice %35 {offsets = [0, 0, 24], sizes = [4, 8, 8], strides = [1, 1, 1]} : vector<4x8x32xbf16> to vector<4x8x8xbf16>
    %91 = vector.extract_strided_slice %38 {offsets = [0, 0, 24], sizes = [4, 8, 8], strides = [1, 1, 1]} : vector<4x8x32xbf16> to vector<4x8x8xbf16>
    %92 = vector.extract_strided_slice %41 {offsets = [0, 0, 24], sizes = [4, 8, 8], strides = [1, 1, 1]} : vector<4x8x32xbf16> to vector<4x8x8xbf16>
    "tpu.trace_start"() <{level = 10 : i32, message = "bld,bmd->blm"}> : () -> ()
    %cst_27 = arith.constant dense<0.000000e+00> : vector<4x8x8xf32>
    %93 = tpu.matmul %90, %91, %cst_27 {dimension_numbers = #tpu.dot_dimension_numbers<[2], [2], [1], [1], [0, 0, 0, 1, 1, 1], [0], [0]>} : vector<4x8x8xbf16>, vector<4x8x8xbf16>, vector<4x8x8xf32> -> vector<4x8x8xf32>
    "tpu.trace_stop"() : () -> ()
    %cst_28 = arith.constant dense<0xFF800000> : vector<4x8xf32>
    %94 = vector.multi_reduction <maximumf>, %93, %cst_28 [2] : vector<4x8x8xf32> to vector<4x8xf32>
    %95 = vector.shape_cast %94 : vector<4x8xf32> to vector<4x8x1xf32>
    %96 = vector.broadcast %95 : vector<4x8x1xf32> to vector<4x8x8xf32>
    %97 = arith.subf %93, %96 : vector<4x8x8xf32>
    %98 = math.exp %97 : vector<4x8x8xf32>
    %cst_29 = arith.constant dense<0.000000e+00> : vector<4x8xf32>
    %99 = vector.multi_reduction <add>, %98, %cst_29 [2] : vector<4x8x8xf32> to vector<4x8xf32>
    %100 = vector.shape_cast %99 : vector<4x8xf32> to vector<4x8x1xf32>
    %101 = tpu.reciprocal %100 {approx = true} : vector<4x8x1xf32> -> vector<4x8x1xf32>
    %102 = vector.broadcast %101 : vector<4x8x1xf32> to vector<4x8x8xf32>
    %103 = arith.mulf %98, %102 : vector<4x8x8xf32>
    %104 = arith.truncf %103 : vector<4x8x8xf32> to vector<4x8x8xbf16>
    "tpu.trace_start"() <{level = 10 : i32, message = "blm,bmd->bld"}> : () -> ()
    %cst_30 = arith.constant dense<0.000000e+00> : vector<4x8x8xf32>
    %105 = tpu.matmul %104, %92, %cst_30 {dimension_numbers = #tpu.dot_dimension_numbers<[2], [1], [1], [2], [0, 0, 0, 1, 1, 2], [0], [0]>} : vector<4x8x8xbf16>, vector<4x8x8xbf16>, vector<4x8x8xf32> -> vector<4x8x8xf32>
    "tpu.trace_stop"() : () -> ()
    %106 = tpu.concatenate %57, %73, %89, %105 in 2 : vector<4x8x8xf32>, vector<4x8x8xf32>, vector<4x8x8xf32>, vector<4x8x8xf32> -> vector<4x8x32xf32>
    %107 = vector.shape_cast %106 : vector<4x8x32xf32> to vector<32x32xf32>
    %108 = arith.truncf %107 : vector<32x32xf32> to vector<32x32xbf16>
    %c0_31 = arith.constant 0 : index
    %c0_32 = arith.constant 0 : index
    %109 = vector.load %arg6[%c0_31, %c0_32] : memref<32x32xbf16, #tpu.memory_space<vmem>>, vector<32x32xbf16>
    %cst_33 = arith.constant dense<0.000000e+00> : vector<32x32xf32>
    %110 = tpu.matmul %108, %109, %cst_33 {dimension_numbers = #tpu.dot_dimension_numbers<[1], [0], [0], [1], [0, 0, 1, 1], [], []>} : vector<32x32xbf16>, vector<32x32xbf16>, vector<32x32xf32> -> vector<32x32xf32>
    %c0_34 = arith.constant 0 : index
    %c0_35 = arith.constant 0 : index
    %111 = vector.load %arg7[%c0_34, %c0_35] : memref<1x32xf32, #tpu.memory_space<vmem>>, vector<1x32xf32>
    %112 = vector.broadcast %111 : vector<1x32xf32> to vector<32x32xf32>
    %113 = arith.addf %110, %112 : vector<32x32xf32>
    %114 = arith.addf %0, %113 : vector<32x32xf32>
    %c0_36 = arith.constant 0 : index
    %c0_37 = arith.constant 0 : index
    %115 = vector.load %arg8[%c0_36, %c0_37] : memref<1x32xf32, #tpu.memory_space<vmem>>, vector<1x32xf32>
    %c0_38 = arith.constant 0 : index
    %c0_39 = arith.constant 0 : index
    %116 = vector.load %arg9[%c0_38, %c0_39] : memref<1x32xf32, #tpu.memory_space<vmem>>, vector<1x32xf32>
    %cst_40 = arith.constant dense<0.000000e+00> : vector<32xf32>
    %117 = vector.multi_reduction <add>, %114, %cst_40 [1] : vector<32x32xf32> to vector<32xf32>
    %118 = vector.shape_cast %117 : vector<32xf32> to vector<32x1xf32>
    %cst_41 = arith.constant 3.200000e+01 : f32
    %119 = vector.broadcast %cst_41 : f32 to vector<32x1xf32>
    %120 = arith.divf %118, %119 : vector<32x1xf32>
    %121 = vector.broadcast %120 : vector<32x1xf32> to vector<32x32xf32>
    %122 = arith.subf %114, %121 : vector<32x32xf32>
    %123 = arith.mulf %122, %122 : vector<32x32xf32>
    %cst_42 = arith.constant dense<0.000000e+00> : vector<32xf32>
    %124 = vector.multi_reduction <add>, %123, %cst_42 [1] : vector<32x32xf32> to vector<32xf32>
    %125 = vector.shape_cast %124 : vector<32xf32> to vector<32x1xf32>
    %cst_43 = arith.constant 3.200000e+01 : f32
    %126 = vector.broadcast %cst_43 : f32 to vector<32x1xf32>
    %127 = arith.divf %125, %126 : vector<32x1xf32>
    %128 = vector.broadcast %120 : vector<32x1xf32> to vector<32x32xf32>
    %129 = arith.subf %114, %128 : vector<32x32xf32>
    %cst_44 = arith.constant 9.99999974E-6 : f32
    %130 = vector.broadcast %cst_44 : f32 to vector<32x1xf32>
    %131 = arith.addf %127, %130 : vector<32x1xf32>
    %132 = math.rsqrt %131 : vector<32x1xf32>
    %133 = vector.broadcast %132 : vector<32x1xf32> to vector<32x32xf32>
    %134 = arith.mulf %129, %133 : vector<32x32xf32>
    %135 = vector.broadcast %115 : vector<1x32xf32> to vector<32x32xf32>
    %136 = arith.mulf %134, %135 : vector<32x32xf32>
    %137 = vector.broadcast %116 : vector<1x32xf32> to vector<32x32xf32>
    %138 = arith.addf %136, %137 : vector<32x32xf32>
    %139 = arith.truncf %138 : vector<32x32xf32> to vector<32x32xbf16>
    %c0_45 = arith.constant 0 : index
    %c0_46 = arith.constant 0 : index
    %140 = vector.load %arg10[%c0_45, %c0_46] : memref<32x128xbf16, #tpu.memory_space<vmem>>, vector<32x128xbf16>
    %cst_47 = arith.constant dense<0.000000e+00> : vector<32x128xf32>
    %141 = tpu.matmul %139, %140, %cst_47 {dimension_numbers = #tpu.dot_dimension_numbers<[1], [0], [0], [1], [0, 0, 1, 1], [], []>} : vector<32x32xbf16>, vector<32x128xbf16>, vector<32x128xf32> -> vector<32x128xf32>
    %c0_48 = arith.constant 0 : index
    %c0_49 = arith.constant 0 : index
    %142 = vector.load %arg11[%c0_48, %c0_49] : memref<1x128xf32, #tpu.memory_space<vmem>>, vector<1x128xf32>
    %143 = vector.broadcast %142 : vector<1x128xf32> to vector<32x128xf32>
    %144 = arith.addf %141, %143 : vector<32x128xf32>
    %145 = arith.truncf %144 : vector<32x128xf32> to vector<32x128xbf16>
    %cst_50 = arith.constant 1.703130e+00 : bf16
    %146 = vector.broadcast %cst_50 : bf16 to vector<32x128xbf16>
    %147 = arith.mulf %146, %145 : vector<32x128xbf16>
    %148 = arith.negf %147 : vector<32x128xbf16>
    %149 = math.exp %148 : vector<32x128xbf16>
    %cst_51 = arith.constant 1.000000e+00 : bf16
    %150 = vector.broadcast %cst_51 : bf16 to vector<32x128xbf16>
    %151 = arith.addf %150, %149 : vector<32x128xbf16>
    %152 = arith.divf %150, %151 : vector<32x128xbf16>
    %153 = arith.mulf %145, %152 : vector<32x128xbf16>
    %c0_52 = arith.constant 0 : index
    %c0_53 = arith.constant 0 : index
    %154 = vector.load %arg12[%c0_52, %c0_53] : memref<128x32xbf16, #tpu.memory_space<vmem>>, vector<128x32xbf16>
    %cst_54 = arith.constant dense<0.000000e+00> : vector<32x32xf32>
    %155 = tpu.matmul %153, %154, %cst_54 {dimension_numbers = #tpu.dot_dimension_numbers<[1], [0], [0], [1], [0, 0, 1, 1], [], []>} : vector<32x128xbf16>, vector<128x32xbf16>, vector<32x32xf32> -> vector<32x32xf32>
    %c0_55 = arith.constant 0 : index
    %c0_56 = arith.constant 0 : index
    %156 = vector.load %arg13[%c0_55, %c0_56] : memref<1x32xf32, #tpu.memory_space<vmem>>, vector<1x32xf32>
    %157 = vector.broadcast %156 : vector<1x32xf32> to vector<32x32xf32>
    %158 = arith.addf %155, %157 : vector<32x32xf32>
    %159 = arith.addf %114, %158 : vector<32x32xf32>
    %c0_57 = arith.constant 0 : index
    %c0_58 = arith.constant 0 : index
    %160 = vector.load %arg14[%c0_57, %c0_58] : memref<32x32xf32, #tpu.memory_space<vmem>>, vector<32x32xf32>
    tpu.vector_store %arg14[%c0_57, %c0_58], %159 {strides = array<i32>} : memref<32x32xf32, #tpu.memory_space<vmem>>, vector<32x32xf32>,
    return
  }
  func.func @transform_0(%arg0: i32) -> (i32, i32) {
    %c0_i32 = arith.constant 0 : i32
    %c0_i32_0 = arith.constant 0 : i32
    return %arg0, %c0_i32 : i32, i32
  }
  func.func @transform_1(%arg0: i32) -> (i32, i32) {
    %c0_i32 = arith.constant 0 : i32
    %c0_i32_0 = arith.constant 0 : i32
    %c0_i32_1 = arith.constant 0 : i32
    return %c0_i32, %c0_i32_0 : i32, i32
  }
  func.func @transform_2(%arg0: i32) -> (i32, i32) {
    %c0_i32 = arith.constant 0 : i32
    %c0_i32_0 = arith.constant 0 : i32
    %c0_i32_1 = arith.constant 0 : i32
    return %c0_i32, %c0_i32_0 : i32, i32
  }
  func.func @transform_3(%arg0: i32) -> (i32, i32) {
    %c0_i32 = arith.constant 0 : i32
    %c0_i32_0 = arith.constant 0 : i32
    %c0_i32_1 = arith.constant 0 : i32
    return %c0_i32, %c0_i32_0 : i32, i32
  }
  func.func @transform_4(%arg0: i32) -> (i32, i32) {
    %c0_i32 = arith.constant 0 : i32
    %c0_i32_0 = arith.constant 0 : i32
    %c0_i32_1 = arith.constant 0 : i32
    return %c0_i32, %c0_i32_0 : i32, i32
  }
  func.func @transform_5(%arg0: i32) -> (i32, i32) {
    %c0_i32 = arith.constant 0 : i32
    %c0_i32_0 = arith.constant 0 : i32
    %c0_i32_1 = arith.constant 0 : i32
    return %c0_i32, %c0_i32_0 : i32, i32
  }
  func.func @transform_6(%arg0: i32) -> (i32, i32) {
    %c0_i32 = arith.constant 0 : i32
    %c0_i32_0 = arith.constant 0 : i32
    %c0_i32_1 = arith.constant 0 : i32
    return %c0_i32, %c0_i32_0 : i32, i32
  }
  func.func @transform_7(%arg0: i32) -> (i32, i32) {
    %c0_i32 = arith.constant 0 : i32
    %c0_i32_0 = arith.constant 0 : i32
    %c0_i32_1 = arith.constant 0 : i32
    return %c0_i32, %c0_i32_0 : i32, i32
  }
  func.func @transform_8(%arg0: i32) -> (i32, i32) {
    %c0_i32 = arith.constant 0 : i32
    %c0_i32_0 = arith.constant 0 : i32
    %c0_i32_1 = arith.constant 0 : i32
    return %c0_i32, %c0_i32_0 : i32, i32
  }
  func.func @transform_9(%arg0: i32) -> (i32, i32) {
    %c0_i32 = arith.constant 0 : i32
    %c0_i32_0 = arith.constant 0 : i32
    %c0_i32_1 = arith.constant 0 : i32
    return %c0_i32, %c0_i32_0 : i32, i32
  }
  func.func @transform_10(%arg0: i32) -> (i32, i32) {
    %c0_i32 = arith.constant 0 : i32
    %c0_i32_0 = arith.constant 0 : i32
    %c0_i32_1 = arith.constant 0 : i32
    return %c0_i32, %c0_i32_0 : i32, i32
  }
  func.func @transform_11(%arg0: i32) -> (i32, i32) {
    %c0_i32 = arith.constant 0 : i32
    %c0_i32_0 = arith.constant 0 : i32
    %c0_i32_1 = arith.constant 0 : i32
    return %c0_i32, %c0_i32_0 : i32, i32
  }
  func.func @transform_12(%arg0: i32) -> (i32, i32) {
    %c0_i32 = arith.constant 0 : i32
    %c0_i32_0 = arith.constant 0 : i32
    %c0_i32_1 = arith.constant 0 : i32
    return %c0_i32, %c0_i32_0 : i32, i32
  }
  func.func @transform_13(%arg0: i32) -> (i32, i32) {
    %c0_i32 = arith.constant 0 : i32
    %c0_i32_0 = arith.constant 0 : i32
    return %arg0, %c0_i32 : i32, i32
  }
}

</mosaic_0001>

<bundles_post_ra>
// kernel: tpu_custom_call.1
= control target key start
LH: loop header
LB: loop body
LE: loop exit
PB: predicated region body
PF: predicated region fallthrough
CT: control target
= control target key end

     0   :  { %18 = vsyncpa [#allocation3], 0  ;;  %s4147_s0 = inlined_call_operand.hbm [shape: f32[32,32], index: 0, kind: input, shape index: {}]   ;;  %s4148_s1 = inlined_call_operand.hbm [shape: f32[1,32], index: 1, kind: input, shape index: {}]   ;;  %s4149_s2 = inlined_call_operand.hbm [shape: f32[1,32], index: 2, kind: input, shape index: {}]   ;;  %s4150_s3 = inlined_call_operand.hbm [shape: bf16[32,96], index: 3, kind: input, shape index: {}]   ;;  %s4151_s4 = inlined_call_operand.hbm [shape: f32[1,96], index: 4, kind: input, shape index: {}]   ;;  %s4152_s5 = inlined_call_operand.hbm [shape: bf16[32,32], index: 5, kind: input, shape index: {}]   ;;  %s4153_s6 = inlined_call_operand.hbm [shape: f32[1,32], index: 6, kind: input, shape index: {}]   ;;  %s4154_s7 = inlined_call_operand.hbm [shape: f32[1,32], index: 7, kind: input, shape index: {}]   ;;  %s4155_s8 = inlined_call_operand.hbm [shape: f32[1,32], index: 8, kind: input, shape index: {}]   ;;  %s4156_s9 = inlined_call_operand.hbm [shape: bf16[32,128], index: 9, kind: input, shape index: {}]   ;;  %s4157_s10 = inlined_call_operand.hbm [shape: f32[1,128], index: 10, kind: input, shape index: {}]   ;;  %s4158_s11 = inlined_call_operand.hbm [shape: bf16[128,32], index: 11, kind: input, shape index: {}]   ;;  %s4159_s12 = inlined_call_operand.hbm [shape: f32[1,32], index: 12, kind: input, shape index: {}]   ;;  %s4160_s13 = inlined_call_operand.hbm [shape: f32[32,32], index: 13, kind: output, shape index: {}]  }
   0x1   :  { %19 = vsyncpa [#allocation6], 0 }
   0x2   :  { %20 = vsyncpa [#allocation9], 0 }
   0x3   :  { %21 = vsyncpa [#allocation12], 0 }
   0x4   :  { %22 = vsyncpa [#allocation15], 0 }
   0x5   :  { %23 = vsyncpa [#allocation18], 0 }
   0x6   :  { %24 = vsyncpa [#allocation21], 0 }
   0x7   :  { %25 = vsyncpa [#allocation4], 0  ;;  %s3489_s25 = smov [#allocation5]   ;;  %s3490_s27 = smov [#allocation8]  }
   0x8   :  { %s44_s26 = sshll.u32 %s3489_s25, 4  ;;  %s63_s28 = sshll.u32 %s3490_s27, 4  ;;  %s45_s26 = int_to_ptr.vmem [resolvable:$true] %s44_s26  ;;  %s3591_s28 = int_to_ptr.vmem [resolvable:$true] %s63_s28 }
   0x9   :  { %s3165_s14 = scalar_lea.hbm %s4148_s1, 16 }
   0xa   :  { %p3166_p0 = scmp.ne.s32.totalorder %s4148_s1, %s3165_s14  ;;  %p3169_p1 = scmp.lt.u32.totalorder %s3165_s14, %s4148_s1 }
   0xc   :  { %p3171_p2 = pnand %p3169_p1, %p3166_p0 }
   0xe   :  { %3174 = shalt.err (!%p3171_p2)
}
   0xf   :  { %s3175_s19 = scalar_lea.vmem %s45_s26, 16  ;;  %s3179_s20 = scalar_lea.vmem %s45_s26, 32 }
  0x10   :  { %p3176_p3 = scmp.ne.s32.totalorder %s45_s26, %s3175_s19  ;;  %p3180_p4 = scmp.lt.s32.totalorder %s45_s26, %s45_s26 }
  0x11   :  { %p3181_p5 = scmp.lt.s32.totalorder %s3179_s20, %s3175_s19 }
  0x13   :  { %p3182_p6 = por %p3181_p5, %p3180_p4 }
  0x15   :  { %p3183_p7 = pnand %p3182_p6, %p3176_p3 }
  0x17   :  { %3186 = shalt.err (!%p3183_p7)
}
  0x18   :  { %47 = dma.hbm_to_vmem [thread:$0]  %s4148_s1, 16, %s45_s26, [#allocation6]  }
  0x19   :  { %s3187_s25 = scalar_lea.hbm %s4150_s3, 256 }
  0x1a   :  { %p3188_p8 = scmp.ne.s32.totalorder %s4150_s3, %s3187_s25  ;;  %p3191_p9 = scmp.lt.u32.totalorder %s3187_s25, %s4150_s3 }
  0x1c   :  { %p3193_p10 = pnand %p3191_p9, %p3188_p8 }
  0x1e   :  { %3196 = shalt.err (!%p3193_p10)
}
  0x1f   :  { %s3197_s15 = scalar_lea.vmem %s3591_s28, 256  ;;  %p3202_p12 = scmp.lt.s32.totalorder %s3591_s28, %s3591_s28 }
  0x20   :  { %p3198_p11 = scmp.ne.s32.totalorder %s3591_s28, %s3197_s15  ;;  %p3203_p13 = scmp.lt.s32.totalorder %s3197_s15, %s3197_s15 }
  0x22   :  { %p3204_p0 = por %p3203_p13, %p3202_p12 }
  0x24   :  { %p3205_p1 = pnand %p3204_p0, %p3198_p11 }
  0x26   :  { %3208 = shalt.err (!%p3205_p1)
}
  0x27   :  { %s3491_s1 = smov 64   ;;  %s3492_s26 = smov 4  }
  0x28   :  { %69 = dma.hbm_to_vmem [thread:$0]  %s4150_s3, 256, %s3591_s28, [#allocation9], %s3491_s1, %s3491_s1, %s3492_s26  }
  0x29   :  { %s3493_s18 = smov [#allocation11]   ;;  %s3494_s20 = smov [#allocation14]  }
  0x2a   :  { %s85_s19 = sshll.u32 %s3493_s18, 4  ;;  %s108_s21 = sshll.u32 %s3494_s20, 4  ;;  %s86_s19 = int_to_ptr.vmem [resolvable:$true] %s85_s19  ;;  %s109_s21 = int_to_ptr.vmem [resolvable:$true] %s108_s21 }
  0x2b   :  { %s3209_s24 = scalar_lea.hbm %s4152_s5, 256 }
  0x2c   :  { %p3210_p2 = scmp.ne.s32.totalorder %s4152_s5, %s3209_s24  ;;  %p3213_p3 = scmp.lt.u32.totalorder %s3209_s24, %s4152_s5 }
  0x2e   :  { %p3215_p4 = pnand %p3213_p3, %p3210_p2 }
  0x30   :  { %3218 = shalt.err (!%p3215_p4)
}
  0x31   :  { %s3219_s3 = scalar_lea.vmem %s86_s19, 256  ;;  %p3224_p6 = scmp.lt.s32.totalorder %s86_s19, %s86_s19 }
  0x32   :  { %p3220_p5 = scmp.ne.s32.totalorder %s86_s19, %s3219_s3  ;;  %p3225_p7 = scmp.lt.s32.totalorder %s3219_s3, %s3219_s3 }
  0x34   :  { %p3226_p8 = por %p3225_p7, %p3224_p6 }
  0x36   :  { %p3227_p9 = pnand %p3226_p8, %p3220_p5 }
  0x38   :  { %3230 = shalt.err (!%p3227_p9)
}
  0x39   :  { %91 = dma.hbm_to_vmem [thread:$0]  %s4152_s5, 256, %s86_s19, [#allocation12], %s3491_s1, %s3491_s1, %s3492_s26  }
  0x3a   :  { %s3231_s17 = scalar_lea.hbm %s4154_s7, 16 }
  0x3b   :  { %p3232_p10 = scmp.ne.s32.totalorder %s4154_s7, %s3231_s17  ;;  %p3235_p11 = scmp.lt.u32.totalorder %s3231_s17, %s4154_s7 }
  0x3d   :  { %p3237_p12 = pnand %p3235_p11, %p3232_p10 }
  0x3f   :  { %3240 = shalt.err (!%p3237_p12)
}
  0x40   :  { %s3241_s24 = scalar_lea.vmem %s109_s21, 16  ;;  %s3245_s25 = scalar_lea.vmem %s109_s21, 32 }
  0x41   :  { %p3242_p13 = scmp.ne.s32.totalorder %s109_s21, %s3241_s24  ;;  %p3246_p0 = scmp.lt.s32.totalorder %s109_s21, %s109_s21 }
  0x42   :  { %p3247_p1 = scmp.lt.s32.totalorder %s3245_s25, %s3241_s24 }
  0x44   :  { %p3248_p2 = por %p3247_p1, %p3246_p0 }
  0x46   :  { %p3249_p3 = pnand %p3248_p2, %p3242_p13 }
  0x48   :  { %3252 = shalt.err (!%p3249_p3)
}
  0x49   :  { %111 = dma.hbm_to_vmem [thread:$0]  %s4154_s7, 16, %s109_s21, [#allocation15]  }
  0x4a   :  { %s3495_s27 = smov [#allocation17]   ;;  %s3496_s30 = smov [#allocation20]  }
  0x4b   :  { %s127_s29 = sshll.u32 %s3495_s27, 4  ;;  %s149_s3 = sshll.u32 %s3496_s30, 4  ;;  %s128_s29 = int_to_ptr.vmem [resolvable:$true] %s127_s29  ;;  %s3652_s3 = int_to_ptr.vmem [resolvable:$true] %s149_s3 }
  0x4c   :  { %s3253_s15 = scalar_lea.hbm %s4156_s9, 256 }
  0x4d   :  { %p3254_p4 = scmp.ne.s32.totalorder %s4156_s9, %s3253_s15  ;;  %p3257_p5 = scmp.lt.u32.totalorder %s3253_s15, %s4156_s9 }
  0x4f   :  { %p3259_p6 = pnand %p3257_p5, %p3254_p4 }
  0x51   :  { %3262 = shalt.err (!%p3259_p6)
}
  0x52   :  { %s3263_s7 = scalar_lea.vmem %s128_s29, 256  ;;  %p3268_p8 = scmp.lt.s32.totalorder %s128_s29, %s128_s29 }
  0x53   :  { %p3264_p7 = scmp.ne.s32.totalorder %s128_s29, %s3263_s7  ;;  %p3269_p9 = scmp.lt.s32.totalorder %s3263_s7, %s3263_s7 }
  0x55   :  { %p3270_p10 = por %p3269_p9, %p3268_p8 }
  0x57   :  { %p3271_p11 = pnand %p3270_p10, %p3264_p7 }
  0x59   :  { %3274 = shalt.err (!%p3271_p11)
}
  0x5a   :  { %133 = dma.hbm_to_vmem [thread:$0]  %s4156_s9, 256, %s128_s29, [#allocation18], %s3491_s1, %s3491_s1, %s3492_s26  }
  0x5b   :  { %s3275_s25 = scalar_lea.hbm %s4158_s11, 1024 }
  0x5c   :  { %p3276_p12 = scmp.ne.s32.totalorder %s4158_s11, %s3275_s25  ;;  %p3279_p13 = scmp.lt.u32.totalorder %s3275_s25, %s4158_s11 }
  0x5e   :  { %p3281_p0 = pnand %p3279_p13, %p3276_p12 }
  0x60   :  { %3284 = shalt.err (!%p3281_p0)
}
  0x61   :  { %s3285_s28 = scalar_lea.vmem %s3652_s3, 1024  ;;  %p3290_p2 = scmp.lt.s32.totalorder %s3652_s3, %s3652_s3 }
  0x62   :  { %p3286_p1 = scmp.ne.s32.totalorder %s3652_s3, %s3285_s28  ;;  %p3291_p3 = scmp.lt.s32.totalorder %s3285_s28, %s3285_s28 }
  0x64   :  { %p3292_p4 = por %p3291_p3, %p3290_p2 }
  0x66   :  { %p3293_p5 = pnand %p3292_p4, %p3286_p1 }
  0x68   :  { %3296 = shalt.err (!%p3293_p5)
}
  0x69   :  { %155 = dma.hbm_to_vmem [thread:$0]  %s4158_s11, 1024, %s3652_s3, [#allocation21], %s3491_s1, %s3491_s1, %s3492_s26  }
  0x6a   :  { %s3497_s14 = smov [#allocation2]   ;;  %s3297_s18 = scalar_lea.hbm %s4147_s0, 512 }
  0x6b   :  { %s31_s15 = sshll.u32 %s3497_s14, 4  ;;  %p3298_p6 = scmp.ne.s32.totalorder %s4147_s0, %s3297_s18  ;;  %s32_s15 = int_to_ptr.vmem [resolvable:$true] %s31_s15 }
  0x6c   :  { %p3301_p7 = scmp.lt.u32.totalorder %s3297_s18, %s4147_s0 }
  0x6e   :  { %p3303_p8 = pnand %p3301_p7, %p3298_p6 }
  0x70   :  { %3306 = shalt.err (!%p3303_p8)
}
  0x71   :  { %s3307_s23 = scalar_lea.vmem %s32_s15, 512  ;;  %p3312_p10 = scmp.lt.s32.totalorder %s32_s15, %s32_s15 }
  0x72   :  { %p3308_p9 = scmp.ne.s32.totalorder %s32_s15, %s3307_s23  ;;  %p3313_p11 = scmp.lt.s32.totalorder %s3307_s23, %s3307_s23 }
  0x74   :  { %p3314_p12 = por %p3313_p11, %p3312_p10 }
  0x76   :  { %p3315_p13 = pnand %p3314_p12, %p3308_p9 }
  0x78   :  { %3318 = shalt.err (!%p3315_p13)
}
  0x79   :  { %s3498_s11 = smov 128   ;;  %s3499_s26 = smov 8  }
  0x7a   :  { %37 = dma.hbm_to_vmem [thread:$0]  %s4147_s0, 512, %s32_s15, [#allocation3], %s3498_s11, %s3498_s11, %s3499_s26  }
  0x7b   :  { %s3500_s25 = smov [#allocation7]   ;;  %s3501_s19 = smov [#allocation10]  }
  0x7c   :  { %s54_s5 = sshll.u32 %s3500_s25, 4  ;;  %s76_s27 = sshll.u32 %s3501_s19, 4  ;;  %s55_s5 = int_to_ptr.vmem [resolvable:$true] %s54_s5  ;;  %s77_s27 = int_to_ptr.vmem [resolvable:$true] %s76_s27 }
  0x7d   :  { %s3319_s9 = scalar_lea.hbm %s4149_s2, 16 }
  0x7e   :  { %p3320_p0 = scmp.ne.s32.totalorder %s4149_s2, %s3319_s9  ;;  %p3323_p1 = scmp.lt.u32.totalorder %s3319_s9, %s4149_s2 }
  0x80   :  { %p3325_p2 = pnand %p3323_p1, %p3320_p0 }
  0x82   :  { %3328 = shalt.err (!%p3325_p2)
}
  0x83   :  { %s3329_s0 = scalar_lea.vmem %s55_s5, 16  ;;  %s3333_s15 = scalar_lea.vmem %s55_s5, 32 }
  0x84   :  { %p3330_p3 = scmp.ne.s32.totalorder %s55_s5, %s3329_s0  ;;  %p3334_p4 = scmp.lt.s32.totalorder %s55_s5, %s55_s5 }
  0x85   :  { %p3335_p5 = scmp.lt.s32.totalorder %s3333_s15, %s3329_s0 }
  0x87   :  { %p3336_p6 = por %p3335_p5, %p3334_p4 }
  0x89   :  { %p3337_p7 = pnand %p3336_p6, %p3330_p3 }
  0x8b   :  { %3340 = shalt.err (!%p3337_p7)
}
  0x8c   :  { %57 = dma.hbm_to_vmem [thread:$0]  %s4149_s2, 16, %s55_s5, [#allocation6]  }
  0x8d   :  { %s3341_s22 = scalar_lea.hbm %s4151_s4, 16 }
  0x8e   :  { %p3342_p8 = scmp.ne.s32.totalorder %s4151_s4, %s3341_s22  ;;  %p3345_p9 = scmp.lt.u32.totalorder %s3341_s22, %s4151_s4 }
  0x90   :  { %p3347_p10 = pnand %p3345_p9, %p3342_p8 }
  0x92   :  { %3350 = shalt.err (!%p3347_p10)
}
  0x93   :  { %s3351_s19 = scalar_lea.vmem %s77_s27, 16  ;;  %s3355_s30 = scalar_lea.vmem %s77_s27, 32 }
  0x94   :  { %p3352_p11 = scmp.ne.s32.totalorder %s77_s27, %s3351_s19  ;;  %p3356_p12 = scmp.lt.s32.totalorder %s77_s27, %s77_s27 }
  0x95   :  { %p3357_p13 = scmp.lt.s32.totalorder %s3355_s30, %s3351_s19 }
  0x97   :  { %p3358_p0 = por %p3357_p13, %p3356_p12 }
  0x99   :  { %p3359_p1 = pnand %p3358_p0, %p3352_p11 }
  0x9b   :  { %3362 = shalt.err (!%p3359_p1)
}
  0x9c   :  { %79 = dma.hbm_to_vmem [thread:$0]  %s4151_s4, 16, %s77_s27, [#allocation9]  }
  0x9d   :  { %s3502_s28 = smov [#allocation13]   ;;  %s3503_s29 = smov [#allocation16]  }
  0x9e   :  { %s98_s9 = sshll.u32 %s3502_s28, 4  ;;  %s118_s14 = sshll.u32 %s3503_s29, 4  ;;  %s99_s9 = int_to_ptr.vmem [resolvable:$true] %s98_s9  ;;  %s119_s14 = int_to_ptr.vmem [resolvable:$true] %s118_s14 }
  0x9f   :  { %s3363_s0 = scalar_lea.hbm %s4153_s6, 16 }
  0xa0   :  { %p3364_p2 = scmp.ne.s32.totalorder %s4153_s6, %s3363_s0  ;;  %p3367_p3 = scmp.lt.u32.totalorder %s3363_s0, %s4153_s6 }
  0xa2   :  { %p3369_p4 = pnand %p3367_p3, %p3364_p2 }
  0xa4   :  { %3372 = shalt.err (!%p3369_p4)
}
  0xa5   :  { %s3373_s4 = scalar_lea.vmem %s99_s9, 16  ;;  %s3377_s27 = scalar_lea.vmem %s99_s9, 32 }
  0xa6   :  { %p3374_p5 = scmp.ne.s32.totalorder %s99_s9, %s3373_s4  ;;  %p3378_p6 = scmp.lt.s32.totalorder %s99_s9, %s99_s9 }
  0xa7   :  { %p3379_p7 = scmp.lt.s32.totalorder %s3377_s27, %s3373_s4 }
  0xa9   :  { %p3380_p8 = por %p3379_p7, %p3378_p6 }
  0xab   :  { %p3381_p9 = pnand %p3380_p8, %p3374_p5 }
  0xad   :  { %3384 = shalt.err (!%p3381_p9)
}
  0xae   :  { %101 = dma.hbm_to_vmem [thread:$0]  %s4153_s6, 16, %s99_s9, [#allocation12]  }
  0xaf   :  { %s3385_s24 = scalar_lea.hbm %s4155_s8, 16 }
  0xb0   :  { %p3386_p10 = scmp.ne.s32.totalorder %s4155_s8, %s3385_s24  ;;  %p3389_p11 = scmp.lt.u32.totalorder %s3385_s24, %s4155_s8 }
  0xb2   :  { %p3391_p12 = pnand %p3389_p11, %p3386_p10 }
  0xb4   :  { %3394 = shalt.err (!%p3391_p12)
}
  0xb5   :  { %s3395_s5 = scalar_lea.vmem %s119_s14, 16  ;;  %s3399_s28 = scalar_lea.vmem %s119_s14, 32 }
  0xb6   :  { %p3396_p13 = scmp.ne.s32.totalorder %s119_s14, %s3395_s5  ;;  %p3400_p0 = scmp.lt.s32.totalorder %s119_s14, %s119_s14 }
  0xb7   :  { %p3401_p1 = scmp.lt.s32.totalorder %s3399_s28, %s3395_s5 }
  0xb9   :  { %p3402_p2 = por %p3401_p1, %p3400_p0 }
  0xbb   :  { %p3403_p3 = pnand %p3402_p2, %p3396_p13 }
  0xbd   :  { %3406 = shalt.err (!%p3403_p3)
}
  0xbe   :  { %121 = dma.hbm_to_vmem [thread:$0]  %s4155_s8, 16, %s119_s14, [#allocation15]  }
  0xbf   :  { %s3504_s29 = smov [#allocation19]   ;;  %s3505_s17 = smov [#allocation22]  }
  0xc0   :  { %s140_s16 = sshll.u32 %s3504_s29, 4  ;;  %s162_s0 = sshll.u32 %s3505_s17, 4  ;;  %s141_s16 = int_to_ptr.vmem [resolvable:$true] %s140_s16  ;;  %s163_s0 = int_to_ptr.vmem [resolvable:$true] %s162_s0 }
  0xc1   :  { %s3407_s20 = scalar_lea.hbm %s4157_s10, 16 }
  0xc2   :  { %p3408_p4 = scmp.ne.s32.totalorder %s4157_s10, %s3407_s20  ;;  %p3411_p5 = scmp.lt.u32.totalorder %s3407_s20, %s4157_s10 }
  0xc4   :  { %p3413_p6 = pnand %p3411_p5, %p3408_p4 }
  0xc6   :  { %3416 = shalt.err (!%p3413_p6)
}
  0xc7   :  { %s3417_s8 = scalar_lea.vmem %s141_s16, 16  ;;  %s3421_s14 = scalar_lea.vmem %s141_s16, 32 }
  0xc8   :  { %p3418_p7 = scmp.ne.s32.totalorder %s141_s16, %s3417_s8  ;;  %p3422_p8 = scmp.lt.s32.totalorder %s141_s16, %s141_s16 }
  0xc9   :  { %p3423_p9 = scmp.lt.s32.totalorder %s3421_s14, %s3417_s8 }
  0xcb   :  { %p3424_p10 = por %p3423_p9, %p3422_p8 }
  0xcd   :  { %p3425_p11 = pnand %p3424_p10, %p3418_p7 }
  0xcf   :  { %3428 = shalt.err (!%p3425_p11)
}
  0xd0   :  { %143 = dma.hbm_to_vmem [thread:$0]  %s4157_s10, 16, %s141_s16, [#allocation18]  }
  0xd1   :  { %s3429_s25 = scalar_lea.hbm %s4159_s12, 16 }
  0xd2   :  { %p3430_p12 = scmp.ne.s32.totalorder %s4159_s12, %s3429_s25  ;;  %p3433_p13 = scmp.lt.u32.totalorder %s3429_s25, %s4159_s12 }
  0xd4   :  { %p3435_p0 = pnand %p3433_p13, %p3430_p12 }
  0xd6   :  { %3438 = shalt.err (!%p3435_p0)
}
  0xd7   :  { %s3439_s28 = scalar_lea.vmem %s163_s0, 16  ;;  %s3443_s6 = scalar_lea.vmem %s163_s0, 32 }
  0xd8   :  { %p3440_p1 = scmp.ne.s32.totalorder %s163_s0, %s3439_s28  ;;  %p3444_p2 = scmp.lt.s32.totalorder %s163_s0, %s163_s0 }
  0xd9   :  { %p3445_p3 = scmp.lt.s32.totalorder %s3443_s6, %s3439_s28 }
  0xdb   :  { %p3446_p4 = por %p3445_p3, %p3444_p2 }
  0xdd   :  { %p3447_p5 = pnand %p3446_p4, %p3440_p1 }
  0xdf   :  { %3450 = shalt.err (!%p3447_p5)
}
  0xe0   :  { %165 = dma.hbm_to_vmem [thread:$0]  %s4159_s12, 16, %s163_s0, [#allocation21]  }
  0xe1   :  { %3473 = dma.done.wait [#allocation3], 512  }
  0xe2   :  { %3474 = vsyncadd [#allocation3], 4294966784 }
  0xe3   :  { %3475 = dma.done.wait [#allocation6], 32  }
  0xe4   :  { %3476 = vsyncadd [#allocation6], 4294967264 }
  0xe5   :  { %3477 = dma.done.wait [#allocation9], 272  }
  0xe6   :  { %3478 = vsyncadd [#allocation9], 4294967024 }
  0xe7   :  { %3479 = dma.done.wait [#allocation12], 272  }
  0xe8   :  { %3480 = vsyncadd [#allocation12], 4294967024 }
  0xe9   :  { %3481 = dma.done.wait [#allocation15], 32  }
  0xea   :  { %3482 = vsyncadd [#allocation15], 4294967264 }
  0xeb   :  { %3483 = dma.done.wait [#allocation18], 272  }
  0xec   :  { %3484 = vsyncadd [#allocation18], 4294967024 }
  0xed   :  { %3485 = dma.done.wait [#allocation21], 1040  }
  0xee   :  { %3486 = vsyncadd [#allocation21], 4294966256  ;;  %vm214_vm0 = vcmask 261120   ;;  %v208_v0 = vld [vmem:[#allocation2] sm:$0xff]  ;;  %v210_v1 = vld [vmem:[#allocation2 + $0x10] sm:$0xff]  ;;  %v3506_v62 = vmov 0.0  }
  0xef   :  { %v209_v2 = vld [vmem:[#allocation2 + $0x8] sm:$0xff]  ;;  %v215_v3 = vsel %vm214_vm0, %v208_v0, 0.0  ;;  %v221_v4 = vsel %vm214_vm0, %v210_v1, 0.0  ;;  %v211_v5 = vld [vmem:[#allocation2 + $0x18] sm:$0xff]  ;;  %v2613_v44 = vld [vmem:[#allocation5] ss:$0 sm:$0xff]  ;;  %2781 = vmatprep.subr.bf16.mxu1 %v3506_v62 }
  0xf0   :  { %216 = vadd.xlane.f32.xlu0 %v215_v3  ;;  %222 = vadd.xlane.f32.xlu1 %v221_v4  ;;  %v218_v6 = vsel %vm214_vm0, %v209_v2, 0.0  ;;  %v224_v7 = vsel %vm214_vm0, %v211_v5, 0.0  ;;  %v3059_v28 = vld [vmem:[#allocation8] sm:$0xff]   ;;  %v3060_v29 = vld [vmem:[#allocation8 + $0x8] sm:$0xff]   ;;  %v2614_v50 = vld [vmem:[#allocation7] ss:$0 sm:$0xff] }
  0xf1   :  { %2761 = vmatprep.subr.bf16.mxu0 %v3059_v28  ;;  %v2615_v63 = vld [vmem:[#allocation10] ss:$0 sm:$0xff]  ;;  %vm3507_vm1 = vmmov 0   ;;  %s3508_s12 = smov 96   ;;  %vm383_vm2 = vcmask 64512   ;;  %vm630_vm3 = vcmask 1043456  }
  0xf2   :  { %2762 = vmatpush3.bf16.msra.mxu0 %v3059_v28  ;;  %2783 = vmatprep.mubr.msk.bf16.mxu1 %vm3507_vm1, %v3506_v62  ;;  %s3509_s29 = smov 88   ;;  %s3510_s16 = smov 120   ;;  %vm2194_vm4 = vcmask 130048   ;;  %vm2199_vm5 = vcmask 195584  }
  0xf3   :  { %2763 = vmatprep.subr.bf16.mxu0 %v3060_v29  ;;  %s3512_s17 = smov 80   ;;  %s3513_s0 = smov 112  }
  0xf4   :  { %219 = vadd.xlane.f32.xlu0 %v218_v6  ;;  %225 = vadd.xlane.f32.xlu1 %v224_v7  ;;  %s3514_s15 = smov 48   ;;  %s3515_s18 = smov 72  }
  0xf5   :  { %s3516_s20 = smov 104   ;;  %s3517_s7 = smov 40  }
  0xf6   :  { %2764 = vmatpush3.bf16.msra.mxu0 %v3060_v29  ;;  %s3518_s4 = smov 16   ;;  %s3519_s27 = smov 24  }
  0xf7   :  { %2769 = vmatprep.subr.bf16.mxu0 %v3506_v62  ;;  %s3520_s21 = smov [#allocation23]  }
  0xf8   :  { %s2595_s8 = sshll.u32 %s3520_s21, 4  ;;  %s2596_s8 = int_to_ptr.vmem [resolvable:$true] %s2595_s8 }
  0xf9   :  { %s3451_s14 = scalar_lea.vmem %s2596_s8, 512  ;;  %p3456_p7 = scmp.lt.s32.totalorder %s2596_s8, %s2596_s8 }
  0xfa   :  { %p3452_p6 = scmp.ne.s32.totalorder %s2596_s8, %s3451_s14  ;;  %p3457_p8 = scmp.lt.s32.totalorder %s3451_s14, %s3451_s14 }
  0xfc   :  { %p3458_p9 = por %p3457_p8, %p3456_p7 }
  0xfe   :  { %p3459_p10 = pnand %p3458_p9, %p3452_p6 }
 0x17d   :  { %v217_v8 = vpop.xlane.xlu0 %216  ;;  %v223_v9 = vpop.xlane.xlu1 %222 }
 0x17e   :  { %v228_v10 = vmul.f32 0.03125, %v217_v8  ;;  %v230_v11 = vmul.f32 0.03125, %v223_v9 }
 0x180   :  { %v232_v12 = vsub.f32 %v208_v0, %v228_v10  ;;  %v234_v13 = vsub.f32 %v210_v1, %v230_v11 }
 0x181   :  { %v220_v14 = vpop.xlane.xlu0 %219  ;;  %v226_v15 = vpop.xlane.xlu1 %225 }
 0x182   :  { %v229_v16 = vmul.f32 0.03125, %v220_v14  ;;  %v231_v17 = vmul.f32 0.03125, %v226_v15  ;;  %v236_v18 = vmul.f32 %v232_v12, %v232_v12  ;;  %v238_v19 = vmul.f32 %v234_v13, %v234_v13 }
 0x184   :  { %v233_v20 = vsub.f32 %v209_v2, %v229_v16  ;;  %v235_v21 = vsub.f32 %v211_v5, %v231_v17  ;;  %v240_v22 = vsel %vm214_vm0, %v236_v18, 0.0  ;;  %v246_v23 = vsel %vm214_vm0, %v238_v19, 0.0 }
 0x185   :  { %241 = vadd.xlane.f32.xlu0 %v240_v22 }
 0x186   :  { %v237_v24 = vmul.f32 %v233_v20, %v233_v20  ;;  %v239_v25 = vmul.f32 %v235_v21, %v235_v21 }
 0x188   :  { %v243_v26 = vsel %vm214_vm0, %v237_v24, 0.0  ;;  %v249_v27 = vsel %vm214_vm0, %v239_v25, 0.0 }
 0x189   :  { %247 = vadd.xlane.f32.xlu0 %v246_v23  ;;  %244 = vadd.xlane.f32.xlu1 %v243_v26 }
 0x18d   :  { %250 = vadd.xlane.f32.xlu1 %v249_v27 }
 0x212   :  { %v242_v30 = vpop.xlane.xlu0 %241 }
 0x213   :  { %v252_v31 = vmul.f32 0.03125, %v242_v30 }
 0x215   :  { %v256_v32 = vadd.f32 1e-05, %v252_v31 }
 0x216   :  { %v245_v33 = vpop.xlane.xlu1 %244  ;;  %v248_v34 = vpop.xlane.xlu0 %247 }
 0x217   :  { %3073 = vrsqrt.f32 %v256_v32  ;;  %v253_v35 = vmul.f32 0.03125, %v245_v33  ;;  %v254_v36 = vmul.f32 0.03125, %v248_v34 }
 0x219   :  { %v257_v37 = vadd.f32 1e-05, %v253_v35  ;;  %v258_v38 = vadd.f32 1e-05, %v254_v36 }
 0x21a   :  { %v251_v39 = vpop.xlane.xlu1 %250 }
 0x21b   :  { %3075 = vrsqrt.f32 %v257_v37  ;;  %v255_v40 = vmul.f32 0.03125, %v251_v39 }
 0x21c   :  { %3077 = vrsqrt.f32 %v258_v38 }
 0x21d   :  { %v259_v41 = vadd.f32 1e-05, %v255_v40 }
 0x21f   :  { %3079 = vrsqrt.f32 %v259_v41 }
 0x221   :  { %v3074_v42 = vpop.eup %3073 }
 0x222   :  { %v264_v43 = vmul.f32 %v3074_v42, %v232_v12 }
 0x224   :  { %v274_v48 = vmul.f32 %v2613_v44, %v264_v43 }
 0x225   :  { %v3076_v45 = vpop.eup %3075 }
 0x226   :  { %v3078_v46 = vpop.eup %3077  ;;  %v265_v47 = vmul.f32 %v3076_v45, %v233_v20  ;;  %v284_v54 = vadd.f32 %v2614_v50, %v274_v48 }
 0x227   :  { %v266_v49 = vmul.f32 %v3078_v46, %v234_v13 }
 0x228   :  { %v275_v51 = vmul.f32 %v2613_v44, %v265_v47 }
 0x229   :  { %v3080_v52 = vpop.eup %3079  ;;  %v276_v56 = vmul.f32 %v2613_v44, %v266_v49 }
 0x22a   :  { %v267_v53 = vmul.f32 %v3080_v52, %v235_v21  ;;  %v285_v55 = vadd.f32 %v2614_v50, %v275_v51 }
 0x22b   :  { %v286_v59 = vadd.f32 %v2614_v50, %v276_v56 }
 0x22c   :  { %v288_v57 = vpack.c.bf16 %v285_v55, %v284_v54  ;;  %v277_v58 = vmul.f32 %v2613_v44, %v267_v53 }
 0x22e   :  { %2765 = vmatprep.mubr.msk.bf16.mxu0 %vm214_vm0, %v288_v57  ;;  %v287_v60 = vadd.f32 %v2614_v50, %v277_v58 }
 0x230   :  { %v289_v61 = vpack.c.bf16 %v287_v60, %v286_v59 }
 0x232   :  { %2766 = vmatmul.mubr.msk.bf16.vlgmr.msra.gmra.mrb[0].mxu0 %vm214_vm0, %v289_v61 }
 0x233   :  { %2771 = vmatprep.mubr.msk.bf16.mxu0 %vm3507_vm1, %v3506_v62 }
 0x305   :  { %v2767_v0 = vpop.f32.mrb[0].mxu0 }
 0x306   :  { %v353_v1 = vpop.f32.mrb[1].mxu0  ;;  %v362_v7 = vadd.f32 %v2767_v0, %v2615_v63 }
 0x307   :  { %v354_v2 = vadd.f32 %v2615_v63, %v353_v1  ;;  %v2768_v3 = vpop.f32.mrb[2].mxu0 }
 0x308   :  { %v356_v4 = vpop.f32.mrb[3].mxu0  ;;  %v3798_v9 = vpack.c.bf16 %v362_v7, %v362_v7  ;;  %v365_v10 = vadd.f32 %v2768_v3, %v2615_v63  ;;  %v370_v19 = vmul.f32 0.35355338, %v362_v7 }
 0x309   :  { %v3792_v5 = vpack.c.bf16 %v354_v2, %v354_v2  ;;  %v357_v6 = vadd.f32 %v2615_v63, %v356_v4  ;;  %v368_v15 = vmul.f32 0.35355338, %v354_v2 }
 0x30a   :  { %v3801_v11 = vpack.c.bf16 %v365_v10, %v365_v10  ;;  %v3816_v22 = vpack.c.bf16 %v370_v19, %v370_v19  ;;  %v371_v26 = vmul.f32 0.35355338, %v365_v10 }
 0x30b   :  { %v3794_v8 = vpack.c.bf16 %v357_v6, %v357_v6  ;;  %381 = vrot.lane.b32.xlu0 %v3792_v5, %s3508_s12  ;;  %v3806_v17 = vpack.c.bf16 %v368_v15, %v368_v15  ;;  %v369_v21 = vmul.f32 0.35355338, %v357_v6 }
 0x30c   :  { %v3830_v27 = vpack.c.bf16 %v371_v26, %v371_v26 }
 0x30d   :  { %431 = vrot.lane.b32.xlu1 %v3794_v8, %s3508_s12  ;;  %v3818_v24 = vpack.c.bf16 %v369_v21, %v369_v21 }
 0x311   :  { %480 = vrot.lane.b32.xlu1 %v3798_v9, %s3508_s12 }
 0x315   :  { %529 = vrot.lane.b32.xlu1 %v3801_v11, %s3508_s12 }
 0x37d   :  { %v382_v12 = vpop.permute.xlu0 %381 }
 0x37e   :  { %v388_v13 = vsel %vm383_vm2, %v382_v12, 0 }
 0x37f   :  { %v432_v14 = vpop.permute.xlu1 %431  ;;  %2770 = vmatpush3.bf16.xpose.msra.mxu0 %v388_v13 }
 0x380   :  { %2775 = vmatprep.subr.bf16.mxu0 %v3506_v62  ;;  %v437_v20 = vsel %vm383_vm2, %v432_v14, 0 }
 0x383   :  { %v481_v16 = vpop.permute.xlu1 %480 }
 0x384   :  { %v486_v18 = vsel %vm383_vm2, %v481_v16, 0 }
 0x385   :  { %2782 = vmatpush3.bf16.xpose.msra.mxu1 %v486_v18 }
 0x386   :  { %2772 = vmatmul.mubr.msk.bf16.vlgmr.msra.gmra.mrb[4].mxu0 %vm383_vm2, %v3806_v17  ;;  %2793 = vmatprep.subr.bf16.mxu1 %v3506_v62 }
 0x387   :  { %2776 = vmatpush3.bf16.xpose.msra.mxu0 %v437_v20  ;;  %2777 = vmatprep.mubr.msk.bf16.mxu0 %vm3507_vm1, %v3506_v62  ;;  %v530_v23 = vpop.permute.xlu1 %529 }
 0x388   :  { %2787 = vmatprep.subr.bf16.mxu0 %v3506_v62  ;;  %v535_v25 = vsel %vm383_vm2, %v530_v23, 0 }
 0x38c   :  { %2784 = vmatmul.mubr.msk.bf16.vlgmr.msra.gmra.mrb[0].mxu1 %vm383_vm2, %v3816_v22 }
 0x38d   :  { %2795 = vmatprep.mubr.msk.bf16.mxu1 %vm3507_vm1, %v3506_v62 }
 0x38e   :  { %2778 = vmatmul.mubr.msk.bf16.vlgmr.msra.gmra.mrb[8].mxu0 %vm383_vm2, %v3818_v24 }
 0x38f   :  { %2788 = vmatpush3.bf16.xpose.msra.mxu0 %v535_v25  ;;  %2789 = vmatprep.mubr.msk.bf16.mxu0 %vm3507_vm1, %v3506_v62 }
 0x390   :  { %2799 = vmatprep.subr.bf16.mxu0 %v3506_v62 }
 0x396   :  { %2790 = vmatmul.mubr.msk.bf16.vlgmr.msra.gmra.mrb[12].mxu0 %vm383_vm2, %v3830_v27 }
 0x397   :  { %2801 = vmatprep.mubr.msk.bf16.mxu0 %vm3507_vm1, %v3506_v62 }
 0x459   :  { %v424_v28 = vpop.f32.mrb[4].mxu0 }
 0x45a   :  { %v2773_v29 = vpop.f32.mrb[5].mxu0  ;;  %v577_v30 = vsel %vm383_vm2, %v424_v28, -inf }
 0x45b   :  { %578 = vmax.xlane.f32.xlu0 %v577_v30  ;;  %v427_v31 = vpop.f32.mrb[6].mxu0 }
 0x45c   :  { %v2774_v32 = vpop.f32.mrb[7].mxu0 }
 0x45f   :  { %v522_v33 = vpop.f32.mrb[0].mxu1 }
 0x460   :  { %v2785_v34 = vpop.f32.mrb[1].mxu1  ;;  %v583_v35 = vsel %vm383_vm2, %v522_v33, -inf }
 0x461   :  { %v525_v36 = vpop.f32.mrb[2].mxu1  ;;  %584 = vmax.xlane.f32.xlu0 %v583_v35  ;;  %v473_v37 = vpop.f32.mrb[8].mxu0 }
 0x462   :  { %v2779_v38 = vpop.f32.mrb[9].mxu0  ;;  %v2786_v39 = vpop.f32.mrb[3].mxu1  ;;  %v580_v40 = vsel %vm383_vm2, %v473_v37, -inf }
 0x463   :  { %581 = vmax.xlane.f32.xlu1 %v580_v40  ;;  %v476_v41 = vpop.f32.mrb[10].mxu0 }
 0x464   :  { %v2780_v42 = vpop.f32.mrb[11].mxu0 }
 0x469   :  { %v571_v43 = vpop.f32.mrb[12].mxu0 }
 0x46a   :  { %v2791_v44 = vpop.f32.mrb[13].mxu0  ;;  %v586_v45 = vsel %vm383_vm2, %v571_v43, -inf }
 0x46b   :  { %587 = vmax.xlane.f32.xlu0 %v586_v45  ;;  %v574_v46 = vpop.f32.mrb[14].mxu0 }
 0x46c   :  { %v2792_v47 = vpop.f32.mrb[15].mxu0 }
 0x474   :  { %674 = vrot.lane.b32.xlu1 %v3794_v8, %s3491_s1 }
 0x478   :  { %722 = vrot.lane.b32.xlu1 %v3798_v9, %s3491_s1 }
 0x47c   :  { %770 = vrot.lane.b32.xlu1 %v3801_v11, %s3491_s1 }
 0x4e8   :  { %v579_v48 = vpop.xlane.xlu0 %578 }
 0x4e9   :  { %v589_v49 = vsub.f32 %v424_v28, %v579_v48 }
 0x4eb   :  { %v593_v52 = vmul.f32 1.442695, %v589_v49 }
 0x4ee   :  { %v585_v50 = vpop.xlane.xlu0 %584 }
 0x4ef   :  { %v591_v51 = vsub.f32 %v522_v33, %v585_v50 }
 0x4f0   :  { %v582_v53 = vpop.xlane.xlu1 %581 }
 0x4f1   :  { %v597_v54 = vmul.f32 1.442695, %v591_v51  ;;  %v590_v55 = vsub.f32 %v473_v37, %v582_v53 }
 0x4f3   :  { %3081 = vpow2.f32 %v597_v54  ;;  %v595_v56 = vmul.f32 1.442695, %v590_v55 }
 0x4f4   :  { %3083 = vpow2.f32 %v593_v52  ;;  %v675_v57 = vpop.permute.xlu1 %674 }
 0x4f5   :  { %3085 = vpow2.f32 %v595_v56  ;;  %v680_v58 = vsel %vm630_vm3, %v675_v57, 0 }
 0x4f6   :  { %2800 = vmatpush3.bf16.msra.mxu0 %v680_v58 }
 0x4f7   :  { %2811 = vmatprep.subr.bf16.mxu0 %v3506_v62 }
 0x4f8   :  { %v588_v2 = vpop.xlane.xlu0 %587  ;;  %v723_v10 = vpop.permute.xlu1 %722 }
 0x4f9   :  { %v592_v3 = vsub.f32 %v571_v43, %v588_v2  ;;  %v728_v30 = vsel %vm630_vm3, %v723_v10, 0 }
 0x4fb   :  { %v599_v4 = vmul.f32 1.442695, %v592_v3 }
 0x4fc   :  { %v771_v12 = vpop.permute.xlu1 %770 }
 0x4fd   :  { %v3082_v59 = vpop.eup %3081  ;;  %3087 = vpow2.f32 %v599_v4  ;;  %v776_v26 = vsel %vm630_vm3, %v771_v12, 0 }
 0x4fe   :  { %v3084_v60 = vpop.eup %3083  ;;  %v607_v61 = vsel %vm383_vm2, %v3082_v59, 0.0 }
 0x4ff   :  { %v3086_v63 = vpop.eup %3085  ;;  %608 = vadd.xlane.f32.xlu0 %v607_v61  ;;  %v601_v1 = vsel %vm383_vm2, %v3084_v60, 0.0 }
 0x500   :  { %v604_v0 = vsel %vm383_vm2, %v3086_v63, 0.0 }
 0x501   :  { %605 = vadd.xlane.f32.xlu1 %v604_v0 }
 0x503   :  { %602 = vadd.xlane.f32.xlu0 %v601_v1 }
 0x507   :  { %v3088_v6 = vpop.eup %3087 }
 0x508   :  { %v610_v7 = vsel %vm383_vm2, %v3088_v6, 0.0 }
 0x512   :  { %872 = vrot.lane.b32.xlu1 %v3794_v8, %s3509_s29 }
 0x519   :  { %625 = vrot.lane.b32.xlu0 %v3792_v5, %s3491_s1  ;;  %s3511_s1 = smov 56  }
 0x51d   :  { %821 = vrot.lane.b32.xlu0 %v3792_v5, %s3509_s29 }
 0x521   :  { %819 = vrot.lane.b32.xlu0 %v3806_v17, %s3510_s16 }
 0x525   :  { %923 = vrot.lane.b32.xlu0 %v3798_v9, %s3509_s29 }
 0x529   :  { %921 = vrot.lane.b32.xlu0 %v3816_v22, %s3510_s16 }
 0x536   :  { %611 = vadd.xlane.f32.xlu1 %v610_v7 }
 0x547   :  { %870 = vrot.lane.b32.xlu1 %v3818_v24, %s3510_s16 }
 0x54b   :  { %974 = vrot.lane.b32.xlu1 %v3801_v11, %s3509_s29 }
 0x54f   :  { %972 = vrot.lane.b32.xlu1 %v3830_v27, %s3510_s16 }
 0x58c   :  { %v609_v13 = vpop.xlane.xlu0 %608 }
 0x58e   :  { %v606_v14 = vpop.xlane.xlu1 %605 }
 0x58f   :  { %3089 = vrcp.f32 %v606_v14 }
 0x590   :  { %v603_v15 = vpop.xlane.xlu0 %602 }
 0x591   :  { %3091 = vrcp.f32 %v603_v15 }
 0x592   :  { %3093 = vrcp.f32 %v609_v13  ;;  %v873_v39 = vpop.permute.xlu1 %872 }
 0x593   :  { %v878_v45 = vsel %vm383_vm2, %v873_v39, 0 }
 0x594   :  { %v626_v16 = vpop.permute.xlu0 %625 }
 0x595   :  { %v632_v18 = vsel %vm630_vm3, %v626_v16, 0 }
 0x596   :  { %2794 = vmatpush3.bf16.msra.mxu1 %v632_v18 }
 0x597   :  { %2805 = vmatprep.subr.bf16.mxu1 %v3506_v62 }
 0x598   :  { %v822_v32 = vpop.permute.xlu0 %821 }
 0x599   :  { %v3090_v19 = vpop.eup %3089  ;;  %v827_v35 = vsel %vm383_vm2, %v822_v32, 0 }
 0x59a   :  { %v618_v20 = vmul.f32 %v3090_v19, %v3086_v63 }
 0x59b   :  { %v3092_v21 = vpop.eup %3091 }
 0x59c   :  { %v617_v23 = vmul.f32 %v3092_v21, %v3084_v60  ;;  %v622_v25 = vpack.c.bf16 %v618_v20, %v618_v20  ;;  %v3094_v29 = vpop.eup %3093  ;;  %v820_v34 = vpop.permute.xlu0 %819 }
 0x59d   :  { %v619_v31 = vmul.f32 %v3094_v29, %v3082_v59 }
 0x59e   :  { %2802 = vmatmul.mubr.msk.bf16.vlgmr.msra.gmra.mrb[16].mxu0 %vm383_vm2, %v622_v25  ;;  %v621_v28 = vpack.c.bf16 %v617_v23, %v617_v23 }
 0x59f   :  { %2812 = vmatpush3.bf16.msra.mxu0 %v776_v26  ;;  %2813 = vmatprep.mubr.msk.bf16.mxu0 %vm3507_vm1, %v3506_v62  ;;  %v623_v33 = vpack.c.bf16 %v619_v31, %v619_v31 }
 0x5a0   :  { %2796 = vmatmul.mubr.msk.bf16.vlgmr.msra.gmra.mrb[4].mxu1 %vm383_vm2, %v621_v28  ;;  %2823 = vmatprep.subr.bf16.mxu0 %v3506_v62  ;;  %v924_v36 = vpop.permute.xlu0 %923 }
 0x5a1   :  { %2806 = vmatpush3.bf16.msra.mxu1 %v728_v30  ;;  %2807 = vmatprep.mubr.msk.bf16.mxu1 %vm3507_vm1, %v3506_v62  ;;  %v929_v37 = vsel %vm383_vm2, %v924_v36, 0 }
 0x5a2   :  { %2817 = vmatprep.subr.bf16.mxu1 %v3506_v62 }
 0x5a4   :  { %v922_v38 = vpop.permute.xlu0 %921 }
 0x5a8   :  { %2808 = vmatmul.mubr.msk.bf16.vlgmr.msra.gmra.mrb[8].mxu1 %vm383_vm2, %v623_v33 }
 0x5a9   :  { %2819 = vmatprep.mubr.msk.bf16.mxu1 %vm3507_vm1, %v3506_v62 }
 0x5aa   :  { %2818 = vmatpush3.bf16.xpose.msra.mxu1 %v827_v35 }
 0x5ab   :  { %2829 = vmatprep.subr.bf16.mxu1 %v3506_v62 }
 0x5b1   :  { %2820 = vmatmul.mubr.msk.bf16.vlgmr.msra.gmra.mrb[12].mxu1 %vm383_vm2, %v820_v34 }
 0x5b2   :  { %2830 = vmatpush3.bf16.xpose.msra.mxu1 %v929_v37  ;;  %2831 = vmatprep.mubr.msk.bf16.mxu1 %vm3507_vm1, %v3506_v62 }
 0x5b3   :  { %2841 = vmatprep.subr.bf16.mxu1 %v3506_v62 }
 0x5b9   :  { %2832 = vmatmul.mubr.msk.bf16.vlgmr.msra.gmra.mrb[16].mxu1 %vm383_vm2, %v922_v38 }
 0x5ba   :  { %2843 = vmatprep.mubr.msk.bf16.mxu1 %vm3507_vm1, %v3506_v62 }
 0x5c3   :  { %v612_v40 = vpop.xlane.xlu1 %611 }
 0x5c4   :  { %3095 = vrcp.f32 %v612_v40 }
 0x5c7   :  { %v871_v44 = vpop.permute.xlu1 %870 }
 0x5cb   :  { %v975_v46 = vpop.permute.xlu1 %974 }
 0x5cc   :  { %v980_v47 = vsel %vm383_vm2, %v975_v46, 0 }
 0x5ce   :  { %v3096_v41 = vpop.eup %3095 }
 0x5cf   :  { %v620_v42 = vmul.f32 %v3096_v41, %v3088_v6  ;;  %v973_v48 = vpop.permute.xlu1 %972 }
 0x5d1   :  { %v624_v43 = vpack.c.bf16 %v620_v42, %v620_v42 }
 0x5d3   :  { %2814 = vmatmul.mubr.msk.bf16.vlgmr.msra.gmra.mrb[20].mxu0 %vm383_vm2, %v624_v43 }
 0x5d4   :  { %2824 = vmatpush3.bf16.xpose.msra.mxu0 %v878_v45  ;;  %2825 = vmatprep.mubr.msk.bf16.mxu0 %vm3507_vm1, %v3506_v62 }
 0x5d5   :  { %2835 = vmatprep.subr.bf16.mxu0 %v3506_v62 }
 0x5db   :  { %2826 = vmatmul.mubr.msk.bf16.vlgmr.msra.gmra.mrb[24].mxu0 %vm383_vm2, %v871_v44 }
 0x5dc   :  { %2836 = vmatpush3.bf16.xpose.msra.mxu0 %v980_v47  ;;  %2837 = vmatprep.mubr.msk.bf16.mxu0 %vm3507_vm1, %v3506_v62 }
 0x5dd   :  { %2847 = vmatprep.subr.bf16.mxu0 %v3506_v62 }
 0x5e3   :  { %2838 = vmatmul.mubr.msk.bf16.vlgmr.msra.gmra.mrb[28].mxu0 %vm383_vm2, %v973_v48 }
 0x5e4   :  { %2849 = vmatprep.mubr.msk.bf16.mxu0 %vm3507_vm1, %v3506_v62 }
 0x671   :  { %v3900_v49 = vpop.f32.mrb[16].mxu0 }
 0x672   :  { %v2803_v50 = vpop.f32.mrb[17].mxu0 }
 0x673   :  { %v3902_v51 = vpop.f32.mrb[4].mxu1  ;;  %v719_v52 = vpop.f32.mrb[18].mxu0 }
 0x674   :  { %v2797_v53 = vpop.f32.mrb[5].mxu1  ;;  %v2804_v54 = vpop.f32.mrb[19].mxu0 }
 0x675   :  { %v671_v55 = vpop.f32.mrb[6].mxu1 }
 0x676   :  { %v2798_v56 = vpop.f32.mrb[7].mxu1 }
 0x67b   :  { %v3904_v57 = vpop.f32.mrb[8].mxu1 }
 0x67c   :  { %v2809_v58 = vpop.f32.mrb[9].mxu1 }
 0x67d   :  { %v767_v59 = vpop.f32.mrb[10].mxu1 }
 0x67e   :  { %v2810_v60 = vpop.f32.mrb[11].mxu1 }
 0x684   :  { %v863_v61 = vpop.f32.mrb[12].mxu1 }
 0x685   :  { %v2821_v63 = vpop.f32.mrb[13].mxu1  ;;  %v1022_v0 = vsel %vm383_vm2, %v863_v61, -inf }
 0x686   :  { %1023 = vmax.xlane.f32.xlu0 %v1022_v0  ;;  %v866_v1 = vpop.f32.mrb[14].mxu1 }
 0x687   :  { %v2822_v2 = vpop.f32.mrb[15].mxu1 }
 0x68c   :  { %v965_v3 = vpop.f32.mrb[16].mxu1 }
 0x68d   :  { %v2833_v4 = vpop.f32.mrb[17].mxu1  ;;  %v1028_v6 = vsel %vm383_vm2, %v965_v3, -inf }
 0x68e   :  { %1029 = vmax.xlane.f32.xlu0 %v1028_v6  ;;  %v968_v7 = vpop.f32.mrb[18].mxu1 }
 0x68f   :  { %v2834_v10 = vpop.f32.mrb[19].mxu1 }
 0x6a6   :  { %v3908_v12 = vpop.f32.mrb[20].mxu0 }
 0x6a7   :  { %v2815_v13 = vpop.f32.mrb[21].mxu0 }
 0x6a8   :  { %v815_v14 = vpop.f32.mrb[22].mxu0 }
 0x6a9   :  { %v2816_v15 = vpop.f32.mrb[23].mxu0 }
 0x6ae   :  { %v914_v16 = vpop.f32.mrb[24].mxu0 }
 0x6af   :  { %v2827_v18 = vpop.f32.mrb[25].mxu0  ;;  %v1025_v19 = vsel %vm383_vm2, %v914_v16, -inf }
 0x6b0   :  { %1026 = vmax.xlane.f32.xlu1 %v1025_v19  ;;  %v917_v20 = vpop.f32.mrb[26].mxu0 }
 0x6b1   :  { %v2828_v21 = vpop.f32.mrb[27].mxu0 }
 0x6b6   :  { %v1016_v23 = vpop.f32.mrb[28].mxu0 }
 0x6b7   :  { %v2839_v25 = vpop.f32.mrb[29].mxu0  ;;  %v1031_v26 = vsel %vm383_vm2, %v1016_v23, -inf }
 0x6b8   :  { %1032 = vmax.xlane.f32.xlu0 %v1031_v26  ;;  %v1019_v28 = vpop.f32.mrb[30].mxu0 }
 0x6b9   :  { %v2840_v29 = vpop.f32.mrb[31].mxu0 }
 0x6c1   :  { %1118 = vrot.lane.b32.xlu1 %v3794_v8, %s3511_s1 }
 0x6c5   :  { %1166 = vrot.lane.b32.xlu1 %v3798_v9, %s3511_s1 }
 0x6c9   :  { %1214 = vrot.lane.b32.xlu1 %v3801_v11, %s3511_s1 }
 0x713   :  { %v1024_v30 = vpop.xlane.xlu0 %1023 }
 0x714   :  { %v1034_v31 = vsub.f32 %v863_v61, %v1024_v30 }
 0x716   :  { %v1038_v32 = vmul.f32 1.442695, %v1034_v31 }
 0x718   :  { %3097 = vpow2.f32 %v1038_v32 }
 0x71b   :  { %v1030_v37 = vpop.xlane.xlu0 %1029 }
 0x71c   :  { %v1036_v41 = vsub.f32 %v965_v3, %v1030_v37 }
 0x71e   :  { %v1042_v42 = vmul.f32 1.442695, %v1036_v41 }
 0x722   :  { %v3098_v33 = vpop.eup %3097 }
 0x723   :  { %v1046_v34 = vsel %vm383_vm2, %v3098_v33, 0.0 }
 0x724   :  { %1047 = vadd.xlane.f32.xlu0 %v1046_v34 }
 0x73a   :  { %1070 = vrot.lane.b32.xlu0 %v3792_v5, %s3511_s1 }
 0x73d   :  { %v1027_v35 = vpop.xlane.xlu1 %1026 }
 0x73e   :  { %v1035_v36 = vsub.f32 %v914_v16, %v1027_v35 }
 0x740   :  { %v1040_v38 = vmul.f32 1.442695, %v1035_v36 }
 0x741   :  { %v1119_v39 = vpop.permute.xlu1 %1118 }
 0x742   :  { %3099 = vpow2.f32 %v1040_v38  ;;  %v1124_v40 = vsel %vm630_vm3, %v1119_v39, 0 }
 0x743   :  { %2848 = vmatpush3.bf16.msra.mxu0 %v1124_v40  ;;  %3101 = vpow2.f32 %v1042_v42 }
 0x744   :  { %2859 = vmatprep.subr.bf16.mxu0 %v3506_v62 }
 0x745   :  { %v1033_v47 = vpop.xlane.xlu0 %1032  ;;  %v1167_v60 = vpop.permute.xlu1 %1166 }
 0x746   :  { %v1037_v48 = vsub.f32 %v1016_v23, %v1033_v47  ;;  %v1172_v63 = vsel %vm630_vm3, %v1167_v60, 0 }
 0x748   :  { %v1044_v50 = vmul.f32 1.442695, %v1037_v48 }
 0x749   :  { %v1215_v0 = vpop.permute.xlu1 %1214 }
 0x74a   :  { %3103 = vpow2.f32 %v1044_v50  ;;  %v1220_v7 = vsel %vm630_vm3, %v1215_v0, 0 }
 0x74c   :  { %v3100_v43 = vpop.eup %3099 }
 0x74d   :  { %v1049_v44 = vsel %vm383_vm2, %v3100_v43, 0.0  ;;  %v3102_v45 = vpop.eup %3101 }
 0x74e   :  { %1050 = vadd.xlane.f32.xlu1 %v1049_v44  ;;  %v1052_v46 = vsel %vm383_vm2, %v3102_v45, 0.0 }
 0x754   :  { %v3104_v52 = vpop.eup %3103 }
 0x755   :  { %v1055_v53 = vsel %vm383_vm2, %v3104_v52, 0.0 }
 0x759   :  { %1053 = vadd.xlane.f32.xlu0 %v1052_v46 }
 0x75f   :  { %1314 = vrot.lane.b32.xlu1 %v3794_v8, %s3512_s17 }
 0x76f   :  { %1264 = vrot.lane.b32.xlu0 %v3792_v5, %s3512_s17 }
 0x773   :  { %1262 = vrot.lane.b32.xlu0 %v3806_v17, %s3513_s0 }
 0x777   :  { %1364 = vrot.lane.b32.xlu0 %v3798_v9, %s3512_s17 }
 0x77b   :  { %1362 = vrot.lane.b32.xlu0 %v3816_v22, %s3513_s0 }
 0x783   :  { %1056 = vadd.xlane.f32.xlu1 %v1055_v53 }
 0x794   :  { %1312 = vrot.lane.b32.xlu1 %v3818_v24, %s3513_s0 }
 0x798   :  { %1414 = vrot.lane.b32.xlu1 %v3801_v11, %s3512_s17 }
 0x79c   :  { %1412 = vrot.lane.b32.xlu1 %v3830_v27, %s3513_s0 }
 0x7b1   :  { %v1048_v54 = vpop.xlane.xlu0 %1047 }
 0x7b2   :  { %3105 = vrcp.f32 %v1048_v54 }
 0x7b5   :  { %v1071_v55 = vpop.permute.xlu0 %1070 }
 0x7b6   :  { %v1076_v56 = vsel %vm630_vm3, %v1071_v55, 0 }
 0x7b7   :  { %2842 = vmatpush3.bf16.msra.mxu1 %v1076_v56 }
 0x7b8   :  { %2853 = vmatprep.subr.bf16.mxu1 %v3506_v62 }
 0x7bc   :  { %v3106_v58 = vpop.eup %3105 }
 0x7bd   :  { %v1062_v59 = vmul.f32 %v3106_v58, %v3098_v33 }
 0x7bf   :  { %v1066_v61 = vpack.c.bf16 %v1062_v59, %v1062_v59 }
 0x7c1   :  { %2844 = vmatmul.mubr.msk.bf16.vlgmr.msra.gmra.mrb[20].mxu1 %vm383_vm2, %v1066_v61 }
 0x7c2   :  { %2854 = vmatpush3.bf16.msra.mxu1 %v1172_v63  ;;  %2855 = vmatprep.mubr.msk.bf16.mxu1 %vm3507_vm1, %v3506_v62 }
 0x7c3   :  { %2865 = vmatprep.subr.bf16.mxu1 %v3506_v62 }
 0x7db   :  { %v1051_v1 = vpop.xlane.xlu1 %1050 }
 0x7dc   :  { %3107 = vrcp.f32 %v1051_v1 }
 0x7df   :  { %v1315_v23 = vpop.permute.xlu1 %1314 }
 0x7e0   :  { %v1320_v31 = vsel %vm383_vm2, %v1315_v23, 0 }
 0x7e6   :  { %v3108_v2 = vpop.eup %3107  ;;  %v1054_v3 = vpop.xlane.xlu0 %1053 }
 0x7e7   :  { %v1063_v4 = vmul.f32 %v3108_v2, %v3100_v43  ;;  %3109 = vrcp.f32 %v1054_v3 }
 0x7e9   :  { %v1067_v6 = vpack.c.bf16 %v1063_v4, %v1063_v4 }
 0x7ea   :  { %v1265_v10 = vpop.permute.xlu0 %1264 }
 0x7eb   :  { %2850 = vmatmul.mubr.msk.bf16.vlgmr.msra.gmra.mrb[32].mxu0 %vm383_vm2, %v1067_v6  ;;  %v1270_v18 = vsel %vm383_vm2, %v1265_v10, 0 }
 0x7ec   :  { %2860 = vmatpush3.bf16.msra.mxu0 %v1220_v7  ;;  %2861 = vmatprep.mubr.msk.bf16.mxu0 %vm3507_vm1, %v3506_v62 }
 0x7ed   :  { %2871 = vmatprep.subr.bf16.mxu0 %v3506_v62 }
 0x7ee   :  { %v1263_v16 = vpop.permute.xlu0 %1262 }
 0x7f1   :  { %v3110_v13 = vpop.eup %3109 }
 0x7f2   :  { %v1064_v14 = vmul.f32 %v3110_v13, %v3102_v45  ;;  %v1365_v19 = vpop.permute.xlu0 %1364 }
 0x7f3   :  { %v1370_v20 = vsel %vm383_vm2, %v1365_v19, 0 }
 0x7f4   :  { %v1068_v15 = vpack.c.bf16 %v1064_v14, %v1064_v14 }
 0x7f6   :  { %2856 = vmatmul.mubr.msk.bf16.vlgmr.msra.gmra.mrb[24].mxu1 %vm383_vm2, %v1068_v15  ;;  %v1363_v21 = vpop.permute.xlu0 %1362 }
 0x7f7   :  { %2866 = vmatpush3.bf16.xpose.msra.mxu1 %v1270_v18  ;;  %2867 = vmatprep.mubr.msk.bf16.mxu1 %vm3507_vm1, %v3506_v62 }
 0x7f8   :  { %2877 = vmatprep.subr.bf16.mxu1 %v3506_v62 }
 0x7fe   :  { %2868 = vmatmul.mubr.msk.bf16.vlgmr.msra.gmra.mrb[28].mxu1 %vm383_vm2, %v1263_v16 }
 0x7ff   :  { %2878 = vmatpush3.bf16.xpose.msra.mxu1 %v1370_v20  ;;  %2879 = vmatprep.mubr.msk.bf16.mxu1 %vm3507_vm1, %v3506_v62 }
 0x800   :  { %2889 = vmatprep.subr.bf16.mxu1 %v3506_v62 }
 0x806   :  { %2880 = vmatmul.mubr.msk.bf16.vlgmr.msra.gmra.mrb[32].mxu1 %vm383_vm2, %v1363_v21 }
 0x807   :  { %2891 = vmatprep.mubr.msk.bf16.mxu1 %vm3507_vm1, %v3506_v62 }
 0x810   :  { %v1057_v25 = vpop.xlane.xlu1 %1056 }
 0x811   :  { %3111 = vrcp.f32 %v1057_v25 }
 0x814   :  { %v1313_v30 = vpop.permute.xlu1 %1312 }
 0x818   :  { %v1415_v32 = vpop.permute.xlu1 %1414 }
 0x819   :  { %v1420_v33 = vsel %vm383_vm2, %v1415_v32, 0 }
 0x81b   :  { %v3112_v26 = vpop.eup %3111 }
 0x81c   :  { %v1065_v28 = vmul.f32 %v3112_v26, %v3104_v52  ;;  %v1413_v34 = vpop.permute.xlu1 %1412 }
 0x81e   :  { %v1069_v29 = vpack.c.bf16 %v1065_v28, %v1065_v28 }
 0x820   :  { %2862 = vmatmul.mubr.msk.bf16.vlgmr.msra.gmra.mrb[36].mxu0 %vm383_vm2, %v1069_v29 }
 0x821   :  { %2872 = vmatpush3.bf16.xpose.msra.mxu0 %v1320_v31  ;;  %2873 = vmatprep.mubr.msk.bf16.mxu0 %vm3507_vm1, %v3506_v62 }
 0x822   :  { %2883 = vmatprep.subr.bf16.mxu0 %v3506_v62 }
 0x828   :  { %2874 = vmatmul.mubr.msk.bf16.vlgmr.msra.gmra.mrb[40].mxu0 %vm383_vm2, %v1313_v30 }
 0x829   :  { %2884 = vmatpush3.bf16.xpose.msra.mxu0 %v1420_v33  ;;  %2885 = vmatprep.mubr.msk.bf16.mxu0 %vm3507_vm1, %v3506_v62 }
 0x82a   :  { %2895 = vmatprep.subr.bf16.mxu0 %v3506_v62 }
 0x830   :  { %2886 = vmatmul.mubr.msk.bf16.vlgmr.msra.gmra.mrb[44].mxu0 %vm383_vm2, %v1413_v34 }
 0x831   :  { %2897 = vmatprep.mubr.msk.bf16.mxu0 %vm3507_vm1, %v3506_v62 }
 0x894   :  { %v3968_v35 = vpop.f32.mrb[20].mxu1 }
 0x895   :  { %v2845_v36 = vpop.f32.mrb[21].mxu1 }
 0x896   :  { %v1115_v37 = vpop.f32.mrb[22].mxu1 }
 0x897   :  { %v2846_v38 = vpop.f32.mrb[23].mxu1 }
 0x8be   :  { %v3970_v39 = vpop.f32.mrb[32].mxu0 }
 0x8bf   :  { %v3029_v40 = vpack.i.bf16 %v3970_v39, %v3968_v35  ;;  %v2851_v41 = vpop.f32.mrb[33].mxu0 }
 0x8c0   :  { %v1163_v42 = vpop.f32.mrb[34].mxu0 }
 0x8c1   :  { %v2852_v43 = vpop.f32.mrb[35].mxu0 }
 0x8c9   :  { %v3974_v44 = vpop.f32.mrb[24].mxu1 }
 0x8ca   :  { %v2857_v45 = vpop.f32.mrb[25].mxu1 }
 0x8cb   :  { %v1211_v46 = vpop.f32.mrb[26].mxu1 }
 0x8cc   :  { %v2858_v47 = vpop.f32.mrb[27].mxu1 }
 0x8d1   :  { %v1306_v48 = vpop.f32.mrb[28].mxu1 }
 0x8d2   :  { %v2869_v50 = vpop.f32.mrb[29].mxu1  ;;  %v1462_v52 = vsel %vm383_vm2, %v1306_v48, -inf }
 0x8d3   :  { %1463 = vmax.xlane.f32.xlu0 %v1462_v52  ;;  %v1309_v53 = vpop.f32.mrb[30].mxu1 }
 0x8d4   :  { %v2870_v54 = vpop.f32.mrb[31].mxu1 }
 0x8d9   :  { %v1406_v55 = vpop.f32.mrb[32].mxu1 }
 0x8da   :  { %v2881_v56 = vpop.f32.mrb[33].mxu1  ;;  %v1468_v58 = vsel %vm383_vm2, %v1406_v55, -inf }
 0x8db   :  { %1469 = vmax.xlane.f32.xlu0 %v1468_v58  ;;  %v1409_v59 = vpop.f32.mrb[34].mxu1 }
 0x8dc   :  { %v2882_v60 = vpop.f32.mrb[35].mxu1 }
 0x8f3   :  { %v3978_v61 = vpop.f32.mrb[36].mxu0 }
 0x8f4   :  { %v3034_v63 = vpack.i.bf16 %v3978_v61, %v3974_v44  ;;  %v2863_v0 = vpop.f32.mrb[37].mxu0 }
 0x8f5   :  { %v1259_v1 = vpop.f32.mrb[38].mxu0 }
 0x8f6   :  { %v2864_v2 = vpop.f32.mrb[39].mxu0 }
 0x8fb   :  { %v1356_v3 = vpop.f32.mrb[40].mxu0 }
 0x8fc   :  { %v2875_v4 = vpop.f32.mrb[41].mxu0  ;;  %v1465_v6 = vsel %vm383_vm2, %v1356_v3, -inf }
 0x8fd   :  { %1466 = vmax.xlane.f32.xlu1 %v1465_v6  ;;  %v1359_v7 = vpop.f32.mrb[42].mxu0 }
 0x8fe   :  { %v2876_v10 = vpop.f32.mrb[43].mxu0 }
 0x903   :  { %v1456_v13 = vpop.f32.mrb[44].mxu0 }
 0x904   :  { %v2887_v14 = vpop.f32.mrb[45].mxu0  ;;  %v1471_v15 = vsel %vm383_vm2, %v1456_v13, -inf }
 0x905   :  { %1472 = vmax.xlane.f32.xlu0 %v1471_v15  ;;  %v1459_v16 = vpop.f32.mrb[46].mxu0 }
 0x906   :  { %v2888_v18 = vpop.f32.mrb[47].mxu0 }
 0x90e   :  { %1558 = vrot.lane.b32.xlu1 %v3794_v8, %s3514_s15 }
 0x912   :  { %1606 = vrot.lane.b32.xlu1 %v3798_v9, %s3514_s15 }
 0x916   :  { %1654 = vrot.lane.b32.xlu1 %v3801_v11, %s3514_s15 }
 0x960   :  { %v1464_v19 = vpop.xlane.xlu0 %1463 }
 0x961   :  { %v1474_v20 = vsub.f32 %v1306_v48, %v1464_v19 }
 0x963   :  { %v1478_v21 = vmul.f32 1.442695, %v1474_v20 }
 0x965   :  { %3113 = vpow2.f32 %v1478_v21 }
 0x968   :  { %v1470_v29 = vpop.xlane.xlu0 %1469 }
 0x969   :  { %v1476_v33 = vsub.f32 %v1406_v55, %v1470_v29 }
 0x96b   :  { %v1482_v34 = vmul.f32 1.442695, %v1476_v33 }
 0x96f   :  { %v3114_v23 = vpop.eup %3113 }
 0x970   :  { %v1486_v25 = vsel %vm383_vm2, %v3114_v23, 0.0 }
 0x971   :  { %1487 = vadd.xlane.f32.xlu0 %v1486_v25 }
 0x987   :  { %1510 = vrot.lane.b32.xlu0 %v3792_v5, %s3514_s15 }
 0x98a   :  { %v1467_v26 = vpop.xlane.xlu1 %1466 }
 0x98b   :  { %v1475_v28 = vsub.f32 %v1356_v3, %v1467_v26 }
 0x98d   :  { %v1480_v30 = vmul.f32 1.442695, %v1475_v28 }
 0x98e   :  { %v1559_v31 = vpop.permute.xlu1 %1558 }
 0x98f   :  { %3115 = vpow2.f32 %v1480_v30  ;;  %v1564_v32 = vsel %vm630_vm3, %v1559_v31, 0 }
 0x990   :  { %2896 = vmatpush3.bf16.msra.mxu0 %v1564_v32  ;;  %3117 = vpow2.f32 %v1482_v34 }
 0x991   :  { %2907 = vmatprep.subr.bf16.mxu0 %v3506_v62 }
 0x992   :  { %v1473_v42 = vpop.xlane.xlu0 %1472  ;;  %v1607_v53 = vpop.permute.xlu1 %1606 }
 0x993   :  { %v1477_v43 = vsub.f32 %v1456_v13, %v1473_v42  ;;  %v1612_v55 = vsel %vm630_vm3, %v1607_v53, 0 }
 0x995   :  { %v1484_v45 = vmul.f32 1.442695, %v1477_v43 }
 0x997   :  { %3119 = vpow2.f32 %v1484_v45 }
 0x999   :  { %v3116_v36 = vpop.eup %3115 }
 0x99a   :  { %v1489_v37 = vsel %vm383_vm2, %v3116_v36, 0.0  ;;  %v3118_v38 = vpop.eup %3117 }
 0x99b   :  { %1490 = vadd.xlane.f32.xlu1 %v1489_v37  ;;  %v1492_v41 = vsel %vm383_vm2, %v3118_v38, 0.0 }
 0x9a1   :  { %v3120_v46 = vpop.eup %3119 }
 0x9a2   :  { %v1495_v47 = vsel %vm383_vm2, %v3120_v46, 0.0 }
 0x9a6   :  { %1493 = vadd.xlane.f32.xlu0 %v1492_v41 }
 0x9ac   :  { %1754 = vrot.lane.b32.xlu1 %v3794_v8, %s3515_s18 }
 0x9bc   :  { %1704 = vrot.lane.b32.xlu0 %v3792_v5, %s3515_s18 }
 0x9c0   :  { %1702 = vrot.lane.b32.xlu0 %v3806_v17, %s3516_s20 }
 0x9c4   :  { %1804 = vrot.lane.b32.xlu0 %v3798_v9, %s3515_s18 }
 0x9c8   :  { %1802 = vrot.lane.b32.xlu0 %v3816_v22, %s3516_s20 }
 0x9d0   :  { %1496 = vadd.xlane.f32.xlu1 %v1495_v47 }
 0x9e1   :  { %1752 = vrot.lane.b32.xlu1 %v3818_v24, %s3516_s20  ;;  %v1655_v24 = vpop.permute.xlu1 %1654 }
 0x9e2   :  { %v1660_v0 = vsel %vm630_vm3, %v1655_v24, 0 }
 0x9e5   :  { %1854 = vrot.lane.b32.xlu1 %v3801_v11, %s3515_s18 }
 0x9e9   :  { %1852 = vrot.lane.b32.xlu1 %v3830_v27, %s3516_s20 }
 0x9fe   :  { %v1488_v48 = vpop.xlane.xlu0 %1487 }
 0x9ff   :  { %3121 = vrcp.f32 %v1488_v48 }
 0xa02   :  { %v1511_v50 = vpop.permute.xlu0 %1510 }
 0xa03   :  { %v1516_v17 = vsel %vm630_vm3, %v1511_v50, 0 }
 0xa04   :  { %2890 = vmatpush3.bf16.msra.mxu1 %v1516_v17 }
 0xa05   :  { %2901 = vmatprep.subr.bf16.mxu1 %v3506_v62 }
 0xa09   :  { %v3122_v52 = vpop.eup %3121 }
 0xa0a   :  { %v1502_v22 = vmul.f32 %v3122_v52, %v3114_v23 }
 0xa0c   :  { %v1506_v54 = vpack.c.bf16 %v1502_v22, %v1502_v22 }
 0xa0e   :  { %2892 = vmatmul.mubr.msk.bf16.vlgmr.msra.gmra.mrb[36].mxu1 %vm383_vm2, %v1506_v54 }
 0xa0f   :  { %2902 = vmatpush3.bf16.msra.mxu1 %v1612_v55  ;;  %2903 = vmatprep.mubr.msk.bf16.mxu1 %vm3507_vm1, %v3506_v62 }
 0xa10   :  { %2913 = vmatprep.subr.bf16.mxu1 %v3506_v62 }
 0xa28   :  { %v1491_v27 = vpop.xlane.xlu1 %1490 }
 0xa29   :  { %3123 = vrcp.f32 %v1491_v27 }
 0xa2c   :  { %v1755_v15 = vpop.permute.xlu1 %1754 }
 0xa2d   :  { %v1760_v23 = vsel %vm383_vm2, %v1755_v15, 0 }
 0xa33   :  { %v3124_v56 = vpop.eup %3123  ;;  %v1494_v58 = vpop.xlane.xlu0 %1493 }
 0xa34   :  { %v1503_v59 = vmul.f32 %v3124_v56, %v3116_v36  ;;  %3125 = vrcp.f32 %v1494_v58 }
 0xa36   :  { %v1507_v60 = vpack.c.bf16 %v1503_v59, %v1503_v59 }
 0xa37   :  { %v1705_v1 = vpop.permute.xlu0 %1704 }
 0xa38   :  { %2898 = vmatmul.mubr.msk.bf16.vlgmr.msra.gmra.mrb[48].mxu0 %vm383_vm2, %v1507_v60  ;;  %v1710_v7 = vsel %vm383_vm2, %v1705_v1, 0 }
 0xa39   :  { %2908 = vmatpush3.bf16.msra.mxu0 %v1660_v0  ;;  %2909 = vmatprep.mubr.msk.bf16.mxu0 %vm3507_vm1, %v3506_v62 }
 0xa3a   :  { %2919 = vmatprep.subr.bf16.mxu0 %v3506_v62 }
 0xa3b   :  { %v1703_v6 = vpop.permute.xlu0 %1702 }
 0xa3e   :  { %v3126_v2 = vpop.eup %3125 }
 0xa3f   :  { %v1504_v3 = vmul.f32 %v3126_v2, %v3118_v38  ;;  %v1805_v10 = vpop.permute.xlu0 %1804 }
 0xa40   :  { %v1810_v13 = vsel %vm383_vm2, %v1805_v10, 0 }
 0xa41   :  { %v1508_v4 = vpack.c.bf16 %v1504_v3, %v1504_v3 }
 0xa43   :  { %2904 = vmatmul.mubr.msk.bf16.vlgmr.msra.gmra.mrb[40].mxu1 %vm383_vm2, %v1508_v4  ;;  %v1803_v14 = vpop.permute.xlu0 %1802 }
 0xa44   :  { %2914 = vmatpush3.bf16.xpose.msra.mxu1 %v1710_v7  ;;  %2915 = vmatprep.mubr.msk.bf16.mxu1 %vm3507_vm1, %v3506_v62 }
 0xa45   :  { %2925 = vmatprep.subr.bf16.mxu1 %v3506_v62 }
 0xa4b   :  { %2916 = vmatmul.mubr.msk.bf16.vlgmr.msra.gmra.mrb[44].mxu1 %vm383_vm2, %v1703_v6 }
 0xa4c   :  { %2926 = vmatpush3.bf16.xpose.msra.mxu1 %v1810_v13  ;;  %2927 = vmatprep.mubr.msk.bf16.mxu1 %vm3507_vm1, %v3506_v62 }
 0xa4d   :  { %2937 = vmatprep.subr.bf16.mxu1 %v3506_v62 }
 0xa53   :  { %2928 = vmatmul.mubr.msk.bf16.vlgmr.msra.gmra.mrb[48].mxu1 %vm383_vm2, %v1803_v14 }
 0xa54   :  { %2939 = vmatprep.mubr.msk.bf16.mxu1 %vm3507_vm1, %v3506_v62 }
 0xa5d   :  { %v1497_v16 = vpop.xlane.xlu1 %1496 }
 0xa5e   :  { %3127 = vrcp.f32 %v1497_v16 }
 0xa61   :  { %v1753_v21 = vpop.permute.xlu1 %1752 }
 0xa65   :  { %v1855_v25 = vpop.permute.xlu1 %1854 }
 0xa66   :  { %v1860_v26 = vsel %vm383_vm2, %v1855_v25, 0 }
 0xa68   :  { %v3128_v18 = vpop.eup %3127 }
 0xa69   :  { %v1505_v19 = vmul.f32 %v3128_v18, %v3120_v46  ;;  %v1853_v28 = vpop.permute.xlu1 %1852 }
 0xa6b   :  { %v1509_v20 = vpack.c.bf16 %v1505_v19, %v1505_v19 }
 0xa6d   :  { %2910 = vmatmul.mubr.msk.bf16.vlgmr.msra.gmra.mrb[52].mxu0 %vm383_vm2, %v1509_v20 }
 0xa6e   :  { %2920 = vmatpush3.bf16.xpose.msra.mxu0 %v1760_v23  ;;  %2921 = vmatprep.mubr.msk.bf16.mxu0 %vm3507_vm1, %v3506_v62 }
 0xa6f   :  { %2931 = vmatprep.subr.bf16.mxu0 %v3506_v62 }
 0xa75   :  { %2922 = vmatmul.mubr.msk.bf16.vlgmr.msra.gmra.mrb[56].mxu0 %vm383_vm2, %v1753_v21 }
 0xa76   :  { %2932 = vmatpush3.bf16.xpose.msra.mxu0 %v1860_v26  ;;  %2933 = vmatprep.mubr.msk.bf16.mxu0 %vm3507_vm1, %v3506_v62 }
 0xa77   :  { %2943 = vmatprep.subr.bf16.mxu0 %v3506_v62 }
 0xa7d   :  { %2934 = vmatmul.mubr.msk.bf16.vlgmr.msra.gmra.mrb[60].mxu0 %vm383_vm2, %v1853_v28 }
 0xa7e   :  { %2945 = vmatprep.mubr.msk.bf16.mxu0 %vm3507_vm1, %v3506_v62 }
 0xae1   :  { %v4040_v29 = vpop.f32.mrb[36].mxu1 }
 0xae2   :  { %v2893_v30 = vpop.f32.mrb[37].mxu1 }
 0xae3   :  { %v1555_v31 = vpop.f32.mrb[38].mxu1 }
 0xae4   :  { %v2894_v32 = vpop.f32.mrb[39].mxu1 }
 0xb0b   :  { %v1600_v33 = vpop.f32.mrb[48].mxu0 }
 0xb0c   :  { %v3039_v34 = vpack.i.bf16 %v1600_v33, %v4040_v29  ;;  %v2899_v36 = vpop.f32.mrb[49].mxu0 }
 0xb0d   :  { %v1603_v37 = vpop.f32.mrb[50].mxu0 }
 0xb0e   :  { %v2900_v38 = vpop.f32.mrb[51].mxu0 }
 0xb16   :  { %v4043_v41 = vpop.f32.mrb[40].mxu1 }
 0xb17   :  { %v2905_v42 = vpop.f32.mrb[41].mxu1 }
 0xb18   :  { %v1651_v43 = vpop.f32.mrb[42].mxu1 }
 0xb19   :  { %v2906_v45 = vpop.f32.mrb[43].mxu1 }
 0xb1e   :  { %v1746_v46 = vpop.f32.mrb[44].mxu1 }
 0xb1f   :  { %v2917_v47 = vpop.f32.mrb[45].mxu1  ;;  %v1902_v48 = vsel %vm383_vm2, %v1746_v46, -inf }
 0xb20   :  { %1903 = vmax.xlane.f32.xlu0 %v1902_v48  ;;  %v1749_v50 = vpop.f32.mrb[46].mxu1 }
 0xb21   :  { %v2918_v17 = vpop.f32.mrb[47].mxu1 }
 0xb26   :  { %v1846_v52 = vpop.f32.mrb[48].mxu1 }
 0xb27   :  { %v2929_v22 = vpop.f32.mrb[49].mxu1  ;;  %v1908_v53 = vsel %vm383_vm2, %v1846_v52, -inf }
 0xb28   :  { %1909 = vmax.xlane.f32.xlu0 %v1908_v53  ;;  %v1849_v54 = vpop.f32.mrb[50].mxu1 }
 0xb29   :  { %v2930_v55 = vpop.f32.mrb[51].mxu1 }
 0xb40   :  { %v1696_v24 = vpop.f32.mrb[52].mxu0 }
 0xb41   :  { %v3044_v27 = vpack.i.bf16 %v1696_v24, %v4043_v41  ;;  %v2911_v56 = vpop.f32.mrb[53].mxu0 }
 0xb42   :  { %v1699_v58 = vpop.f32.mrb[54].mxu0 }
 0xb43   :  { %v2912_v59 = vpop.f32.mrb[55].mxu0 }
 0xb44   :  { %v3061_v59 = vld [vmem:[#allocation11] sm:$0xff]  }
 0xb48   :  { %v1796_v60 = vpop.f32.mrb[56].mxu0 }
 0xb49   :  { %v2923_v0 = vpop.f32.mrb[57].mxu0  ;;  %v1905_v1 = vsel %vm383_vm2, %v1796_v60, -inf }
 0xb4a   :  { %1906 = vmax.xlane.f32.xlu1 %v1905_v1  ;;  %v1799_v2 = vpop.f32.mrb[58].mxu0 }
 0xb4b   :  { %v2924_v3 = vpop.f32.mrb[59].mxu0 }
 0xb50   :  { %v1896_v4 = vpop.f32.mrb[60].mxu0 }
 0xb51   :  { %v2935_v6 = vpop.f32.mrb[61].mxu0  ;;  %v1911_v7 = vsel %vm383_vm2, %v1896_v4, -inf }
 0xb52   :  { %1912 = vmax.xlane.f32.xlu0 %v1911_v7  ;;  %v1899_v10 = vpop.f32.mrb[62].mxu0 }
 0xb53   :  { %v2936_v13 = vpop.f32.mrb[63].mxu0  ;;  %v3062_v10 = vld [vmem:[#allocation11 + $0x8] sm:$0xff]  }
 0xbad   :  { %v1904_v14 = vpop.xlane.xlu0 %1903 }
 0xbae   :  { %v1914_v15 = vsub.f32 %v1746_v46, %v1904_v14 }
 0xbb0   :  { %v1918_v16 = vmul.f32 1.442695, %v1914_v15 }
 0xbb2   :  { %3129 = vpow2.f32 %v1918_v16 }
 0xbb5   :  { %v1910_v18 = vpop.xlane.xlu0 %1909 }
 0xbb6   :  { %v1916_v19 = vsub.f32 %v1846_v52, %v1910_v18 }
 0xbb8   :  { %v1922_v20 = vmul.f32 1.442695, %v1916_v19 }
 0xbba   :  { %3131 = vpow2.f32 %v1922_v20 }
 0xbbc   :  { %v3130_v21 = vpop.eup %3129 }
 0xbbd   :  { %v1926_v23 = vsel %vm383_vm2, %v3130_v21, 0.0 }
 0xbbe   :  { %1927 = vadd.xlane.f32.xlu0 %v1926_v23 }
 0xbc4   :  { %v3132_v25 = vpop.eup %3131 }
 0xbc5   :  { %v1932_v26 = vsel %vm383_vm2, %v3132_v25, 0.0 }
 0xbc6   :  { %1933 = vadd.xlane.f32.xlu0 %v1932_v26 }
 0xbd7   :  { %v1907_v28 = vpop.xlane.xlu1 %1906 }
 0xbd8   :  { %v1915_v29 = vsub.f32 %v1796_v60, %v1907_v28 }
 0xbda   :  { %v1920_v30 = vmul.f32 1.442695, %v1915_v29 }
 0xbdc   :  { %3133 = vpow2.f32 %v1920_v30  ;;  %1950 = vrot.lane.b32.xlu0 %v3792_v5, %s3517_s7 }
 0xbdf   :  { %v1913_v33 = vpop.xlane.xlu0 %1912 }
 0xbe0   :  { %3030 = vrot.lane.b32.xlu0 %v3029_v40, %s3499_s26  ;;  %v1917_v36 = vsub.f32 %v1896_v4, %v1913_v33 }
 0xbe2   :  { %v1924_v37 = vmul.f32 1.442695, %v1917_v36 }
 0xbe4   :  { %3040 = vrot.lane.b32.xlu0 %v3039_v34, %s3518_s4  ;;  %3135 = vpow2.f32 %v1924_v37 }
 0xbe6   :  { %v3134_v31 = vpop.eup %3133 }
 0xbe7   :  { %v1929_v32 = vsel %vm383_vm2, %v3134_v31, 0.0 }
 0xbe8   :  { %1930 = vadd.xlane.f32.xlu1 %v1929_v32 }
 0xbee   :  { %v3136_v5 = vpop.eup %3135 }
 0xbef   :  { %v1935_v38 = vsel %vm383_vm2, %v3136_v5, 0.0 }
 0xbf9   :  { %1998 = vrot.lane.b32.xlu1 %v3794_v8, %s3517_s7 }
 0xbfd   :  { %2046 = vrot.lane.b32.xlu1 %v3798_v9, %s3517_s7 }
 0xc21   :  { %1936 = vadd.xlane.f32.xlu1 %v1935_v38 }
 0xc32   :  { %2094 = vrot.lane.b32.xlu1 %v3801_v11, %s3517_s7 }
 0xc36   :  { %3035 = vrot.lane.b32.xlu1 %v3034_v63, %s3499_s26 }
 0xc3a   :  { %3045 = vrot.lane.b32.xlu1 %v3044_v27, %s3518_s4 }
 0xc4b   :  { %v1928_v35 = vpop.xlane.xlu0 %1927 }
 0xc4c   :  { %3137 = vrcp.f32 %v1928_v35 }
 0xc53   :  { %v1934_v8 = vpop.xlane.xlu0 %1933 }
 0xc54   :  { %3139 = vrcp.f32 %v1934_v8 }
 0xc56   :  { %v3138_v9 = vpop.eup %3137 }
 0xc57   :  { %v1942_v39 = vmul.f32 %v3138_v9, %v3130_v21  ;;  %v1951_v40 = vpop.permute.xlu0 %1950 }
 0xc58   :  { %v1956_v34 = vsel %vm630_vm3, %v1951_v40, 0 }
 0xc59   :  { %2938 = vmatpush3.bf16.msra.mxu1 %v1956_v34  ;;  %v1946_v41 = vpack.c.bf16 %v1942_v39, %v1942_v39 }
 0xc5a   :  { %2949 = vmatprep.subr.bf16.mxu1 %v3506_v62 }
 0xc5b   :  { %v3031_v19 = vpop.permute.xlu0 %3030 }
 0xc5c   :  { %2940 = vmatmul.mubr.msk.bf16.vlgmr.msra.gmra.mrb[52].mxu1 %vm383_vm2, %v1946_v41  ;;  %v3033_v21 = vunpack.i.h.bf16 %v3031_v19  ;;  %v3032_v23 = vunpack.i.l.bf16 %v3031_v19 }
 0xc5d   :  { %2951 = vmatprep.mubr.msk.bf16.mxu1 %vm3507_vm1, %v3506_v62 }
 0xc5e   :  { %v3140_v44 = vpop.eup %3139  ;;  %v2191_v29 = vsel %vm383_vm2, %v3900_v49, %v3033_v21  ;;  %v2190_v30 = vsel %vm383_vm2, %v3902_v51, %v3032_v23 }
 0xc5f   :  { %v1944_v42 = vmul.f32 %v3140_v44, %v3132_v25  ;;  %v3041_v20 = vpop.permute.xlu0 %3040 }
 0xc60   :  { %v3043_v25 = vunpack.i.h.bf16 %v3041_v20  ;;  %v3042_v26 = vunpack.i.l.bf16 %v3041_v20 }
 0xc61   :  { %v1948_v47 = vpack.c.bf16 %v1944_v42, %v1944_v42 }
 0xc62   :  { %v2195_v33 = vsel %vm2194_vm4, %v2190_v30, %v3042_v26  ;;  %v2196_v36 = vsel %vm2194_vm4, %v2191_v29, %v3043_v25 }
 0xc75   :  { %v1931_v11 = vpop.xlane.xlu1 %1930 }
 0xc76   :  { %3141 = vrcp.f32 %v1931_v11 }
 0xc79   :  { %v1999_v61 = vpop.permute.xlu1 %1998 }
 0xc7a   :  { %v2004_v63 = vsel %vm630_vm3, %v1999_v61, 0 }
 0xc7b   :  { %2944 = vmatpush3.bf16.msra.mxu0 %v2004_v63 }
 0xc7c   :  { %2955 = vmatprep.subr.bf16.mxu0 %v3506_v62 }
 0xc7d   :  { %v2047_v43 = vpop.permute.xlu1 %2046 }
 0xc7e   :  { %v2052_v45 = vsel %vm630_vm3, %v2047_v43, 0 }
 0xc7f   :  { %2950 = vmatpush3.bf16.msra.mxu1 %v2052_v45 }
 0xc80   :  { %v3142_v46 = vpop.eup %3141  ;;  %2961 = vmatprep.subr.bf16.mxu1 %v3061_v59 }
 0xc81   :  { %v1943_v48 = vmul.f32 %v3142_v46, %v3134_v31  ;;  %v2652_v46 = vld [vmem:[#allocation13] ss:$0 sm:$0xff] }
 0xc82   :  { %2952 = vmatmul.mubr.msk.bf16.vlgmr.msra.gmra.mrb[56].mxu1 %vm383_vm2, %v1948_v47 }
 0xc83   :  { %v1947_v50 = vpack.c.bf16 %v1943_v48, %v1943_v48  ;;  %2962 = vmatpush3.bf16.msra.mxu1 %v3061_v59 }
 0xc84   :  { %2963 = vmatprep.subr.bf16.mxu1 %v3062_v10 }
 0xc85   :  { %2946 = vmatmul.mubr.msk.bf16.vlgmr.msra.gmra.mrb[64].mxu0 %vm383_vm2, %v1947_v50 }
 0xc86   :  { %2957 = vmatprep.mubr.msk.bf16.mxu0 %vm3507_vm1, %v3506_v62 }
 0xc87   :  { %2964 = vmatpush3.bf16.msra.mxu1 %v3062_v10 }
 0xcae   :  { %v1937_v17 = vpop.xlane.xlu1 %1936 }
 0xcaf   :  { %3143 = vrcp.f32 %v1937_v17 }
 0xcb2   :  { %v2095_v52 = vpop.permute.xlu1 %2094 }
 0xcb3   :  { %v2100_v22 = vsel %vm630_vm3, %v2095_v52, 0  ;;  %v3161_v52 = vld [vmem:[#allocation2] sm:$0xff] }
 0xcb4   :  { %2956 = vmatpush3.bf16.msra.mxu0 %v2100_v22 }
 0xcb6   :  { %v3036_v35 = vpop.permute.xlu1 %3035 }
 0xcb7   :  { %v3038_v9 = vunpack.i.h.bf16 %v3036_v35  ;;  %v3037_v49 = vunpack.i.l.bf16 %v3036_v35 }
 0xcb9   :  { %v3144_v53 = vpop.eup %3143  ;;  %v2193_v34 = vsel %vm383_vm2, %v3908_v12, %v3038_v9  ;;  %v2192_v41 = vsel %vm383_vm2, %v3904_v57, %v3037_v49 }
 0xcba   :  { %v1945_v54 = vmul.f32 %v3144_v53, %v3136_v5  ;;  %v3046_v8 = vpop.permute.xlu1 %3045 }
 0xcbb   :  { %v3048_v39 = vunpack.i.h.bf16 %v3046_v8  ;;  %v3047_v40 = vunpack.i.l.bf16 %v3046_v8 }
 0xcbc   :  { %v1949_v55 = vpack.c.bf16 %v1945_v54, %v1945_v54  ;;  %v3162_v54 = vld [vmem:[#allocation2 + $0x10] sm:$0xff] }
 0xcbd   :  { %v2197_v61 = vsel %vm2194_vm4, %v2192_v41, %v3047_v40  ;;  %v2198_v63 = vsel %vm2194_vm4, %v2193_v34, %v3048_v39  ;;  %v2657_v41 = vld [vmem:[#allocation14] ss:$0 sm:$0xff] }
 0xcbe   :  { %2958 = vmatmul.mubr.msk.bf16.vlgmr.msra.gmra.mrb[68].mxu0 %vm383_vm2, %v1949_v55 }
 0xd2f   :  { %v1992_v24 = vpop.f32.mrb[52].mxu1 }
 0xd30   :  { %v2941_v27 = vpop.f32.mrb[53].mxu1 }
 0xd31   :  { %v1995_v56 = vpop.f32.mrb[54].mxu1  ;;  %v3163_v27 = vld [vmem:[#allocation2 + $0x8] sm:$0xff] }
 0xd32   :  { %v2942_v58 = vpop.f32.mrb[55].mxu1 }
 0xd55   :  { %v2088_v60 = vpop.f32.mrb[56].mxu1 }
 0xd56   :  { %v2953_v0 = vpop.f32.mrb[57].mxu1 }
 0xd57   :  { %v2091_v62 = vpop.f32.mrb[58].mxu1 }
 0xd58   :  { %v2040_v1 = vpop.f32.mrb[64].mxu0  ;;  %v2954_v2 = vpop.f32.mrb[59].mxu1 }
 0xd59   :  { %v3049_v3 = vpack.i.bf16 %v2040_v1, %v1992_v24  ;;  %v2947_v4 = vpop.f32.mrb[65].mxu0 }
 0xd5a   :  { %v2043_v6 = vpop.f32.mrb[66].mxu0 }
 0xd5b   :  { %3050 = vrot.lane.b32.xlu0 %v3049_v3, %s3519_s27  ;;  %v2948_v7 = vpop.f32.mrb[67].mxu0 }
 0xd91   :  { %v2136_v13 = vpop.f32.mrb[68].mxu0 }
 0xd92   :  { %v3054_v14 = vpack.i.bf16 %v2136_v13, %v2088_v60  ;;  %v2959_v15 = vpop.f32.mrb[69].mxu0  ;;  %v3164_v60 = vld [vmem:[#allocation2 + $0x18] sm:$0xff] }
 0xd93   :  { %v2139_v16 = vpop.f32.mrb[70].mxu0 }
 0xd94   :  { %3055 = vrot.lane.b32.xlu1 %v3054_v14, %s3519_s27  ;;  %v2960_v18 = vpop.f32.mrb[71].mxu0 }
 0xdcd   :  { %v3051_v28 = vpop.permute.xlu0 %3050 }
 0xdce   :  { %v3053_v31 = vunpack.i.h.bf16 %v3051_v28  ;;  %v3052_v32 = vunpack.i.l.bf16 %v3051_v28 }
 0xdd0   :  { %v2201_v37 = vsel %vm2199_vm5, %v2196_v36, %v3053_v31  ;;  %v2200_v5 = vsel %vm2199_vm5, %v2195_v33, %v3052_v32  ;;  %v3063_v31 = vld [vmem:[#allocation17] sm:$0xff]   ;;  %v3064_v32 = vld [vmem:[#allocation17 + $0x8] sm:$0xff]  }
 0xdd1   :  { %v2204_v38 = vpack.c.bf16 %v2201_v37, %v2200_v5  ;;  %2969 = vmatprep.subr.bf16.mxu0 %v3063_v31 }
 0xdd2   :  { %2970 = vmatpush3.bf16.msra.mxu0 %v3063_v31 }
 0xdd3   :  { %2965 = vmatprep.mubr.msk.bf16.mxu1 %vm214_vm0, %v2204_v38  ;;  %2971 = vmatprep.subr.bf16.mxu0 %v3064_v32 }
 0xdd6   :  { %2972 = vmatpush3.bf16.msra.mxu0 %v3064_v32 }
 0xe06   :  { %v3056_v51 = vpop.permute.xlu1 %3055 }
 0xe07   :  { %v3058_v11 = vunpack.i.h.bf16 %v3056_v51  ;;  %v3057_v44 = vunpack.i.l.bf16 %v3056_v51 }
 0xe09   :  { %v2203_v42 = vsel %vm2199_vm5, %v2198_v63, %v3058_v11  ;;  %v2202_v43 = vsel %vm2199_vm5, %v2197_v61, %v3057_v44 }
 0xe0a   :  { %v2205_v45 = vpack.c.bf16 %v2203_v42, %v2202_v43  ;;  %v2658_v43 = vld [vmem:[#allocation16] ss:$0 sm:$0xff] }
 0xe0c   :  { %2966 = vmatmul.mubr.msk.bf16.vlgmr.msra.gmra.mrb[60].mxu1 %vm214_vm0, %v2205_v45 }
 0xedf   :  { %v2967_v47 = vpop.f32.mrb[60].mxu1 }
 0xee0   :  { %v2269_v48 = vpop.f32.mrb[61].mxu1  ;;  %v2278_v12 = vadd.f32 %v2967_v47, %v2652_v46 }
 0xee1   :  { %v2270_v50 = vadd.f32 %v2652_v46, %v2269_v48  ;;  %v2968_v17 = vpop.f32.mrb[62].mxu1 }
 0xee2   :  { %v2272_v57 = vpop.f32.mrb[63].mxu1  ;;  %v4100_v55 = vadd.f32 %v3162_v54, %v2278_v12  ;;  %v2281_v24 = vadd.f32 %v2968_v17, %v2652_v46 }
 0xee3   :  { %v4098_v22 = vadd.f32 %v3161_v52, %v2270_v50  ;;  %v2273_v53 = vadd.f32 %v2652_v46, %v2272_v57 }
 0xee4   :  { %v4108_v0 = vadd.f32 %v3164_v60, %v2281_v24  ;;  %v2296_v62 = vsel %vm214_vm0, %v4100_v55, 0.0  ;;  %v3068_v60 = vld [vmem:[#allocation20 + $0x18] sm:$0xff]  }
 0xee5   :  { %v4102_v56 = vadd.f32 %v3163_v27, %v2273_v53  ;;  %v2290_v58 = vsel %vm214_vm0, %v4098_v22, 0.0  ;;  %v3065_v27 = vld [vmem:[#allocation20] sm:$0xff]  }
 0xee6   :  { %2291 = vadd.xlane.f32.xlu0 %v2290_v58  ;;  %v2299_v1 = vsel %vm214_vm0, %v4108_v0, 0.0  ;;  %2977 = vmatprep.subr.bf16.mxu1 %v3065_v27  ;;  %v3066_v58 = vld [vmem:[#allocation20 + $0x8] sm:$0xff]  }
 0xee7   :  { %v2293_v59 = vsel %vm214_vm0, %v4102_v56, 0.0  ;;  %2978 = vmatpush3.bf16.msra.mxu1 %v3065_v27 }
 0xee8   :  { %2294 = vadd.xlane.f32.xlu1 %v2293_v59  ;;  %2979 = vmatprep.subr.bf16.mxu1 %v3066_v58  ;;  %v3067_v59 = vld [vmem:[#allocation20 + $0x10] sm:$0xff]  }
 0xeea   :  { %2297 = vadd.xlane.f32.xlu0 %v2296_v62  ;;  %v3069_v62 = vld [vmem:[#allocation20 + $0x20] sm:$0xff]  }
 0xeeb   :  { %2980 = vmatpush3.bf16.msra.mxu1 %v3066_v58 }
 0xeec   :  { %2981 = vmatprep.subr.bf16.mxu1 %v3067_v59 }
 0xeee   :  { %2300 = vadd.xlane.f32.xlu0 %v2299_v1  ;;  %v3070_v1 = vld [vmem:[#allocation20 + $0x28] sm:$0xff]  }
 0xeef   :  { %2982 = vmatpush3.bf16.msra.mxu1 %v3067_v59 }
 0xef0   :  { %2983 = vmatprep.subr.bf16.mxu1 %v3068_v60 }
 0xef3   :  { %2984 = vmatpush3.bf16.msra.mxu1 %v3068_v60 }
 0xef4   :  { %2985 = vmatprep.subr.bf16.mxu1 %v3069_v62 }
 0xef7   :  { %2986 = vmatpush3.bf16.msra.mxu1 %v3069_v62 }
 0xef8   :  { %2987 = vmatprep.subr.bf16.mxu1 %v3070_v1 }
 0xefb   :  { %2988 = vmatpush3.bf16.msra.mxu1 %v3070_v1 }
 0xf73   :  { %v2292_v2 = vpop.xlane.xlu0 %2291 }
 0xf74   :  { %v2302_v3 = vmul.f32 0.03125, %v2292_v2  ;;  %v3071_v2 = vld [vmem:[#allocation20 + $0x30] sm:$0xff]  }
 0xf75   :  { %v2295_v4 = vpop.xlane.xlu1 %2294  ;;  %2989 = vmatprep.subr.bf16.mxu1 %v3071_v2 }
 0xf76   :  { %v2306_v6 = vsub.f32 %v4098_v22, %v2302_v3  ;;  %v2303_v7 = vmul.f32 0.03125, %v2295_v4  ;;  %2990 = vmatpush3.bf16.msra.mxu1 %v3071_v2  ;;  %v3072_v3 = vld [vmem:[#allocation20 + $0x38] sm:$0xff]  }
 0xf77   :  { %v2298_v10 = vpop.xlane.xlu0 %2297  ;;  %2991 = vmatprep.subr.bf16.mxu1 %v3072_v3 }
 0xf78   :  { %v2307_v13 = vsub.f32 %v4102_v56, %v2303_v7  ;;  %v2304_v14 = vmul.f32 0.03125, %v2298_v10  ;;  %v2310_v15 = vmul.f32 %v2306_v6, %v2306_v6 }
 0xf7a   :  { %v2308_v16 = vsub.f32 %v4100_v55, %v2304_v14  ;;  %v2314_v18 = vsel %vm214_vm0, %v2310_v15, 0.0  ;;  %v2311_v19 = vmul.f32 %v2307_v13, %v2307_v13  ;;  %2992 = vmatpush3.bf16.msra.mxu1 %v3072_v3 }
 0xf7b   :  { %2315 = vadd.xlane.f32.xlu0 %v2314_v18  ;;  %v2301_v20 = vpop.xlane.xlu0 %2300 }
 0xf7c   :  { %v2305_v21 = vmul.f32 0.03125, %v2301_v20  ;;  %v2317_v23 = vsel %vm214_vm0, %v2311_v19, 0.0  ;;  %v2312_v25 = vmul.f32 %v2308_v16, %v2308_v16 }
 0xf7d   :  { %2318 = vadd.xlane.f32.xlu1 %v2317_v23 }
 0xf7e   :  { %v2309_v26 = vsub.f32 %v4108_v0, %v2305_v21  ;;  %v2320_v28 = vsel %vm214_vm0, %v2312_v25, 0.0 }
 0xf7f   :  { %2321 = vadd.xlane.f32.xlu0 %v2320_v28 }
 0xf80   :  { %v2313_v29 = vmul.f32 %v2309_v26, %v2309_v26 }
 0xf82   :  { %v2323_v30 = vsel %vm214_vm0, %v2313_v29, 0.0 }
 0xf83   :  { %2324 = vadd.xlane.f32.xlu1 %v2323_v30 }
0x1008   :  { %v2316_v33 = vpop.xlane.xlu0 %2315 }
0x1009   :  { %v2326_v36 = vmul.f32 0.03125, %v2316_v33 }
0x100a   :  { %v2319_v37 = vpop.xlane.xlu1 %2318 }
0x100b   :  { %v2330_v5 = vadd.f32 1e-05, %v2326_v36  ;;  %v2327_v38 = vmul.f32 0.03125, %v2319_v37 }
0x100c   :  { %v2322_v35 = vpop.xlane.xlu0 %2321 }
0x100d   :  { %3145 = vrsqrt.f32 %v2330_v5  ;;  %v2331_v8 = vadd.f32 1e-05, %v2327_v38  ;;  %v2328_v9 = vmul.f32 0.03125, %v2322_v35  ;;  %v2666_v35 = vld [vmem:[#allocation22] ss:$0 sm:$0xff] }
0x100f   :  { %3147 = vrsqrt.f32 %v2331_v8  ;;  %v2332_v49 = vadd.f32 1e-05, %v2328_v9 }
0x1010   :  { %v2325_v39 = vpop.xlane.xlu1 %2324 }
0x1011   :  { %3149 = vrsqrt.f32 %v2332_v49  ;;  %v2329_v40 = vmul.f32 0.03125, %v2325_v39 }
0x1013   :  { %v2333_v51 = vadd.f32 1e-05, %v2329_v40 }
0x1015   :  { %3151 = vrsqrt.f32 %v2333_v51 }
0x1017   :  { %v3146_v34 = vpop.eup %3145 }
0x1018   :  { %v2338_v11 = vmul.f32 %v3146_v34, %v2306_v6  ;;  %v2659_v6 = vld [vmem:[#allocation19] ss:$0 sm:$0xff] }
0x1019   :  { %v3148_v44 = vpop.eup %3147 }
0x101a   :  { %v2339_v61 = vmul.f32 %v3148_v44, %v2307_v13  ;;  %v2348_v63 = vmul.f32 %v2657_v41, %v2338_v11 }
0x101b   :  { %v3150_v42 = vpop.eup %3149 }
0x101c   :  { %v2340_v45 = vmul.f32 %v3150_v42, %v2308_v16  ;;  %v2349_v46 = vmul.f32 %v2657_v41, %v2339_v61  ;;  %v2358_v47 = vadd.f32 %v2658_v43, %v2348_v63 }
0x101e   :  { %v2359_v48 = vadd.f32 %v2658_v43, %v2349_v46  ;;  %v2350_v50 = vmul.f32 %v2657_v41, %v2340_v45 }
0x101f   :  { %v3152_v12 = vpop.eup %3151 }
0x1020   :  { %v2341_v17 = vmul.f32 %v3152_v12, %v2309_v26  ;;  %v2362_v57 = vpack.c.bf16 %v2359_v48, %v2358_v47  ;;  %v2360_v53 = vadd.f32 %v2658_v43, %v2350_v50 }
0x1022   :  { %v2351_v52 = vmul.f32 %v2657_v41, %v2341_v17  ;;  %2973 = vmatprep.mubr.msk.bf16.mxu0 %vm214_vm0, %v2362_v57 }
0x1024   :  { %v2361_v54 = vadd.f32 %v2658_v43, %v2351_v52 }
0x1026   :  { %v2363_v24 = vpack.c.bf16 %v2361_v54, %v2360_v53 }
0x1028   :  { %2974 = vmatmul.mubr.msk.bf16.vlgmr.msra.gmra.mrb[72].mxu0 %vm214_vm0, %v2363_v24 }
0x10fb   :  { %v2975_v4 = vpop.f32.mrb[72].mxu0 }
0x10fc   :  { %v2427_v7 = vpop.f32.mrb[73].mxu0  ;;  %v2436_v13 = vadd.f32 %v2975_v4, %v2659_v6 }
0x10fd   :  { %v2976_v10 = vpop.f32.mrb[74].mxu0  ;;  %v2428_v16 = vadd.f32 %v2659_v6, %v2427_v7 }
0x10fe   :  { %v2439_v14 = vadd.f32 %v2976_v10, %v2659_v6  ;;  %v2430_v15 = vpop.f32.mrb[75].mxu0 }
0x10ff   :  { %v2431_v18 = vadd.f32 %v2659_v6, %v2430_v15 }
0x1100   :  { %v2443_v19 = vpack.c.bf16 %v2439_v14, %v2436_v13 }
0x1101   :  { %v2442_v20 = vpack.c.bf16 %v2431_v18, %v2428_v16 }
0x1102   :  { %v2665_v21 = vmul.bf16 3218784218, %v2443_v19 }
0x1103   :  { %v2664_v23 = vmul.bf16 3218784218, %v2442_v20 }
0x1104   :  { %v2452_v25 = vmul.bf16 1069105081, %v2665_v21 }
0x1105   :  { %v2449_v26 = vmul.bf16 1069105081, %v2664_v23 }
0x1106   :  { %3153 = vpow.bf16 %v2452_v25 }
0x1107   :  { %3155 = vpow.bf16 %v2449_v26 }
0x1111   :  { %v3154_v28 = vpop.eup %3153 }
0x1112   :  { %v3156_v29 = vpop.eup %3155  ;;  %v2455_v30 = vadd.bf16 1065369472, %v3154_v28 }
0x1113   :  { %v2454_v31 = vadd.bf16 1065369472, %v3156_v29 }
0x1114   :  { %3157 = vrcp.bf16 %v2455_v30 }
0x1115   :  { %3159 = vrcp.bf16 %v2454_v31 }
0x111f   :  { %v3158_v32 = vpop.eup %3157 }
0x1120   :  { %v3160_v33 = vpop.eup %3159  ;;  %v2459_v36 = vmul.bf16 1065369472, %v3158_v32 }
0x1121   :  { %v2457_v37 = vmul.bf16 1065369472, %v3160_v33 }
0x1122   :  { %v2461_v38 = vmul.bf16 %v2459_v36, %v2443_v19 }
0x1123   :  { %v2460_v5 = vmul.bf16 %v2457_v37, %v2442_v20 }
0x1125   :  { %2993 = vmatprep.mubr.bf16.mxu1 %v2460_v5 }
0x1126   :  { %2994 = vmatmul.mubr.bf16.vlgmr.msra.gmra.mrb[64].mxu1 %v2461_v38 }
0x11f9   :  { %v2995_v8 = vpop.f32.mrb[64].mxu1 }
0x11fa   :  { %v2576_v9 = vadd.f32 %v2995_v8, %v2666_v35  ;;  %v2567_v49 = vpop.f32.mrb[65].mxu1 }
0x11fb   :  { %v2568_v39 = vadd.f32 %v2666_v35, %v2567_v49  ;;  %v2996_v40 = vpop.f32.mrb[66].mxu1 }
0x11fc   :  { %v2584_v51 = vadd.f32 %v2576_v9, %v4100_v55  ;;  %v2579_v34 = vadd.f32 %v2996_v40, %v2666_v35  ;;  %v2570_v41 = vpop.f32.mrb[67].mxu1 }
0x11fd   :  { %v2582_v11 = vadd.f32 %v2568_v39, %v4098_v22  ;;  %v2571_v44 = vadd.f32 %v2666_v35, %v2570_v41 }
0x11fe   :  { %2588 = vst.msk [vmem:[#allocation23 + $0x10] sm:$0xff] %vm214_vm0, %v2584_v51  ;;  %v2585_v61 = vadd.f32 %v2579_v34, %v4108_v0 }
0x11ff   :  { %2586 = vst.msk [vmem:[#allocation23] sm:$0xff] %vm214_vm0, %v2582_v11  ;;  %v2583_v63 = vadd.f32 %v2571_v44, %v4102_v56 }
0x1200   :  { %2589 = vst.msk [vmem:[#allocation23 + $0x18] sm:$0xff] %vm214_vm0, %v2585_v61 }
0x1201   :  { %2587 = vst.msk [vmem:[#allocation23 + $0x8] sm:$0xff] %vm214_vm0, %v2583_v63 }
0x1202   :  { %3462 = shalt.err (!%p3459_p10)
}
0x1203   :  { %s3463_s3 = scalar_lea.hbm %s4160_s13, 512 }
0x1204   :  { %p3464_p11 = scmp.ne.s32.totalorder %s4160_s13, %s3463_s3  ;;  %p3467_p12 = scmp.lt.u32.totalorder %s3463_s3, %s4160_s13 }
0x1206   :  { %p3469_p13 = pnand %p3467_p12, %p3464_p11 }
0x1208   :  { %3472 = shalt.err (!%p3469_p13)
}
0x1209   :  { %2601 = dma.vmem_to_hbm [thread:$0]  %s2596_s8, 512, %s4160_s13, [#allocation4], %s3498_s11, %s3498_s11, %s3499_s26  }
0x120a   :  { %3487 = dma.done.wait [#allocation4], 512  }
0x120b   :  { %3488 = vsyncadd [#allocation4], 4294966784 }
0x120c   :  { %2605 = vsyncpa [#allocation3], 1 }
0x120d   :  { %2606 = vsyncpa [#allocation6], 1 }
0x120e   :  { %2607 = vsyncpa [#allocation9], 1 }
0x120f   :  { %2608 = vsyncpa [#allocation12], 1 }
0x1210   :  { %2609 = vsyncpa [#allocation15], 1 }
0x1211   :  { %2610 = vsyncpa [#allocation18], 1 }
0x1212   :  { %2611 = vsyncpa [#allocation21], 1 }
0x1213   :  { %2612 = vsyncpa [#allocation4], 1 }

// kernel: tpu_custom_call.1
= control target key start
LH: loop header
LB: loop body
LE: loop exit
PB: predicated region body
PF: predicated region fallthrough
CT: control target
= control target key end

     0   :  { %18 = vsyncpa [#allocation3], 0  ;;  %s4147_s0 = inlined_call_operand.hbm [shape: f32[32,32], index: 0, kind: input, shape index: {}]   ;;  %s4148_s1 = inlined_call_operand.hbm [shape: f32[1,32], index: 1, kind: input, shape index: {}]   ;;  %s4149_s2 = inlined_call_operand.hbm [shape: f32[1,32], index: 2, kind: input, shape index: {}]   ;;  %s4150_s3 = inlined_call_operand.hbm [shape: bf16[32,96], index: 3, kind: input, shape index: {}]   ;;  %s4151_s4 = inlined_call_operand.hbm [shape: f32[1,96], index: 4, kind: input, shape index: {}]   ;;  %s4152_s5 = inlined_call_operand.hbm [shape: bf16[32,32], index: 5, kind: input, shape index: {}]   ;;  %s4153_s6 = inlined_call_operand.hbm [shape: f32[1,32], index: 6, kind: input, shape index: {}]   ;;  %s4154_s7 = inlined_call_operand.hbm [shape: f32[1,32], index: 7, kind: input, shape index: {}]   ;;  %s4155_s8 = inlined_call_operand.hbm [shape: f32[1,32], index: 8, kind: input, shape index: {}]   ;;  %s4156_s9 = inlined_call_operand.hbm [shape: bf16[32,128], index: 9, kind: input, shape index: {}]   ;;  %s4157_s10 = inlined_call_operand.hbm [shape: f32[1,128], index: 10, kind: input, shape index: {}]   ;;  %s4158_s11 = inlined_call_operand.hbm [shape: bf16[128,32], index: 11, kind: input, shape index: {}]   ;;  %s4159_s12 = inlined_call_operand.hbm [shape: f32[1,32], index: 12, kind: input, shape index: {}]   ;;  %s4160_s13 = inlined_call_operand.hbm [shape: f32[32,32], index: 13, kind: output, shape index: {}]  }
   0x1   :  { %19 = vsyncpa [#allocation6], 0 }
   0x2   :  { %20 = vsyncpa [#allocation9], 0 }
   0x3   :  { %21 = vsyncpa [#allocation12], 0 }
   0x4   :  { %22 = vsyncpa [#allocation15], 0 }
   0x5   :  { %23 = vsyncpa [#allocation18], 0 }
   0x6   :  { %24 = vsyncpa [#allocation21], 0 }
   0x7   :  { %25 = vsyncpa [#allocation4], 0  ;;  %s3489_s25 = smov [#allocation5]   ;;  %s3490_s27 = smov [#allocation8]  }
   0x8   :  { %s44_s26 = sshll.u32 %s3489_s25, 4  ;;  %s63_s28 = sshll.u32 %s3490_s27, 4  ;;  %s45_s26 = int_to_ptr.vmem [resolvable:$true] %s44_s26  ;;  %s3591_s28 = int_to_ptr.vmem [resolvable:$true] %s63_s28 }
   0x9   :  { %s3165_s14 = scalar_lea.hbm %s4148_s1, 16 }
   0xa   :  { %p3166_p0 = scmp.ne.s32.totalorder %s4148_s1, %s3165_s14  ;;  %p3169_p1 = scmp.lt.u32.totalorder %s3165_s14, %s4148_s1 }
   0xc   :  { %p3171_p2 = pnand %p3169_p1, %p3166_p0 }
   0xe   :  { %3174 = shalt.err (!%p3171_p2)
}
   0xf   :  { %s3175_s19 = scalar_lea.vmem %s45_s26, 16  ;;  %s3179_s20 = scalar_lea.vmem %s45_s26, 32 }
  0x10   :  { %p3176_p3 = scmp.ne.s32.totalorder %s45_s26, %s3175_s19  ;;  %p3180_p4 = scmp.lt.s32.totalorder %s45_s26, %s45_s26 }
  0x11   :  { %p3181_p5 = scmp.lt.s32.totalorder %s3179_s20, %s3175_s19 }
  0x13   :  { %p3182_p6 = por %p3181_p5, %p3180_p4 }
  0x15   :  { %p3183_p7 = pnand %p3182_p6, %p3176_p3 }
  0x17   :  { %3186 = shalt.err (!%p3183_p7)
}
  0x18   :  { %47 = dma.hbm_to_vmem [thread:$0]  %s4148_s1, 16, %s45_s26, [#allocation6]  }
  0x19   :  { %s3187_s25 = scalar_lea.hbm %s4150_s3, 256 }
  0x1a   :  { %p3188_p8 = scmp.ne.s32.totalorder %s4150_s3, %s3187_s25  ;;  %p3191_p9 = scmp.lt.u32.totalorder %s3187_s25, %s4150_s3 }
  0x1c   :  { %p3193_p10 = pnand %p3191_p9, %p3188_p8 }
  0x1e   :  { %3196 = shalt.err (!%p3193_p10)
}
  0x1f   :  { %s3197_s15 = scalar_lea.vmem %s3591_s28, 256  ;;  %p3202_p12 = scmp.lt.s32.totalorder %s3591_s28, %s3591_s28 }
  0x20   :  { %p3198_p11 = scmp.ne.s32.totalorder %s3591_s28, %s3197_s15  ;;  %p3203_p13 = scmp.lt.s32.totalorder %s3197_s15, %s3197_s15 }
  0x22   :  { %p3204_p0 = por %p3203_p13, %p3202_p12 }
  0x24   :  { %p3205_p1 = pnand %p3204_p0, %p3198_p11 }
  0x26   :  { %3208 = shalt.err (!%p3205_p1)
}
  0x27   :  { %s3491_s1 = smov 64   ;;  %s3492_s26 = smov 4  }
  0x28   :  { %69 = dma.hbm_to_vmem [thread:$0]  %s4150_s3, 256, %s3591_s28, [#allocation9], %s3491_s1, %s3491_s1, %s3492_s26  }
  0x29   :  { %s3493_s18 = smov [#allocation11]   ;;  %s3494_s20 = smov [#allocation14]  }
  0x2a   :  { %s85_s19 = sshll.u32 %s3493_s18, 4  ;;  %s108_s21 = sshll.u32 %s3494_s20, 4  ;;  %s86_s19 = int_to_ptr.vmem [resolvable:$true] %s85_s19  ;;  %s109_s21 = int_to_ptr.vmem [resolvable:$true] %s108_s21 }
  0x2b   :  { %s3209_s24 = scalar_lea.hbm %s4152_s5, 256 }
  0x2c   :  { %p3210_p2 = scmp.ne.s32.totalorder %s4152_s5, %s3209_s24  ;;  %p3213_p3 = scmp.lt.u32.totalorder %s3209_s24, %s4152_s5 }
  0x2e   :  { %p3215_p4 = pnand %p3213_p3, %p3210_p2 }
  0x30   :  { %3218 = shalt.err (!%p3215_p4)
}
  0x31   :  { %s3219_s3 = scalar_lea.vmem %s86_s19, 256  ;;  %p3224_p6 = scmp.lt.s32.totalorder %s86_s19, %s86_s19 }
  0x32   :  { %p3220_p5 = scmp.ne.s32.totalorder %s86_s19, %s3219_s3  ;;  %p3225_p7 = scmp.lt.s32.totalorder %s3219_s3, %s3219_s3 }
  0x34   :  { %p3226_p8 = por %p3225_p7, %p3224_p6 }
  0x36   :  { %p3227_p9 = pnand %p3226_p8, %p3220_p5 }
  0x38   :  { %3230 = shalt.err (!%p3227_p9)
}
  0x39   :  { %91 = dma.hbm_to_vmem [thread:$0]  %s4152_s5, 256, %s86_s19, [#allocation12], %s3491_s1, %s3491_s1, %s3492_s26  }
  0x3a   :  { %s3231_s17 = scalar_lea.hbm %s4154_s7, 16 }
  0x3b   :  { %p3232_p10 = scmp.ne.s32.totalorder %s4154_s7, %s3231_s17  ;;  %p3235_p11 = scmp.lt.u32.totalorder %s3231_s17, %s4154_s7 }
  0x3d   :  { %p3237_p12 = pnand %p3235_p11, %p3232_p10 }
  0x3f   :  { %3240 = shalt.err (!%p3237_p12)
}
  0x40   :  { %s3241_s24 = scalar_lea.vmem %s109_s21, 16  ;;  %s3245_s25 = scalar_lea.vmem %s109_s21, 32 }
  0x41   :  { %p3242_p13 = scmp.ne.s32.totalorder %s109_s21, %s3241_s24  ;;  %p3246_p0 = scmp.lt.s32.totalorder %s109_s21, %s109_s21 }
  0x42   :  { %p3247_p1 = scmp.lt.s32.totalorder %s3245_s25, %s3241_s24 }
  0x44   :  { %p3248_p2 = por %p3247_p1, %p3246_p0 }
  0x46   :  { %p3249_p3 = pnand %p3248_p2, %p3242_p13 }
  0x48   :  { %3252 = shalt.err (!%p3249_p3)
}
  0x49   :  { %111 = dma.hbm_to_vmem [thread:$0]  %s4154_s7, 16, %s109_s21, [#allocation15]  }
  0x4a   :  { %s3495_s27 = smov [#allocation17]   ;;  %s3496_s30 = smov [#allocation20]  }
  0x4b   :  { %s127_s29 = sshll.u32 %s3495_s27, 4  ;;  %s149_s3 = sshll.u32 %s3496_s30, 4  ;;  %s128_s29 = int_to_ptr.vmem [resolvable:$true] %s127_s29  ;;  %s3652_s3 = int_to_ptr.vmem [resolvable:$true] %s149_s3 }
  0x4c   :  { %s3253_s15 = scalar_lea.hbm %s4156_s9, 256 }
  0x4d   :  { %p3254_p4 = scmp.ne.s32.totalorder %s4156_s9, %s3253_s15  ;;  %p3257_p5 = scmp.lt.u32.totalorder %s3253_s15, %s4156_s9 }
  0x4f   :  { %p3259_p6 = pnand %p3257_p5, %p3254_p4 }
  0x51   :  { %3262 = shalt.err (!%p3259_p6)
}
  0x52   :  { %s3263_s7 = scalar_lea.vmem %s128_s29, 256  ;;  %p3268_p8 = scmp.lt.s32.totalorder %s128_s29, %s128_s29 }
  0x53   :  { %p3264_p7 = scmp.ne.s32.totalorder %s128_s29, %s3263_s7  ;;  %p3269_p9 = scmp.lt.s32.totalorder %s3263_s7, %s3263_s7 }
  0x55   :  { %p3270_p10 = por %p3269_p9, %p3268_p8 }
  0x57   :  { %p3271_p11 = pnand %p3270_p10, %p3264_p7 }
  0x59   :  { %3274 = shalt.err (!%p3271_p11)
}
  0x5a   :  { %133 = dma.hbm_to_vmem [thread:$0]  %s4156_s9, 256, %s128_s29, [#allocation18], %s3491_s1, %s3491_s1, %s3492_s26  }
  0x5b   :  { %s3275_s25 = scalar_lea.hbm %s4158_s11, 1024 }
  0x5c   :  { %p3276_p12 = scmp.ne.s32.totalorder %s4158_s11, %s3275_s25  ;;  %p3279_p13 = scmp.lt.u32.totalorder %s3275_s25, %s4158_s11 }
  0x5e   :  { %p3281_p0 = pnand %p3279_p13, %p3276_p12 }
  0x60   :  { %3284 = shalt.err (!%p3281_p0)
}
  0x61   :  { %s3285_s28 = scalar_lea.vmem %s3652_s3, 1024  ;;  %p3290_p2 = scmp.lt.s32.totalorder %s3652_s3, %s3652_s3 }
  0x62   :  { %p3286_p1 = scmp.ne.s32.totalorder %s3652_s3, %s3285_s28  ;;  %p3291_p3 = scmp.lt.s32.totalorder %s3285_s28, %s3285_s28 }
  0x64   :  { %p3292_p4 = por %p3291_p3, %p3290_p2 }
  0x66   :  { %p3293_p5 = pnand %p3292_p4, %p3286_p1 }
  0x68   :  { %3296 = shalt.err (!%p3293_p5)
}
  0x69   :  { %155 = dma.hbm_to_vmem [thread:$0]  %s4158_s11, 1024, %s3652_s3, [#allocation21], %s3491_s1, %s3491_s1, %s3492_s26  }
  0x6a   :  { %s3497_s14 = smov [#allocation2]   ;;  %s3297_s18 = scalar_lea.hbm %s4147_s0, 512 }
  0x6b   :  { %s31_s15 = sshll.u32 %s3497_s14, 4  ;;  %p3298_p6 = scmp.ne.s32.totalorder %s4147_s0, %s3297_s18  ;;  %s32_s15 = int_to_ptr.vmem [resolvable:$true] %s31_s15 }
  0x6c   :  { %p3301_p7 = scmp.lt.u32.totalorder %s3297_s18, %s4147_s0 }
  0x6e   :  { %p3303_p8 = pnand %p3301_p7, %p3298_p6 }
  0x70   :  { %3306 = shalt.err (!%p3303_p8)
}
  0x71   :  { %s3307_s23 = scalar_lea.vmem %s32_s15, 512  ;;  %p3312_p10 = scmp.lt.s32.totalorder %s32_s15, %s32_s15 }
  0x72   :  { %p3308_p9 = scmp.ne.s32.totalorder %s32_s15, %s3307_s23  ;;  %p3313_p11 = scmp.lt.s32.totalorder %s3307_s23, %s3307_s23 }
  0x74   :  { %p3314_p12 = por %p3313_p11, %p3312_p10 }
  0x76   :  { %p3315_p13 = pnand %p3314_p12, %p3308_p9 }
  0x78   :  { %3318 = shalt.err (!%p3315_p13)
}
  0x79   :  { %s3498_s11 = smov 128   ;;  %s3499_s26 = smov 8  }
  0x7a   :  { %37 = dma.hbm_to_vmem [thread:$0]  %s4147_s0, 512, %s32_s15, [#allocation3], %s3498_s11, %s3498_s11, %s3499_s26  }
  0x7b   :  { %s3500_s25 = smov [#allocation7]   ;;  %s3501_s19 = smov [#allocation10]  }
  0x7c   :  { %s54_s5 = sshll.u32 %s3500_s25, 4  ;;  %s76_s27 = sshll.u32 %s3501_s19, 4  ;;  %s55_s5 = int_to_ptr.vmem [resolvable:$true] %s54_s5  ;;  %s77_s27 = int_to_ptr.vmem [resolvable:$true] %s76_s27 }
  0x7d   :  { %s3319_s9 = scalar_lea.hbm %s4149_s2, 16 }
  0x7e   :  { %p3320_p0 = scmp.ne.s32.totalorder %s4149_s2, %s3319_s9  ;;  %p3323_p1 = scmp.lt.u32.totalorder %s3319_s9, %s4149_s2 }
  0x80   :  { %p3325_p2 = pnand %p3323_p1, %p3320_p0 }
  0x82   :  { %3328 = shalt.err (!%p3325_p2)
}
  0x83   :  { %s3329_s0 = scalar_lea.vmem %s55_s5, 16  ;;  %s3333_s15 = scalar_lea.vmem %s55_s5, 32 }
  0x84   :  { %p3330_p3 = scmp.ne.s32.totalorder %s55_s5, %s3329_s0  ;;  %p3334_p4 = scmp.lt.s32.totalorder %s55_s5, %s55_s5 }
  0x85   :  { %p3335_p5 = scmp.lt.s32.totalorder %s3333_s15, %s3329_s0 }
  0x87   :  { %p3336_p6 = por %p3335_p5, %p3334_p4 }
  0x89   :  { %p3337_p7 = pnand %p3336_p6, %p3330_p3 }
  0x8b   :  { %3340 = shalt.err (!%p3337_p7)
}
  0x8c   :  { %57 = dma.hbm_to_vmem [thread:$0]  %s4149_s2, 16, %s55_s5, [#allocation6]  }
  0x8d   :  { %s3341_s22 = scalar_lea.hbm %s4151_s4, 16 }
  0x8e   :  { %p3342_p8 = scmp.ne.s32.totalorder %s4151_s4, %s3341_s22  ;;  %p3345_p9 = scmp.lt.u32.totalorder %s3341_s22, %s4151_s4 }
  0x90   :  { %p3347_p10 = pnand %p3345_p9, %p3342_p8 }
  0x92   :  { %3350 = shalt.err (!%p3347_p10)
}
  0x93   :  { %s3351_s19 = scalar_lea.vmem %s77_s27, 16  ;;  %s3355_s30 = scalar_lea.vmem %s77_s27, 32 }
  0x94   :  { %p3352_p11 = scmp.ne.s32.totalorder %s77_s27, %s3351_s19  ;;  %p3356_p12 = scmp.lt.s32.totalorder %s77_s27, %s77_s27 }
  0x95   :  { %p3357_p13 = scmp.lt.s32.totalorder %s3355_s30, %s3351_s19 }
  0x97   :  { %p3358_p0 = por %p3357_p13, %p3356_p12 }
  0x99   :  { %p3359_p1 = pnand %p3358_p0, %p3352_p11 }
  0x9b   :  { %3362 = shalt.err (!%p3359_p1)
}
  0x9c   :  { %79 = dma.hbm_to_vmem [thread:$0]  %s4151_s4, 16, %s77_s27, [#allocation9]  }
  0x9d   :  { %s3502_s28 = smov [#allocation13]   ;;  %s3503_s29 = smov [#allocation16]  }
  0x9e   :  { %s98_s9 = sshll.u32 %s3502_s28, 4  ;;  %s118_s14 = sshll.u32 %s3503_s29, 4  ;;  %s99_s9 = int_to_ptr.vmem [resolvable:$true] %s98_s9  ;;  %s119_s14 = int_to_ptr.vmem [resolvable:$true] %s118_s14 }
  0x9f   :  { %s3363_s0 = scalar_lea.hbm %s4153_s6, 16 }
  0xa0   :  { %p3364_p2 = scmp.ne.s32.totalorder %s4153_s6, %s3363_s0  ;;  %p3367_p3 = scmp.lt.u32.totalorder %s3363_s0, %s4153_s6 }
  0xa2   :  { %p3369_p4 = pnand %p3367_p3, %p3364_p2 }
  0xa4   :  { %3372 = shalt.err (!%p3369_p4)
}
  0xa5   :  { %s3373_s4 = scalar_lea.vmem %s99_s9, 16  ;;  %s3377_s27 = scalar_lea.vmem %s99_s9, 32 }
  0xa6   :  { %p3374_p5 = scmp.ne.s32.totalorder %s99_s9, %s3373_s4  ;;  %p3378_p6 = scmp.lt.s32.totalorder %s99_s9, %s99_s9 }
  0xa7   :  { %p3379_p7 = scmp.lt.s32.totalorder %s3377_s27, %s3373_s4 }
  0xa9   :  { %p3380_p8 = por %p3379_p7, %p3378_p6 }
  0xab   :  { %p3381_p9 = pnand %p3380_p8, %p3374_p5 }
  0xad   :  { %3384 = shalt.err (!%p3381_p9)
}
  0xae   :  { %101 = dma.hbm_to_vmem [thread:$0]  %s4153_s6, 16, %s99_s9, [#allocation12]  }
  0xaf   :  { %s3385_s24 = scalar_lea.hbm %s4155_s8, 16 }
  0xb0   :  { %p3386_p10 = scmp.ne.s32.totalorder %s4155_s8, %s3385_s24  ;;  %p3389_p11 = scmp.lt.u32.totalorder %s3385_s24, %s4155_s8 }
  0xb2   :  { %p3391_p12 = pnand %p3389_p11, %p3386_p10 }
  0xb4   :  { %3394 = shalt.err (!%p3391_p12)
}
  0xb5   :  { %s3395_s5 = scalar_lea.vmem %s119_s14, 16  ;;  %s3399_s28 = scalar_lea.vmem %s119_s14, 32 }
  0xb6   :  { %p3396_p13 = scmp.ne.s32.totalorder %s119_s14, %s3395_s5  ;;  %p3400_p0 = scmp.lt.s32.totalorder %s119_s14, %s119_s14 }
  0xb7   :  { %p3401_p1 = scmp.lt.s32.totalorder %s3399_s28, %s3395_s5 }
  0xb9   :  { %p3402_p2 = por %p3401_p1, %p3400_p0 }
  0xbb   :  { %p3403_p3 = pnand %p3402_p2, %p3396_p13 }
  0xbd   :  { %3406 = shalt.err (!%p3403_p3)
}
  0xbe   :  { %121 = dma.hbm_to_vmem [thread:$0]  %s4155_s8, 16, %s119_s14, [#allocation15]  }
  0xbf   :  { %s3504_s29 = smov [#allocation19]   ;;  %s3505_s17 = smov [#allocation22]  }
  0xc0   :  { %s140_s16 = sshll.u32 %s3504_s29, 4  ;;  %s162_s0 = sshll.u32 %s3505_s17, 4  ;;  %s141_s16 = int_to_ptr.vmem [resolvable:$true] %s140_s16  ;;  %s163_s0 = int_to_ptr.vmem [resolvable:$true] %s162_s0 }
  0xc1   :  { %s3407_s20 = scalar_lea.hbm %s4157_s10, 16 }
  0xc2   :  { %p3408_p4 = scmp.ne.s32.totalorder %s4157_s10, %s3407_s20  ;;  %p3411_p5 = scmp.lt.u32.totalorder %s3407_s20, %s4157_s10 }
  0xc4   :  { %p3413_p6 = pnand %p3411_p5, %p3408_p4 }
  0xc6   :  { %3416 = shalt.err (!%p3413_p6)
}
  0xc7   :  { %s3417_s8 = scalar_lea.vmem %s141_s16, 16  ;;  %s3421_s14 = scalar_lea.vmem %s141_s16, 32 }
  0xc8   :  { %p3418_p7 = scmp.ne.s32.totalorder %s141_s16, %s3417_s8  ;;  %p3422_p8 = scmp.lt.s32.totalorder %s141_s16, %s141_s16 }
  0xc9   :  { %p3423_p9 = scmp.lt.s32.totalorder %s3421_s14, %s3417_s8 }
  0xcb   :  { %p3424_p10 = por %p3423_p9, %p3422_p8 }
  0xcd   :  { %p3425_p11 = pnand %p3424_p10, %p3418_p7 }
  0xcf   :  { %3428 = shalt.err (!%p3425_p11)
}
  0xd0   :  { %143 = dma.hbm_to_vmem [thread:$0]  %s4157_s10, 16, %s141_s16, [#allocation18]  }
  0xd1   :  { %s3429_s25 = scalar_lea.hbm %s4159_s12, 16 }
  0xd2   :  { %p3430_p12 = scmp.ne.s32.totalorder %s4159_s12, %s3429_s25  ;;  %p3433_p13 = scmp.lt.u32.totalorder %s3429_s25, %s4159_s12 }
  0xd4   :  { %p3435_p0 = pnand %p3433_p13, %p3430_p12 }
  0xd6   :  { %3438 = shalt.err (!%p3435_p0)
}
  0xd7   :  { %s3439_s28 = scalar_lea.vmem %s163_s0, 16  ;;  %s3443_s6 = scalar_lea.vmem %s163_s0, 32 }
  0xd8   :  { %p3440_p1 = scmp.ne.s32.totalorder %s163_s0, %s3439_s28  ;;  %p3444_p2 = scmp.lt.s32.totalorder %s163_s0, %s163_s0 }
  0xd9   :  { %p3445_p3 = scmp.lt.s32.totalorder %s3443_s6, %s3439_s28 }
  0xdb   :  { %p3446_p4 = por %p3445_p3, %p3444_p2 }
  0xdd   :  { %p3447_p5 = pnand %p3446_p4, %p3440_p1 }
  0xdf   :  { %3450 = shalt.err (!%p3447_p5)
}
  0xe0   :  { %165 = dma.hbm_to_vmem [thread:$0]  %s4159_s12, 16, %s163_s0, [#allocation21]  }
  0xe1   :  { %3473 = dma.done.wait [#allocation3], 512  }
  0xe2   :  { %3474 = vsyncadd [#allocation3], 4294966784 }
  0xe3   :  { %3475 = dma.done.wait [#allocation6], 32  }
  0xe4   :  { %3476 = vsyncadd [#allocation6], 4294967264 }
  0xe5   :  { %3477 = dma.done.wait [#allocation9], 272  }
  0xe6   :  { %3478 = vsyncadd [#allocation9], 4294967024 }
  0xe7   :  { %3479 = dma.done.wait [#allocation12], 272  }
  0xe8   :  { %3480 = vsyncadd [#allocation12], 4294967024 }
  0xe9   :  { %3481 = dma.done.wait [#allocation15], 32  }
  0xea   :  { %3482 = vsyncadd [#allocation15], 4294967264 }
  0xeb   :  { %3483 = dma.done.wait [#allocation18], 272  }
  0xec   :  { %3484 = vsyncadd [#allocation18], 4294967024 }
  0xed   :  { %3485 = dma.done.wait [#allocation21], 1040  }
  0xee   :  { %3486 = vsyncadd [#allocation21], 4294966256  ;;  %vm214_vm0 = vcmask 261120   ;;  %v208_v0 = vld [vmem:[#allocation2] sm:$0xff]  ;;  %v210_v1 = vld [vmem:[#allocation2 + $0x10] sm:$0xff]  ;;  %v3506_v62 = vmov 0.0  }
  0xef   :  { %v209_v2 = vld [vmem:[#allocation2 + $0x8] sm:$0xff]  ;;  %v215_v3 = vsel %vm214_vm0, %v208_v0, 0.0  ;;  %v221_v4 = vsel %vm214_vm0, %v210_v1, 0.0  ;;  %v211_v5 = vld [vmem:[#allocation2 + $0x18] sm:$0xff]  ;;  %v2613_v44 = vld [vmem:[#allocation5] ss:$0 sm:$0xff]  ;;  %2781 = vmatprep.subr.bf16.mxu1 %v3506_v62 }
  0xf0   :  { %216 = vadd.xlane.f32.xlu0 %v215_v3  ;;  %222 = vadd.xlane.f32.xlu1 %v221_v4  ;;  %v218_v6 = vsel %vm214_vm0, %v209_v2, 0.0  ;;  %v224_v7 = vsel %vm214_vm0, %v211_v5, 0.0  ;;  %v3059_v28 = vld [vmem:[#allocation8] sm:$0xff]   ;;  %v3060_v29 = vld [vmem:[#allocation8 + $0x8] sm:$0xff]   ;;  %v2614_v50 = vld [vmem:[#allocation7] ss:$0 sm:$0xff] }
  0xf1   :  { %2761 = vmatprep.subr.bf16.mxu0 %v3059_v28  ;;  %v2615_v63 = vld [vmem:[#allocation10] ss:$0 sm:$0xff]  ;;  %vm3507_vm1 = vmmov 0   ;;  %s3508_s12 = smov 96   ;;  %vm383_vm2 = vcmask 64512   ;;  %vm630_vm3 = vcmask 1043456  }
  0xf2   :  { %2762 = vmatpush3.bf16.msra.mxu0 %v3059_v28  ;;  %2783 = vmatprep.mubr.msk.bf16.mxu1 %vm3507_vm1, %v3506_v62  ;;  %s3509_s29 = smov 88   ;;  %s3510_s16 = smov 120   ;;  %vm2194_vm4 = vcmask 130048   ;;  %vm2199_vm5 = vcmask 195584  }
  0xf3   :  { %2763 = vmatprep.subr.bf16.mxu0 %v3060_v29  ;;  %s3512_s17 = smov 80   ;;  %s3513_s0 = smov 112  }
  0xf4   :  { %219 = vadd.xlane.f32.xlu0 %v218_v6  ;;  %225 = vadd.xlane.f32.xlu1 %v224_v7  ;;  %s3514_s15 = smov 48   ;;  %s3515_s18 = smov 72  }
  0xf5   :  { %s3516_s20 = smov 104   ;;  %s3517_s7 = smov 40  }
  0xf6   :  { %2764 = vmatpush3.bf16.msra.mxu0 %v3060_v29  ;;  %s3518_s4 = smov 16   ;;  %s3519_s27 = smov 24  }
  0xf7   :  { %2769 = vmatprep.subr.bf16.mxu0 %v3506_v62  ;;  %s3520_s21 = smov [#allocation23]  }
  0xf8   :  { %s2595_s8 = sshll.u32 %s3520_s21, 4  ;;  %s2596_s8 = int_to_ptr.vmem [resolvable:$true] %s2595_s8 }
  0xf9   :  { %s3451_s14 = scalar_lea.vmem %s2596_s8, 512  ;;  %p3456_p7 = scmp.lt.s32.totalorder %s2596_s8, %s2596_s8 }
  0xfa   :  { %p3452_p6 = scmp.ne.s32.totalorder %s2596_s8, %s3451_s14  ;;  %p3457_p8 = scmp.lt.s32.totalorder %s3451_s14, %s3451_s14 }
  0xfc   :  { %p3458_p9 = por %p3457_p8, %p3456_p7 }
  0xfe   :  { %p3459_p10 = pnand %p3458_p9, %p3452_p6 }
 0x17d   :  { %v217_v8 = vpop.xlane.xlu0 %216  ;;  %v223_v9 = vpop.xlane.xlu1 %222 }
 0x17e   :  { %v228_v10 = vmul.f32 0.03125, %v217_v8  ;;  %v230_v11 = vmul.f32 0.03125, %v223_v9 }
 0x180   :  { %v232_v12 = vsub.f32 %v208_v0, %v228_v10  ;;  %v234_v13 = vsub.f32 %v210_v1, %v230_v11 }
 0x181   :  { %v220_v14 = vpop.xlane.xlu0 %219  ;;  %v226_v15 = vpop.xlane.xlu1 %225 }
 0x182   :  { %v229_v16 = vmul.f32 0.03125, %v220_v14  ;;  %v231_v17 = vmul.f32 0.03125, %v226_v15  ;;  %v236_v18 = vmul.f32 %v232_v12, %v232_v12  ;;  %v238_v19 = vmul.f32 %v234_v13, %v234_v13 }
 0x184   :  { %v233_v20 = vsub.f32 %v209_v2, %v229_v16  ;;  %v235_v21 = vsub.f32 %v211_v5, %v231_v17  ;;  %v240_v22 = vsel %vm214_vm0, %v236_v18, 0.0  ;;  %v246_v23 = vsel %vm214_vm0, %v238_v19, 0.0 }
 0x185   :  { %241 = vadd.xlane.f32.xlu0 %v240_v22 }
 0x186   :  { %v237_v24 = vmul.f32 %v233_v20, %v233_v20  ;;  %v239_v25 = vmul.f32 %v235_v21, %v235_v21 }
 0x188   :  { %v243_v26 = vsel %vm214_vm0, %v237_v24, 0.0  ;;  %v249_v27 = vsel %vm214_vm0, %v239_v25, 0.0 }
 0x189   :  { %247 = vadd.xlane.f32.xlu0 %v246_v23  ;;  %244 = vadd.xlane.f32.xlu1 %v243_v26 }
 0x18d   :  { %250 = vadd.xlane.f32.xlu1 %v249_v27 }
 0x212   :  { %v242_v30 = vpop.xlane.xlu0 %241 }
 0x213   :  { %v252_v31 = vmul.f32 0.03125, %v242_v30 }
 0x215   :  { %v256_v32 = vadd.f32 1e-05, %v252_v31 }
 0x216   :  { %v245_v33 = vpop.xlane.xlu1 %244  ;;  %v248_v34 = vpop.xlane.xlu0 %247 }
 0x217   :  { %3073 = vrsqrt.f32 %v256_v32  ;;  %v253_v35 = vmul.f32 0.03125, %v245_v33  ;;  %v254_v36 = vmul.f32 0.03125, %v248_v34 }
 0x219   :  { %v257_v37 = vadd.f32 1e-05, %v253_v35  ;;  %v258_v38 = vadd.f32 1e-05, %v254_v36 }
 0x21a   :  { %v251_v39 = vpop.xlane.xlu1 %250 }
 0x21b   :  { %3075 = vrsqrt.f32 %v257_v37  ;;  %v255_v40 = vmul.f32 0.03125, %v251_v39 }
 0x21c   :  { %3077 = vrsqrt.f32 %v258_v38 }
 0x21d   :  { %v259_v41 = vadd.f32 1e-05, %v255_v40 }
 0x21f   :  { %3079 = vrsqrt.f32 %v259_v41 }
 0x221   :  { %v3074_v42 = vpop.eup %3073 }
 0x222   :  { %v264_v43 = vmul.f32 %v3074_v42, %v232_v12 }
 0x224   :  { %v274_v48 = vmul.f32 %v2613_v44, %v264_v43 }
 0x225   :  { %v3076_v45 = vpop.eup %3075 }
 0x226   :  { %v3078_v46 = vpop.eup %3077  ;;  %v265_v47 = vmul.f32 %v3076_v45, %v233_v20  ;;  %v284_v54 = vadd.f32 %v2614_v50, %v274_v48 }
 0x227   :  { %v266_v49 = vmul.f32 %v3078_v46, %v234_v13 }
 0x228   :  { %v275_v51 = vmul.f32 %v2613_v44, %v265_v47 }
 0x229   :  { %v3080_v52 = vpop.eup %3079  ;;  %v276_v56 = vmul.f32 %v2613_v44, %v266_v49 }
 0x22a   :  { %v267_v53 = vmul.f32 %v3080_v52, %v235_v21  ;;  %v285_v55 = vadd.f32 %v2614_v50, %v275_v51 }
 0x22b   :  { %v286_v59 = vadd.f32 %v2614_v50, %v276_v56 }
 0x22c   :  { %v288_v57 = vpack.c.bf16 %v285_v55, %v284_v54  ;;  %v277_v58 = vmul.f32 %v2613_v44, %v267_v53 }
 0x22e   :  { %2765 = vmatprep.mubr.msk.bf16.mxu0 %vm214_vm0, %v288_v57  ;;  %v287_v60 = vadd.f32 %v2614_v50, %v277_v58 }
 0x230   :  { %v289_v61 = vpack.c.bf16 %v287_v60, %v286_v59 }
 0x232   :  { %2766 = vmatmul.mubr.msk.bf16.vlgmr.msra.gmra.mrb[0].mxu0 %vm214_vm0, %v289_v61 }
 0x233   :  { %2771 = vmatprep.mubr.msk.bf16.mxu0 %vm3507_vm1, %v3506_v62 }
 0x305   :  { %v2767_v0 = vpop.f32.mrb[0].mxu0 }
 0x306   :  { %v353_v1 = vpop.f32.mrb[1].mxu0  ;;  %v362_v7 = vadd.f32 %v2767_v0, %v2615_v63 }
 0x307   :  { %v354_v2 = vadd.f32 %v2615_v63, %v353_v1  ;;  %v2768_v3 = vpop.f32.mrb[2].mxu0 }
 0x308   :  { %v356_v4 = vpop.f32.mrb[3].mxu0  ;;  %v3798_v9 = vpack.c.bf16 %v362_v7, %v362_v7  ;;  %v365_v10 = vadd.f32 %v2768_v3, %v2615_v63  ;;  %v370_v19 = vmul.f32 0.35355338, %v362_v7 }
 0x309   :  { %v3792_v5 = vpack.c.bf16 %v354_v2, %v354_v2  ;;  %v357_v6 = vadd.f32 %v2615_v63, %v356_v4  ;;  %v368_v15 = vmul.f32 0.35355338, %v354_v2 }
 0x30a   :  { %v3801_v11 = vpack.c.bf16 %v365_v10, %v365_v10  ;;  %v3816_v22 = vpack.c.bf16 %v370_v19, %v370_v19  ;;  %v371_v26 = vmul.f32 0.35355338, %v365_v10 }
 0x30b   :  { %v3794_v8 = vpack.c.bf16 %v357_v6, %v357_v6  ;;  %381 = vrot.lane.b32.xlu0 %v3792_v5, %s3508_s12  ;;  %v3806_v17 = vpack.c.bf16 %v368_v15, %v368_v15  ;;  %v369_v21 = vmul.f32 0.35355338, %v357_v6 }
 0x30c   :  { %v3830_v27 = vpack.c.bf16 %v371_v26, %v371_v26 }
 0x30d   :  { %431 = vrot.lane.b32.xlu1 %v3794_v8, %s3508_s12  ;;  %v3818_v24 = vpack.c.bf16 %v369_v21, %v369_v21 }
 0x311   :  { %480 = vrot.lane.b32.xlu1 %v3798_v9, %s3508_s12 }
 0x315   :  { %529 = vrot.lane.b32.xlu1 %v3801_v11, %s3508_s12 }
 0x37d   :  { %v382_v12 = vpop.permute.xlu0 %381 }
 0x37e   :  { %v388_v13 = vsel %vm383_vm2, %v382_v12, 0 }
 0x37f   :  { %v432_v14 = vpop.permute.xlu1 %431  ;;  %2770 = vmatpush3.bf16.xpose.msra.mxu0 %v388_v13 }
 0x380   :  { %2775 = vmatprep.subr.bf16.mxu0 %v3506_v62  ;;  %v437_v20 = vsel %vm383_vm2, %v432_v14, 0 }
 0x383   :  { %v481_v16 = vpop.permute.xlu1 %480 }
 0x384   :  { %v486_v18 = vsel %vm383_vm2, %v481_v16, 0 }
 0x385   :  { %2782 = vmatpush3.bf16.xpose.msra.mxu1 %v486_v18 }
 0x386   :  { %2772 = vmatmul.mubr.msk.bf16.vlgmr.msra.gmra.mrb[4].mxu0 %vm383_vm2, %v3806_v17  ;;  %2793 = vmatprep.subr.bf16.mxu1 %v3506_v62 }
 0x387   :  { %2776 = vmatpush3.bf16.xpose.msra.mxu0 %v437_v20  ;;  %2777 = vmatprep.mubr.msk.bf16.mxu0 %vm3507_vm1, %v3506_v62  ;;  %v530_v23 = vpop.permute.xlu1 %529 }
 0x388   :  { %2787 = vmatprep.subr.bf16.mxu0 %v3506_v62  ;;  %v535_v25 = vsel %vm383_vm2, %v530_v23, 0 }
 0x38c   :  { %2784 = vmatmul.mubr.msk.bf16.vlgmr.msra.gmra.mrb[0].mxu1 %vm383_vm2, %v3816_v22 }
 0x38d   :  { %2795 = vmatprep.mubr.msk.bf16.mxu1 %vm3507_vm1, %v3506_v62 }
 0x38e   :  { %2778 = vmatmul.mubr.msk.bf16.vlgmr.msra.gmra.mrb[8].mxu0 %vm383_vm2, %v3818_v24 }
 0x38f   :  { %2788 = vmatpush3.bf16.xpose.msra.mxu0 %v535_v25  ;;  %2789 = vmatprep.mubr.msk.bf16.mxu0 %vm3507_vm1, %v3506_v62 }
 0x390   :  { %2799 = vmatprep.subr.bf16.mxu0 %v3506_v62 }
 0x396   :  { %2790 = vmatmul.mubr.msk.bf16.vlgmr.msra.gmra.mrb[12].mxu0 %vm383_vm2, %v3830_v27 }
 0x397   :  { %2801 = vmatprep.mubr.msk.bf16.mxu0 %vm3507_vm1, %v3506_v62 }
 0x459   :  { %v424_v28 = vpop.f32.mrb[4].mxu0 }
 0x45a   :  { %v2773_v29 = vpop.f32.mrb[5].mxu0  ;;  %v577_v30 = vsel %vm383_vm2, %v424_v28, -inf }
 0x45b   :  { %578 = vmax.xlane.f32.xlu0 %v577_v30  ;;  %v427_v31 = vpop.f32.mrb[6].mxu0 }
 0x45c   :  { %v2774_v32 = vpop.f32.mrb[7].mxu0 }
 0x45f   :  { %v522_v33 = vpop.f32.mrb[0].mxu1 }
 0x460   :  { %v2785_v34 = vpop.f32.mrb[1].mxu1  ;;  %v583_v35 = vsel %vm383_vm2, %v522_v33, -inf }
 0x461   :  { %v525_v36 = vpop.f32.mrb[2].mxu1  ;;  %584 = vmax.xlane.f32.xlu0 %v583_v35  ;;  %v473_v37 = vpop.f32.mrb[8].mxu0 }
 0x462   :  { %v2779_v38 = vpop.f32.mrb[9].mxu0  ;;  %v2786_v39 = vpop.f32.mrb[3].mxu1  ;;  %v580_v40 = vsel %vm383_vm2, %v473_v37, -inf }
 0x463   :  { %581 = vmax.xlane.f32.xlu1 %v580_v40  ;;  %v476_v41 = vpop.f32.mrb[10].mxu0 }
 0x464   :  { %v2780_v42 = vpop.f32.mrb[11].mxu0 }
 0x469   :  { %v571_v43 = vpop.f32.mrb[12].mxu0 }
 0x46a   :  { %v2791_v44 = vpop.f32.mrb[13].mxu0  ;;  %v586_v45 = vsel %vm383_vm2, %v571_v43, -inf }
 0x46b   :  { %587 = vmax.xlane.f32.xlu0 %v586_v45  ;;  %v574_v46 = vpop.f32.mrb[14].mxu0 }
 0x46c   :  { %v2792_v47 = vpop.f32.mrb[15].mxu0 }
 0x474   :  { %674 = vrot.lane.b32.xlu1 %v3794_v8, %s3491_s1 }
 0x478   :  { %722 = vrot.lane.b32.xlu1 %v3798_v9, %s3491_s1 }
 0x47c   :  { %770 = vrot.lane.b32.xlu1 %v3801_v11, %s3491_s1 }
 0x4e8   :  { %v579_v48 = vpop.xlane.xlu0 %578 }
 0x4e9   :  { %v589_v49 = vsub.f32 %v424_v28, %v579_v48 }
 0x4eb   :  { %v593_v52 = vmul.f32 1.442695, %v589_v49 }
 0x4ee   :  { %v585_v50 = vpop.xlane.xlu0 %584 }
 0x4ef   :  { %v591_v51 = vsub.f32 %v522_v33, %v585_v50 }
 0x4f0   :  { %v582_v53 = vpop.xlane.xlu1 %581 }
 0x4f1   :  { %v597_v54 = vmul.f32 1.442695, %v591_v51  ;;  %v590_v55 = vsub.f32 %v473_v37, %v582_v53 }
 0x4f3   :  { %3081 = vpow2.f32 %v597_v54  ;;  %v595_v56 = vmul.f32 1.442695, %v590_v55 }
 0x4f4   :  { %3083 = vpow2.f32 %v593_v52  ;;  %v675_v57 = vpop.permute.xlu1 %674 }
 0x4f5   :  { %3085 = vpow2.f32 %v595_v56  ;;  %v680_v58 = vsel %vm630_vm3, %v675_v57, 0 }
 0x4f6   :  { %2800 = vmatpush3.bf16.msra.mxu0 %v680_v58 }
 0x4f7   :  { %2811 = vmatprep.subr.bf16.mxu0 %v3506_v62 }
 0x4f8   :  { %v588_v2 = vpop.xlane.xlu0 %587  ;;  %v723_v10 = vpop.permute.xlu1 %722 }
 0x4f9   :  { %v592_v3 = vsub.f32 %v571_v43, %v588_v2  ;;  %v728_v30 = vsel %vm630_vm3, %v723_v10, 0 }
 0x4fb   :  { %v599_v4 = vmul.f32 1.442695, %v592_v3 }
 0x4fc   :  { %v771_v12 = vpop.permute.xlu1 %770 }
 0x4fd   :  { %v3082_v59 = vpop.eup %3081  ;;  %3087 = vpow2.f32 %v599_v4  ;;  %v776_v26 = vsel %vm630_vm3, %v771_v12, 0 }
 0x4fe   :  { %v3084_v60 = vpop.eup %3083  ;;  %v607_v61 = vsel %vm383_vm2, %v3082_v59, 0.0 }
 0x4ff   :  { %v3086_v63 = vpop.eup %3085  ;;  %608 = vadd.xlane.f32.xlu0 %v607_v61  ;;  %v601_v1 = vsel %vm383_vm2, %v3084_v60, 0.0 }
 0x500   :  { %v604_v0 = vsel %vm383_vm2, %v3086_v63, 0.0 }
 0x501   :  { %605 = vadd.xlane.f32.xlu1 %v604_v0 }
 0x503   :  { %602 = vadd.xlane.f32.xlu0 %v601_v1 }
 0x507   :  { %v3088_v6 = vpop.eup %3087 }
 0x508   :  { %v610_v7 = vsel %vm383_vm2, %v3088_v6, 0.0 }
 0x512   :  { %872 = vrot.lane.b32.xlu1 %v3794_v8, %s3509_s29 }
 0x519   :  { %625 = vrot.lane.b32.xlu0 %v3792_v5, %s3491_s1  ;;  %s3511_s1 = smov 56  }
 0x51d   :  { %821 = vrot.lane.b32.xlu0 %v3792_v5, %s3509_s29 }
 0x521   :  { %819 = vrot.lane.b32.xlu0 %v3806_v17, %s3510_s16 }
 0x525   :  { %923 = vrot.lane.b32.xlu0 %v3798_v9, %s3509_s29 }
 0x529   :  { %921 = vrot.lane.b32.xlu0 %v3816_v22, %s3510_s16 }
 0x536   :  { %611 = vadd.xlane.f32.xlu1 %v610_v7 }
 0x547   :  { %870 = vrot.lane.b32.xlu1 %v3818_v24, %s3510_s16 }
 0x54b   :  { %974 = vrot.lane.b32.xlu1 %v3801_v11, %s3509_s29 }
 0x54f   :  { %972 = vrot.lane.b32.xlu1 %v3830_v27, %s3510_s16 }
 0x58c   :  { %v609_v13 = vpop.xlane.xlu0 %608 }
 0x58e   :  { %v606_v14 = vpop.xlane.xlu1 %605 }
 0x58f   :  { %3089 = vrcp.f32 %v606_v14 }
 0x590   :  { %v603_v15 = vpop.xlane.xlu0 %602 }
 0x591   :  { %3091 = vrcp.f32 %v603_v15 }
 0x592   :  { %3093 = vrcp.f32 %v609_v13  ;;  %v873_v39 = vpop.permute.xlu1 %872 }
 0x593   :  { %v878_v45 = vsel %vm383_vm2, %v873_v39, 0 }
 0x594   :  { %v626_v16 = vpop.permute.xlu0 %625 }
 0x595   :  { %v632_v18 = vsel %vm630_vm3, %v626_v16, 0 }
 0x596   :  { %2794 = vmatpush3.bf16.msra.mxu1 %v632_v18 }
 0x597   :  { %2805 = vmatprep.subr.bf16.mxu1 %v3506_v62 }
 0x598   :  { %v822_v32 = vpop.permute.xlu0 %821 }
 0x599   :  { %v3090_v19 = vpop.eup %3089  ;;  %v827_v35 = vsel %vm383_vm2, %v822_v32, 0 }
 0x59a   :  { %v618_v20 = vmul.f32 %v3090_v19, %v3086_v63 }
 0x59b   :  { %v3092_v21 = vpop.eup %3091 }
 0x59c   :  { %v617_v23 = vmul.f32 %v3092_v21, %v3084_v60  ;;  %v622_v25 = vpack.c.bf16 %v618_v20, %v618_v20  ;;  %v3094_v29 = vpop.eup %3093  ;;  %v820_v34 = vpop.permute.xlu0 %819 }
 0x59d   :  { %v619_v31 = vmul.f32 %v3094_v29, %v3082_v59 }
 0x59e   :  { %2802 = vmatmul.mubr.msk.bf16.vlgmr.msra.gmra.mrb[16].mxu0 %vm383_vm2, %v622_v25  ;;  %v621_v28 = vpack.c.bf16 %v617_v23, %v617_v23 }
 0x59f   :  { %2812 = vmatpush3.bf16.msra.mxu0 %v776_v26  ;;  %2813 = vmatprep.mubr.msk.bf16.mxu0 %vm3507_vm1, %v3506_v62  ;;  %v623_v33 = vpack.c.bf16 %v619_v31, %v619_v31 }
 0x5a0   :  { %2796 = vmatmul.mubr.msk.bf16.vlgmr.msra.gmra.mrb[4].mxu1 %vm383_vm2, %v621_v28  ;;  %2823 = vmatprep.subr.bf16.mxu0 %v3506_v62  ;;  %v924_v36 = vpop.permute.xlu0 %923 }
 0x5a1   :  { %2806 = vmatpush3.bf16.msra.mxu1 %v728_v30  ;;  %2807 = vmatprep.mubr.msk.bf16.mxu1 %vm3507_vm1, %v3506_v62  ;;  %v929_v37 = vsel %vm383_vm2, %v924_v36, 0 }
 0x5a2   :  { %2817 = vmatprep.subr.bf16.mxu1 %v3506_v62 }
 0x5a4   :  { %v922_v38 = vpop.permute.xlu0 %921 }
 0x5a8   :  { %2808 = vmatmul.mubr.msk.bf16.vlgmr.msra.gmra.mrb[8].mxu1 %vm383_vm2, %v623_v33 }
 0x5a9   :  { %2819 = vmatprep.mubr.msk.bf16.mxu1 %vm3507_vm1, %v3506_v62 }
 0x5aa   :  { %2818 = vmatpush3.bf16.xpose.msra.mxu1 %v827_v35 }
 0x5ab   :  { %2829 = vmatprep.subr.bf16.mxu1 %v3506_v62 }
 0x5b1   :  { %2820 = vmatmul.mubr.msk.bf16.vlgmr.msra.gmra.mrb[12].mxu1 %vm383_vm2, %v820_v34 }
 0x5b2   :  { %2830 = vmatpush3.bf16.xpose.msra.mxu1 %v929_v37  ;;  %2831 = vmatprep.mubr.msk.bf16.mxu1 %vm3507_vm1, %v3506_v62 }
 0x5b3   :  { %2841 = vmatprep.subr.bf16.mxu1 %v3506_v62 }
 0x5b9   :  { %2832 = vmatmul.mubr.msk.bf16.vlgmr.msra.gmra.mrb[16].mxu1 %vm383_vm2, %v922_v38 }
 0x5ba   :  { %2843 = vmatprep.mubr.msk.bf16.mxu1 %vm3507_vm1, %v3506_v62 }
 0x5c3   :  { %v612_v40 = vpop.xlane.xlu1 %611 }
 0x5c4   :  { %3095 = vrcp.f32 %v612_v40 }
 0x5c7   :  { %v871_v44 = vpop.permute.xlu1 %870 }
 0x5cb   :  { %v975_v46 = vpop.permute.xlu1 %974 }
 0x5cc   :  { %v980_v47 = vsel %vm383_vm2, %v975_v46, 0 }
 0x5ce   :  { %v3096_v41 = vpop.eup %3095 }
 0x5cf   :  { %v620_v42 = vmul.f32 %v3096_v41, %v3088_v6  ;;  %v973_v48 = vpop.permute.xlu1 %972 }
 0x5d1   :  { %v624_v43 = vpack.c.bf16 %v620_v42, %v620_v42 }
 0x5d3   :  { %2814 = vmatmul.mubr.msk.bf16.vlgmr.msra.gmra.mrb[20].mxu0 %vm383_vm2, %v624_v43 }
 0x5d4   :  { %2824 = vmatpush3.bf16.xpose.msra.mxu0 %v878_v45  ;;  %2825 = vmatprep.mubr.msk.bf16.mxu0 %vm3507_vm1, %v3506_v62 }
 0x5d5   :  { %2835 = vmatprep.subr.bf16.mxu0 %v3506_v62 }
 0x5db   :  { %2826 = vmatmul.mubr.msk.bf16.vlgmr.msra.gmra.mrb[24].mxu0 %vm383_vm2, %v871_v44 }
 0x5dc   :  { %2836 = vmatpush3.bf16.xpose.msra.mxu0 %v980_v47  ;;  %2837 = vmatprep.mubr.msk.bf16.mxu0 %vm3507_vm1, %v3506_v62 }
 0x5dd   :  { %2847 = vmatprep.subr.bf16.mxu0 %v3506_v62 }
 0x5e3   :  { %2838 = vmatmul.mubr.msk.bf16.vlgmr.msra.gmra.mrb[28].mxu0 %vm383_vm2, %v973_v48 }
 0x5e4   :  { %2849 = vmatprep.mubr.msk.bf16.mxu0 %vm3507_vm1, %v3506_v62 }
 0x671   :  { %v3900_v49 = vpop.f32.mrb[16].mxu0 }
 0x672   :  { %v2803_v50 = vpop.f32.mrb[17].mxu0 }
 0x673   :  { %v3902_v51 = vpop.f32.mrb[4].mxu1  ;;  %v719_v52 = vpop.f32.mrb[18].mxu0 }
 0x674   :  { %v2797_v53 = vpop.f32.mrb[5].mxu1  ;;  %v2804_v54 = vpop.f32.mrb[19].mxu0 }
 0x675   :  { %v671_v55 = vpop.f32.mrb[6].mxu1 }
 0x676   :  { %v2798_v56 = vpop.f32.mrb[7].mxu1 }
 0x67b   :  { %v3904_v57 = vpop.f32.mrb[8].mxu1 }
 0x67c   :  { %v2809_v58 = vpop.f32.mrb[9].mxu1 }
 0x67d   :  { %v767_v59 = vpop.f32.mrb[10].mxu1 }
 0x67e   :  { %v2810_v60 = vpop.f32.mrb[11].mxu1 }
 0x684   :  { %v863_v61 = vpop.f32.mrb[12].mxu1 }
 0x685   :  { %v2821_v63 = vpop.f32.mrb[13].mxu1  ;;  %v1022_v0 = vsel %vm383_vm2, %v863_v61, -inf }
 0x686   :  { %1023 = vmax.xlane.f32.xlu0 %v1022_v0  ;;  %v866_v1 = vpop.f32.mrb[14].mxu1 }
 0x687   :  { %v2822_v2 = vpop.f32.mrb[15].mxu1 }
 0x68c   :  { %v965_v3 = vpop.f32.mrb[16].mxu1 }
 0x68d   :  { %v2833_v4 = vpop.f32.mrb[17].mxu1  ;;  %v1028_v6 = vsel %vm383_vm2, %v965_v3, -inf }
 0x68e   :  { %1029 = vmax.xlane.f32.xlu0 %v1028_v6  ;;  %v968_v7 = vpop.f32.mrb[18].mxu1 }
 0x68f   :  { %v2834_v10 = vpop.f32.mrb[19].mxu1 }
 0x6a6   :  { %v3908_v12 = vpop.f32.mrb[20].mxu0 }
 0x6a7   :  { %v2815_v13 = vpop.f32.mrb[21].mxu0 }
 0x6a8   :  { %v815_v14 = vpop.f32.mrb[22].mxu0 }
 0x6a9   :  { %v2816_v15 = vpop.f32.mrb[23].mxu0 }
 0x6ae   :  { %v914_v16 = vpop.f32.mrb[24].mxu0 }
 0x6af   :  { %v2827_v18 = vpop.f32.mrb[25].mxu0  ;;  %v1025_v19 = vsel %vm383_vm2, %v914_v16, -inf }
 0x6b0   :  { %1026 = vmax.xlane.f32.xlu1 %v1025_v19  ;;  %v917_v20 = vpop.f32.mrb[26].mxu0 }
 0x6b1   :  { %v2828_v21 = vpop.f32.mrb[27].mxu0 }
 0x6b6   :  { %v1016_v23 = vpop.f32.mrb[28].mxu0 }
 0x6b7   :  { %v2839_v25 = vpop.f32.mrb[29].mxu0  ;;  %v1031_v26 = vsel %vm383_vm2, %v1016_v23, -inf }
 0x6b8   :  { %1032 = vmax.xlane.f32.xlu0 %v1031_v26  ;;  %v1019_v28 = vpop.f32.mrb[30].mxu0 }
 0x6b9   :  { %v2840_v29 = vpop.f32.mrb[31].mxu0 }
 0x6c1   :  { %1118 = vrot.lane.b32.xlu1 %v3794_v8, %s3511_s1 }
 0x6c5   :  { %1166 = vrot.lane.b32.xlu1 %v3798_v9, %s3511_s1 }
 0x6c9   :  { %1214 = vrot.lane.b32.xlu1 %v3801_v11, %s3511_s1 }
 0x713   :  { %v1024_v30 = vpop.xlane.xlu0 %1023 }
 0x714   :  { %v1034_v31 = vsub.f32 %v863_v61, %v1024_v30 }
 0x716   :  { %v1038_v32 = vmul.f32 1.442695, %v1034_v31 }
 0x718   :  { %3097 = vpow2.f32 %v1038_v32 }
 0x71b   :  { %v1030_v37 = vpop.xlane.xlu0 %1029 }
 0x71c   :  { %v1036_v41 = vsub.f32 %v965_v3, %v1030_v37 }
 0x71e   :  { %v1042_v42 = vmul.f32 1.442695, %v1036_v41 }
 0x722   :  { %v3098_v33 = vpop.eup %3097 }
 0x723   :  { %v1046_v34 = vsel %vm383_vm2, %v3098_v33, 0.0 }
 0x724   :  { %1047 = vadd.xlane.f32.xlu0 %v1046_v34 }
 0x73a   :  { %1070 = vrot.lane.b32.xlu0 %v3792_v5, %s3511_s1 }
 0x73d   :  { %v1027_v35 = vpop.xlane.xlu1 %1026 }
 0x73e   :  { %v1035_v36 = vsub.f32 %v914_v16, %v1027_v35 }
 0x740   :  { %v1040_v38 = vmul.f32 1.442695, %v1035_v36 }
 0x741   :  { %v1119_v39 = vpop.permute.xlu1 %1118 }
 0x742   :  { %3099 = vpow2.f32 %v1040_v38  ;;  %v1124_v40 = vsel %vm630_vm3, %v1119_v39, 0 }
 0x743   :  { %2848 = vmatpush3.bf16.msra.mxu0 %v1124_v40  ;;  %3101 = vpow2.f32 %v1042_v42 }
 0x744   :  { %2859 = vmatprep.subr.bf16.mxu0 %v3506_v62 }
 0x745   :  { %v1033_v47 = vpop.xlane.xlu0 %1032  ;;  %v1167_v60 = vpop.permute.xlu1 %1166 }
 0x746   :  { %v1037_v48 = vsub.f32 %v1016_v23, %v1033_v47  ;;  %v1172_v63 = vsel %vm630_vm3, %v1167_v60, 0 }
 0x748   :  { %v1044_v50 = vmul.f32 1.442695, %v1037_v48 }
 0x749   :  { %v1215_v0 = vpop.permute.xlu1 %1214 }
 0x74a   :  { %3103 = vpow2.f32 %v1044_v50  ;;  %v1220_v7 = vsel %vm630_vm3, %v1215_v0, 0 }
 0x74c   :  { %v3100_v43 = vpop.eup %3099 }
 0x74d   :  { %v1049_v44 = vsel %vm383_vm2, %v3100_v43, 0.0  ;;  %v3102_v45 = vpop.eup %3101 }
 0x74e   :  { %1050 = vadd.xlane.f32.xlu1 %v1049_v44  ;;  %v1052_v46 = vsel %vm383_vm2, %v3102_v45, 0.0 }
 0x754   :  { %v3104_v52 = vpop.eup %3103 }
 0x755   :  { %v1055_v53 = vsel %vm383_vm2, %v3104_v52, 0.0 }
 0x759   :  { %1053 = vadd.xlane.f32.xlu0 %v1052_v46 }
 0x75f   :  { %1314 = vrot.lane.b32.xlu1 %v3794_v8, %s3512_s17 }
 0x76f   :  { %1264 = vrot.lane.b32.xlu0 %v3792_v5, %s3512_s17 }
 0x773   :  { %1262 = vrot.lane.b32.xlu0 %v3806_v17, %s3513_s0 }
 0x777   :  { %1364 = vrot.lane.b32.xlu0 %v3798_v9, %s3512_s17 }
 0x77b   :  { %1362 = vrot.lane.b32.xlu0 %v3816_v22, %s3513_s0 }
 0x783   :  { %1056 = vadd.xlane.f32.xlu1 %v1055_v53 }
 0x794   :  { %1312 = vrot.lane.b32.xlu1 %v3818_v24, %s3513_s0 }
 0x798   :  { %1414 = vrot.lane.b32.xlu1 %v3801_v11, %s3512_s17 }
 0x79c   :  { %1412 = vrot.lane.b32.xlu1 %v3830_v27, %s3513_s0 }
 0x7b1   :  { %v1048_v54 = vpop.xlane.xlu0 %1047 }
 0x7b2   :  { %3105 = vrcp.f32 %v1048_v54 }
 0x7b5   :  { %v1071_v55 = vpop.permute.xlu0 %1070 }
 0x7b6   :  { %v1076_v56 = vsel %vm630_vm3, %v1071_v55, 0 }
 0x7b7   :  { %2842 = vmatpush3.bf16.msra.mxu1 %v1076_v56 }
 0x7b8   :  { %2853 = vmatprep.subr.bf16.mxu1 %v3506_v62 }
 0x7bc   :  { %v3106_v58 = vpop.eup %3105 }
 0x7bd   :  { %v1062_v59 = vmul.f32 %v3106_v58, %v3098_v33 }
 0x7bf   :  { %v1066_v61 = vpack.c.bf16 %v1062_v59, %v1062_v59 }
 0x7c1   :  { %2844 = vmatmul.mubr.msk.bf16.vlgmr.msra.gmra.mrb[20].mxu1 %vm383_vm2, %v1066_v61 }
 0x7c2   :  { %2854 = vmatpush3.bf16.msra.mxu1 %v1172_v63  ;;  %2855 = vmatprep.mubr.msk.bf16.mxu1 %vm3507_vm1, %v3506_v62 }
 0x7c3   :  { %2865 = vmatprep.subr.bf16.mxu1 %v3506_v62 }
 0x7db   :  { %v1051_v1 = vpop.xlane.xlu1 %1050 }
 0x7dc   :  { %3107 = vrcp.f32 %v1051_v1 }
 0x7df   :  { %v1315_v23 = vpop.permute.xlu1 %1314 }
 0x7e0   :  { %v1320_v31 = vsel %vm383_vm2, %v1315_v23, 0 }
 0x7e6   :  { %v3108_v2 = vpop.eup %3107  ;;  %v1054_v3 = vpop.xlane.xlu0 %1053 }
 0x7e7   :  { %v1063_v4 = vmul.f32 %v3108_v2, %v3100_v43  ;;  %3109 = vrcp.f32 %v1054_v3 }
 0x7e9   :  { %v1067_v6 = vpack.c.bf16 %v1063_v4, %v1063_v4 }
 0x7ea   :  { %v1265_v10 = vpop.permute.xlu0 %1264 }
 0x7eb   :  { %2850 = vmatmul.mubr.msk.bf16.vlgmr.msra.gmra.mrb[32].mxu0 %vm383_vm2, %v1067_v6  ;;  %v1270_v18 = vsel %vm383_vm2, %v1265_v10, 0 }
 0x7ec   :  { %2860 = vmatpush3.bf16.msra.mxu0 %v1220_v7  ;;  %2861 = vmatprep.mubr.msk.bf16.mxu0 %vm3507_vm1, %v3506_v62 }
 0x7ed   :  { %2871 = vmatprep.subr.bf16.mxu0 %v3506_v62 }
 0x7ee   :  { %v1263_v16 = vpop.permute.xlu0 %1262 }
 0x7f1   :  { %v3110_v13 = vpop.eup %3109 }
 0x7f2   :  { %v1064_v14 = vmul.f32 %v3110_v13, %v3102_v45  ;;  %v1365_v19 = vpop.permute.xlu0 %1364 }
 0x7f3   :  { %v1370_v20 = vsel %vm383_vm2, %v1365_v19, 0 }
 0x7f4   :  { %v1068_v15 = vpack.c.bf16 %v1064_v14, %v1064_v14 }
 0x7f6   :  { %2856 = vmatmul.mubr.msk.bf16.vlgmr.msra.gmra.mrb[24].mxu1 %vm383_vm2, %v1068_v15  ;;  %v1363_v21 = vpop.permute.xlu0 %1362 }
 0x7f7   :  { %2866 = vmatpush3.bf16.xpose.msra.mxu1 %v1270_v18  ;;  %2867 = vmatprep.mubr.msk.bf16.mxu1 %vm3507_vm1, %v3506_v62 }
 0x7f8   :  { %2877 = vmatprep.subr.bf16.mxu1 %v3506_v62 }
 0x7fe   :  { %2868 = vmatmul.mubr.msk.bf16.vlgmr.msra.gmra.mrb[28].mxu1 %vm383_vm2, %v1263_v16 }
 0x7ff   :  { %2878 = vmatpush3.bf16.xpose.msra.mxu1 %v1370_v20  ;;  %2879 = vmatprep.mubr.msk.bf16.mxu1 %vm3507_vm1, %v3506_v62 }
 0x800   :  { %2889 = vmatprep.subr.bf16.mxu1 %v3506_v62 }
 0x806   :  { %2880 = vmatmul.mubr.msk.bf16.vlgmr.msra.gmra.mrb[32].mxu1 %vm383_vm2, %v1363_v21 }
 0x807   :  { %2891 = vmatprep.mubr.msk.bf16.mxu1 %vm3507_vm1, %v3506_v62 }
 0x810   :  { %v1057_v25 = vpop.xlane.xlu1 %1056 }
 0x811   :  { %3111 = vrcp.f32 %v1057_v25 }
 0x814   :  { %v1313_v30 = vpop.permute.xlu1 %1312 }
 0x818   :  { %v1415_v32 = vpop.permute.xlu1 %1414 }
 0x819   :  { %v1420_v33 = vsel %vm383_vm2, %v1415_v32, 0 }
 0x81b   :  { %v3112_v26 = vpop.eup %3111 }
 0x81c   :  { %v1065_v28 = vmul.f32 %v3112_v26, %v3104_v52  ;;  %v1413_v34 = vpop.permute.xlu1 %1412 }
 0x81e   :  { %v1069_v29 = vpack.c.bf16 %v1065_v28, %v1065_v28 }
 0x820   :  { %2862 = vmatmul.mubr.msk.bf16.vlgmr.msra.gmra.mrb[36].mxu0 %vm383_vm2, %v1069_v29 }
 0x821   :  { %2872 = vmatpush3.bf16.xpose.msra.mxu0 %v1320_v31  ;;  %2873 = vmatprep.mubr.msk.bf16.mxu0 %vm3507_vm1, %v3506_v62 }
 0x822   :  { %2883 = vmatprep.subr.bf16.mxu0 %v3506_v62 }
 0x828   :  { %2874 = vmatmul.mubr.msk.bf16.vlgmr.msra.gmra.mrb[40].mxu0 %vm383_vm2, %v1313_v30 }
 0x829   :  { %2884 = vmatpush3.bf16.xpose.msra.mxu0 %v1420_v33  ;;  %2885 = vmatprep.mubr.msk.bf16.mxu0 %vm3507_vm1, %v3506_v62 }
 0x82a   :  { %2895 = vmatprep.subr.bf16.mxu0 %v3506_v62 }
 0x830   :  { %2886 = vmatmul.mubr.msk.bf16.vlgmr.msra.gmra.mrb[44].mxu0 %vm383_vm2, %v1413_v34 }
 0x831   :  { %2897 = vmatprep.mubr.msk.bf16.mxu0 %vm3507_vm1, %v3506_v62 }
 0x894   :  { %v3968_v35 = vpop.f32.mrb[20].mxu1 }
 0x895   :  { %v2845_v36 = vpop.f32.mrb[21].mxu1 }
 0x896   :  { %v1115_v37 = vpop.f32.mrb[22].mxu1 }
 0x897   :  { %v2846_v38 = vpop.f32.mrb[23].mxu1 }
 0x8be   :  { %v3970_v39 = vpop.f32.mrb[32].mxu0 }
 0x8bf   :  { %v3029_v40 = vpack.i.bf16 %v3970_v39, %v3968_v35  ;;  %v2851_v41 = vpop.f32.mrb[33].mxu0 }
 0x8c0   :  { %v1163_v42 = vpop.f32.mrb[34].mxu0 }
 0x8c1   :  { %v2852_v43 = vpop.f32.mrb[35].mxu0 }
 0x8c9   :  { %v3974_v44 = vpop.f32.mrb[24].mxu1 }
 0x8ca   :  { %v2857_v45 = vpop.f32.mrb[25].mxu1 }
 0x8cb   :  { %v1211_v46 = vpop.f32.mrb[26].mxu1 }
 0x8cc   :  { %v2858_v47 = vpop.f32.mrb[27].mxu1 }
 0x8d1   :  { %v1306_v48 = vpop.f32.mrb[28].mxu1 }
 0x8d2   :  { %v2869_v50 = vpop.f32.mrb[29].mxu1  ;;  %v1462_v52 = vsel %vm383_vm2, %v1306_v48, -inf }
 0x8d3   :  { %1463 = vmax.xlane.f32.xlu0 %v1462_v52  ;;  %v1309_v53 = vpop.f32.mrb[30].mxu1 }
 0x8d4   :  { %v2870_v54 = vpop.f32.mrb[31].mxu1 }
 0x8d9   :  { %v1406_v55 = vpop.f32.mrb[32].mxu1 }
 0x8da   :  { %v2881_v56 = vpop.f32.mrb[33].mxu1  ;;  %v1468_v58 = vsel %vm383_vm2, %v1406_v55, -inf }
 0x8db   :  { %1469 = vmax.xlane.f32.xlu0 %v1468_v58  ;;  %v1409_v59 = vpop.f32.mrb[34].mxu1 }
 0x8dc   :  { %v2882_v60 = vpop.f32.mrb[35].mxu1 }
 0x8f3   :  { %v3978_v61 = vpop.f32.mrb[36].mxu0 }
 0x8f4   :  { %v3034_v63 = vpack.i.bf16 %v3978_v61, %v3974_v44  ;;  %v2863_v0 = vpop.f32.mrb[37].mxu0 }
 0x8f5   :  { %v1259_v1 = vpop.f32.mrb[38].mxu0 }
 0x8f6   :  { %v2864_v2 = vpop.f32.mrb[39].mxu0 }
 0x8fb   :  { %v1356_v3 = vpop.f32.mrb[40].mxu0 }
 0x8fc   :  { %v2875_v4 = vpop.f32.mrb[41].mxu0  ;;  %v1465_v6 = vsel %vm383_vm2, %v1356_v3, -inf }
 0x8fd   :  { %1466 = vmax.xlane.f32.xlu1 %v1465_v6  ;;  %v1359_v7 = vpop.f32.mrb[42].mxu0 }
 0x8fe   :  { %v2876_v10 = vpop.f32.mrb[43].mxu0 }
 0x903   :  { %v1456_v13 = vpop.f32.mrb[44].mxu0 }
 0x904   :  { %v2887_v14 = vpop.f32.mrb[45].mxu0  ;;  %v1471_v15 = vsel %vm383_vm2, %v1456_v13, -inf }
 0x905   :  { %1472 = vmax.xlane.f32.xlu0 %v1471_v15  ;;  %v1459_v16 = vpop.f32.mrb[46].mxu0 }
 0x906   :  { %v2888_v18 = vpop.f32.mrb[47].mxu0 }
 0x90e   :  { %1558 = vrot.lane.b32.xlu1 %v3794_v8, %s3514_s15 }
 0x912   :  { %1606 = vrot.lane.b32.xlu1 %v3798_v9, %s3514_s15 }
 0x916   :  { %1654 = vrot.lane.b32.xlu1 %v3801_v11, %s3514_s15 }
 0x960   :  { %v1464_v19 = vpop.xlane.xlu0 %1463 }
 0x961   :  { %v1474_v20 = vsub.f32 %v1306_v48, %v1464_v19 }
 0x963   :  { %v1478_v21 = vmul.f32 1.442695, %v1474_v20 }
 0x965   :  { %3113 = vpow2.f32 %v1478_v21 }
 0x968   :  { %v1470_v29 = vpop.xlane.xlu0 %1469 }
 0x969   :  { %v1476_v33 = vsub.f32 %v1406_v55, %v1470_v29 }
 0x96b   :  { %v1482_v34 = vmul.f32 1.442695, %v1476_v33 }
 0x96f   :  { %v3114_v23 = vpop.eup %3113 }
 0x970   :  { %v1486_v25 = vsel %vm383_vm2, %v3114_v23, 0.0 }
 0x971   :  { %1487 = vadd.xlane.f32.xlu0 %v1486_v25 }
 0x987   :  { %1510 = vrot.lane.b32.xlu0 %v3792_v5, %s3514_s15 }
 0x98a   :  { %v1467_v26 = vpop.xlane.xlu1 %1466 }
 0x98b   :  { %v1475_v28 = vsub.f32 %v1356_v3, %v1467_v26 }
 0x98d   :  { %v1480_v30 = vmul.f32 1.442695, %v1475_v28 }
 0x98e   :  { %v1559_v31 = vpop.permute.xlu1 %1558 }
 0x98f   :  { %3115 = vpow2.f32 %v1480_v30  ;;  %v1564_v32 = vsel %vm630_vm3, %v1559_v31, 0 }
 0x990   :  { %2896 = vmatpush3.bf16.msra.mxu0 %v1564_v32  ;;  %3117 = vpow2.f32 %v1482_v34 }
 0x991   :  { %2907 = vmatprep.subr.bf16.mxu0 %v3506_v62 }
 0x992   :  { %v1473_v42 = vpop.xlane.xlu0 %1472  ;;  %v1607_v53 = vpop.permute.xlu1 %1606 }
 0x993   :  { %v1477_v43 = vsub.f32 %v1456_v13, %v1473_v42  ;;  %v1612_v55 = vsel %vm630_vm3, %v1607_v53, 0 }
 0x995   :  { %v1484_v45 = vmul.f32 1.442695, %v1477_v43 }
 0x997   :  { %3119 = vpow2.f32 %v1484_v45 }
 0x999   :  { %v3116_v36 = vpop.eup %3115 }
 0x99a   :  { %v1489_v37 = vsel %vm383_vm2, %v3116_v36, 0.0  ;;  %v3118_v38 = vpop.eup %3117 }
 0x99b   :  { %1490 = vadd.xlane.f32.xlu1 %v1489_v37  ;;  %v1492_v41 = vsel %vm383_vm2, %v3118_v38, 0.0 }
 0x9a1   :  { %v3120_v46 = vpop.eup %3119 }
 0x9a2   :  { %v1495_v47 = vsel %vm383_vm2, %v3120_v46, 0.0 }
 0x9a6   :  { %1493 = vadd.xlane.f32.xlu0 %v1492_v41 }
 0x9ac   :  { %1754 = vrot.lane.b32.xlu1 %v3794_v8, %s3515_s18 }
 0x9bc   :  { %1704 = vrot.lane.b32.xlu0 %v3792_v5, %s3515_s18 }
 0x9c0   :  { %1702 = vrot.lane.b32.xlu0 %v3806_v17, %s3516_s20 }
 0x9c4   :  { %1804 = vrot.lane.b32.xlu0 %v3798_v9, %s3515_s18 }
 0x9c8   :  { %1802 = vrot.lane.b32.xlu0 %v3816_v22, %s3516_s20 }
 0x9d0   :  { %1496 = vadd.xlane.f32.xlu1 %v1495_v47 }
 0x9e1   :  { %1752 = vrot.lane.b32.xlu1 %v3818_v24, %s3516_s20  ;;  %v1655_v24 = vpop.permute.xlu1 %1654 }
 0x9e2   :  { %v1660_v0 = vsel %vm630_vm3, %v1655_v24, 0 }
 0x9e5   :  { %1854 = vrot.lane.b32.xlu1 %v3801_v11, %s3515_s18 }
 0x9e9   :  { %1852 = vrot.lane.b32.xlu1 %v3830_v27, %s3516_s20 }
 0x9fe   :  { %v1488_v48 = vpop.xlane.xlu0 %1487 }
 0x9ff   :  { %3121 = vrcp.f32 %v1488_v48 }
 0xa02   :  { %v1511_v50 = vpop.permute.xlu0 %1510 }
 0xa03   :  { %v1516_v17 = vsel %vm630_vm3, %v1511_v50, 0 }
 0xa04   :  { %2890 = vmatpush3.bf16.msra.mxu1 %v1516_v17 }
 0xa05   :  { %2901 = vmatprep.subr.bf16.mxu1 %v3506_v62 }
 0xa09   :  { %v3122_v52 = vpop.eup %3121 }
 0xa0a   :  { %v1502_v22 = vmul.f32 %v3122_v52, %v3114_v23 }
 0xa0c   :  { %v1506_v54 = vpack.c.bf16 %v1502_v22, %v1502_v22 }
 0xa0e   :  { %2892 = vmatmul.mubr.msk.bf16.vlgmr.msra.gmra.mrb[36].mxu1 %vm383_vm2, %v1506_v54 }
 0xa0f   :  { %2902 = vmatpush3.bf16.msra.mxu1 %v1612_v55  ;;  %2903 = vmatprep.mubr.msk.bf16.mxu1 %vm3507_vm1, %v3506_v62 }
 0xa10   :  { %2913 = vmatprep.subr.bf16.mxu1 %v3506_v62 }
 0xa28   :  { %v1491_v27 = vpop.xlane.xlu1 %1490 }
 0xa29   :  { %3123 = vrcp.f32 %v1491_v27 }
 0xa2c   :  { %v1755_v15 = vpop.permute.xlu1 %1754 }
 0xa2d   :  { %v1760_v23 = vsel %vm383_vm2, %v1755_v15, 0 }
 0xa33   :  { %v3124_v56 = vpop.eup %3123  ;;  %v1494_v58 = vpop.xlane.xlu0 %1493 }
 0xa34   :  { %v1503_v59 = vmul.f32 %v3124_v56, %v3116_v36  ;;  %3125 = vrcp.f32 %v1494_v58 }
 0xa36   :  { %v1507_v60 = vpack.c.bf16 %v1503_v59, %v1503_v59 }
 0xa37   :  { %v1705_v1 = vpop.permute.xlu0 %1704 }
 0xa38   :  { %2898 = vmatmul.mubr.msk.bf16.vlgmr.msra.gmra.mrb[48].mxu0 %vm383_vm2, %v1507_v60  ;;  %v1710_v7 = vsel %vm383_vm2, %v1705_v1, 0 }
 0xa39   :  { %2908 = vmatpush3.bf16.msra.mxu0 %v1660_v0  ;;  %2909 = vmatprep.mubr.msk.bf16.mxu0 %vm3507_vm1, %v3506_v62 }
 0xa3a   :  { %2919 = vmatprep.subr.bf16.mxu0 %v3506_v62 }
 0xa3b   :  { %v1703_v6 = vpop.permute.xlu0 %1702 }
 0xa3e   :  { %v3126_v2 = vpop.eup %3125 }
 0xa3f   :  { %v1504_v3 = vmul.f32 %v3126_v2, %v3118_v38  ;;  %v1805_v10 = vpop.permute.xlu0 %1804 }
 0xa40   :  { %v1810_v13 = vsel %vm383_vm2, %v1805_v10, 0 }
 0xa41   :  { %v1508_v4 = vpack.c.bf16 %v1504_v3, %v1504_v3 }
 0xa43   :  { %2904 = vmatmul.mubr.msk.bf16.vlgmr.msra.gmra.mrb[40].mxu1 %vm383_vm2, %v1508_v4  ;;  %v1803_v14 = vpop.permute.xlu0 %1802 }
 0xa44   :  { %2914 = vmatpush3.bf16.xpose.msra.mxu1 %v1710_v7  ;;  %2915 = vmatprep.mubr.msk.bf16.mxu1 %vm3507_vm1, %v3506_v62 }
 0xa45   :  { %2925 = vmatprep.subr.bf16.mxu1 %v3506_v62 }
 0xa4b   :  { %2916 = vmatmul.mubr.msk.bf16.vlgmr.msra.gmra.mrb[44].mxu1 %vm383_vm2, %v1703_v6 }
 0xa4c   :  { %2926 = vmatpush3.bf16.xpose.msra.mxu1 %v1810_v13  ;;  %2927 = vmatprep.mubr.msk.bf16.mxu1 %vm3507_vm1, %v3506_v62 }
 0xa4d   :  { %2937 = vmatprep.subr.bf16.mxu1 %v3506_v62 }
 0xa53   :  { %2928 = vmatmul.mubr.msk.bf16.vlgmr.msra.gmra.mrb[48].mxu1 %vm383_vm2, %v1803_v14 }
 0xa54   :  { %2939 = vmatprep.mubr.msk.bf16.mxu1 %vm3507_vm1, %v3506_v62 }
 0xa5d   :  { %v1497_v16 = vpop.xlane.xlu1 %1496 }
 0xa5e   :  { %3127 = vrcp.f32 %v1497_v16 }
 0xa61   :  { %v1753_v21 = vpop.permute.xlu1 %1752 }
 0xa65   :  { %v1855_v25 = vpop.permute.xlu1 %1854 }
 0xa66   :  { %v1860_v26 = vsel %vm383_vm2, %v1855_v25, 0 }
 0xa68   :  { %v3128_v18 = vpop.eup %3127 }
 0xa69   :  { %v1505_v19 = vmul.f32 %v3128_v18, %v3120_v46  ;;  %v1853_v28 = vpop.permute.xlu1 %1852 }
 0xa6b   :  { %v1509_v20 = vpack.c.bf16 %v1505_v19, %v1505_v19 }
 0xa6d   :  { %2910 = vmatmul.mubr.msk.bf16.vlgmr.msra.gmra.mrb[52].mxu0 %vm383_vm2, %v1509_v20 }
 0xa6e   :  { %2920 = vmatpush3.bf16.xpose.msra.mxu0 %v1760_v23  ;;  %2921 = vmatprep.mubr.msk.bf16.mxu0 %vm3507_vm1, %v3506_v62 }
 0xa6f   :  { %2931 = vmatprep.subr.bf16.mxu0 %v3506_v62 }
 0xa75   :  { %2922 = vmatmul.mubr.msk.bf16.vlgmr.msra.gmra.mrb[56].mxu0 %vm383_vm2, %v1753_v21 }
 0xa76   :  { %2932 = vmatpush3.bf16.xpose.msra.mxu0 %v1860_v26  ;;  %2933 = vmatprep.mubr.msk.bf16.mxu0 %vm3507_vm1, %v3506_v62 }
 0xa77   :  { %2943 = vmatprep.subr.bf16.mxu0 %v3506_v62 }
 0xa7d   :  { %2934 = vmatmul.mubr.msk.bf16.vlgmr.msra.gmra.mrb[60].mxu0 %vm383_vm2, %v1853_v28 }
 0xa7e   :  { %2945 = vmatprep.mubr.msk.bf16.mxu0 %vm3507_vm1, %v3506_v62 }
 0xae1   :  { %v4040_v29 = vpop.f32.mrb[36].mxu1 }
 0xae2   :  { %v2893_v30 = vpop.f32.mrb[37].mxu1 }
 0xae3   :  { %v1555_v31 = vpop.f32.mrb[38].mxu1 }
 0xae4   :  { %v2894_v32 = vpop.f32.mrb[39].mxu1 }
 0xb0b   :  { %v1600_v33 = vpop.f32.mrb[48].mxu0 }
 0xb0c   :  { %v3039_v34 = vpack.i.bf16 %v1600_v33, %v4040_v29  ;;  %v2899_v36 = vpop.f32.mrb[49].mxu0 }
 0xb0d   :  { %v1603_v37 = vpop.f32.mrb[50].mxu0 }
 0xb0e   :  { %v2900_v38 = vpop.f32.mrb[51].mxu0 }
 0xb16   :  { %v4043_v41 = vpop.f32.mrb[40].mxu1 }
 0xb17   :  { %v2905_v42 = vpop.f32.mrb[41].mxu1 }
 0xb18   :  { %v1651_v43 = vpop.f32.mrb[42].mxu1 }
 0xb19   :  { %v2906_v45 = vpop.f32.mrb[43].mxu1 }
 0xb1e   :  { %v1746_v46 = vpop.f32.mrb[44].mxu1 }
 0xb1f   :  { %v2917_v47 = vpop.f32.mrb[45].mxu1  ;;  %v1902_v48 = vsel %vm383_vm2, %v1746_v46, -inf }
 0xb20   :  { %1903 = vmax.xlane.f32.xlu0 %v1902_v48  ;;  %v1749_v50 = vpop.f32.mrb[46].mxu1 }
 0xb21   :  { %v2918_v17 = vpop.f32.mrb[47].mxu1 }
 0xb26   :  { %v1846_v52 = vpop.f32.mrb[48].mxu1 }
 0xb27   :  { %v2929_v22 = vpop.f32.mrb[49].mxu1  ;;  %v1908_v53 = vsel %vm383_vm2, %v1846_v52, -inf }
 0xb28   :  { %1909 = vmax.xlane.f32.xlu0 %v1908_v53  ;;  %v1849_v54 = vpop.f32.mrb[50].mxu1 }
 0xb29   :  { %v2930_v55 = vpop.f32.mrb[51].mxu1 }
 0xb40   :  { %v1696_v24 = vpop.f32.mrb[52].mxu0 }
 0xb41   :  { %v3044_v27 = vpack.i.bf16 %v1696_v24, %v4043_v41  ;;  %v2911_v56 = vpop.f32.mrb[53].mxu0 }
 0xb42   :  { %v1699_v58 = vpop.f32.mrb[54].mxu0 }
 0xb43   :  { %v2912_v59 = vpop.f32.mrb[55].mxu0 }
 0xb44   :  { %v3061_v59 = vld [vmem:[#allocation11] sm:$0xff]  }
 0xb48   :  { %v1796_v60 = vpop.f32.mrb[56].mxu0 }
 0xb49   :  { %v2923_v0 = vpop.f32.mrb[57].mxu0  ;;  %v1905_v1 = vsel %vm383_vm2, %v1796_v60, -inf }
 0xb4a   :  { %1906 = vmax.xlane.f32.xlu1 %v1905_v1  ;;  %v1799_v2 = vpop.f32.mrb[58].mxu0 }
 0xb4b   :  { %v2924_v3 = vpop.f32.mrb[59].mxu0 }
 0xb50   :  { %v1896_v4 = vpop.f32.mrb[60].mxu0 }
 0xb51   :  { %v2935_v6 = vpop.f32.mrb[61].mxu0  ;;  %v1911_v7 = vsel %vm383_vm2, %v1896_v4, -inf }
 0xb52   :  { %1912 = vmax.xlane.f32.xlu0 %v1911_v7  ;;  %v1899_v10 = vpop.f32.mrb[62].mxu0 }
 0xb53   :  { %v2936_v13 = vpop.f32.mrb[63].mxu0  ;;  %v3062_v10 = vld [vmem:[#allocation11 + $0x8] sm:$0xff]  }
 0xbad   :  { %v1904_v14 = vpop.xlane.xlu0 %1903 }
 0xbae   :  { %v1914_v15 = vsub.f32 %v1746_v46, %v1904_v14 }
 0xbb0   :  { %v1918_v16 = vmul.f32 1.442695, %v1914_v15 }
 0xbb2   :  { %3129 = vpow2.f32 %v1918_v16 }
 0xbb5   :  { %v1910_v18 = vpop.xlane.xlu0 %1909 }
 0xbb6   :  { %v1916_v19 = vsub.f32 %v1846_v52, %v1910_v18 }
 0xbb8   :  { %v1922_v20 = vmul.f32 1.442695, %v1916_v19 }
 0xbba   :  { %3131 = vpow2.f32 %v1922_v20 }
 0xbbc   :  { %v3130_v21 = vpop.eup %3129 }
 0xbbd   :  { %v1926_v23 = vsel %vm383_vm2, %v3130_v21, 0.0 }
 0xbbe   :  { %1927 = vadd.xlane.f32.xlu0 %v1926_v23 }
 0xbc4   :  { %v3132_v25 = vpop.eup %3131 }
 0xbc5   :  { %v1932_v26 = vsel %vm383_vm2, %v3132_v25, 0.0 }
 0xbc6   :  { %1933 = vadd.xlane.f32.xlu0 %v1932_v26 }
 0xbd7   :  { %v1907_v28 = vpop.xlane.xlu1 %1906 }
 0xbd8   :  { %v1915_v29 = vsub.f32 %v1796_v60, %v1907_v28 }
 0xbda   :  { %v1920_v30 = vmul.f32 1.442695, %v1915_v29 }
 0xbdc   :  { %3133 = vpow2.f32 %v1920_v30  ;;  %1950 = vrot.lane.b32.xlu0 %v3792_v5, %s3517_s7 }
 0xbdf   :  { %v1913_v33 = vpop.xlane.xlu0 %1912 }
 0xbe0   :  { %3030 = vrot.lane.b32.xlu0 %v3029_v40, %s3499_s26  ;;  %v1917_v36 = vsub.f32 %v1896_v4, %v1913_v33 }
 0xbe2   :  { %v1924_v37 = vmul.f32 1.442695, %v1917_v36 }
 0xbe4   :  { %3040 = vrot.lane.b32.xlu0 %v3039_v34, %s3518_s4  ;;  %3135 = vpow2.f32 %v1924_v37 }
 0xbe6   :  { %v3134_v31 = vpop.eup %3133 }
 0xbe7   :  { %v1929_v32 = vsel %vm383_vm2, %v3134_v31, 0.0 }
 0xbe8   :  { %1930 = vadd.xlane.f32.xlu1 %v1929_v32 }
 0xbee   :  { %v3136_v5 = vpop.eup %3135 }
 0xbef   :  { %v1935_v38 = vsel %vm383_vm2, %v3136_v5, 0.0 }
 0xbf9   :  { %1998 = vrot.lane.b32.xlu1 %v3794_v8, %s3517_s7 }
 0xbfd   :  { %2046 = vrot.lane.b32.xlu1 %v3798_v9, %s3517_s7 }
 0xc21   :  { %1936 = vadd.xlane.f32.xlu1 %v1935_v38 }
 0xc32   :  { %2094 = vrot.lane.b32.xlu1 %v3801_v11, %s3517_s7 }
 0xc36   :  { %3035 = vrot.lane.b32.xlu1 %v3034_v63, %s3499_s26 }
 0xc3a   :  { %3045 = vrot.lane.b32.xlu1 %v3044_v27, %s3518_s4 }
 0xc4b   :  { %v1928_v35 = vpop.xlane.xlu0 %1927 }
 0xc4c   :  { %3137 = vrcp.f32 %v1928_v35 }
 0xc53   :  { %v1934_v8 = vpop.xlane.xlu0 %1933 }
 0xc54   :  { %3139 = vrcp.f32 %v1934_v8 }
 0xc56   :  { %v3138_v9 = vpop.eup %3137 }
 0xc57   :  { %v1942_v39 = vmul.f32 %v3138_v9, %v3130_v21  ;;  %v1951_v40 = vpop.permute.xlu0 %1950 }
 0xc58   :  { %v1956_v34 = vsel %vm630_vm3, %v1951_v40, 0 }
 0xc59   :  { %2938 = vmatpush3.bf16.msra.mxu1 %v1956_v34  ;;  %v1946_v41 = vpack.c.bf16 %v1942_v39, %v1942_v39 }
 0xc5a   :  { %2949 = vmatprep.subr.bf16.mxu1 %v3506_v62 }
 0xc5b   :  { %v3031_v19 = vpop.permute.xlu0 %3030 }
 0xc5c   :  { %2940 = vmatmul.mubr.msk.bf16.vlgmr.msra.gmra.mrb[52].mxu1 %vm383_vm2, %v1946_v41  ;;  %v3033_v21 = vunpack.i.h.bf16 %v3031_v19  ;;  %v3032_v23 = vunpack.i.l.bf16 %v3031_v19 }
 0xc5d   :  { %2951 = vmatprep.mubr.msk.bf16.mxu1 %vm3507_vm1, %v3506_v62 }
 0xc5e   :  { %v3140_v44 = vpop.eup %3139  ;;  %v2191_v29 = vsel %vm383_vm2, %v3900_v49, %v3033_v21  ;;  %v2190_v30 = vsel %vm383_vm2, %v3902_v51, %v3032_v23 }
 0xc5f   :  { %v1944_v42 = vmul.f32 %v3140_v44, %v3132_v25  ;;  %v3041_v20 = vpop.permute.xlu0 %3040 }
 0xc60   :  { %v3043_v25 = vunpack.i.h.bf16 %v3041_v20  ;;  %v3042_v26 = vunpack.i.l.bf16 %v3041_v20 }
 0xc61   :  { %v1948_v47 = vpack.c.bf16 %v1944_v42, %v1944_v42 }
 0xc62   :  { %v2195_v33 = vsel %vm2194_vm4, %v2190_v30, %v3042_v26  ;;  %v2196_v36 = vsel %vm2194_vm4, %v2191_v29, %v3043_v25 }
 0xc75   :  { %v1931_v11 = vpop.xlane.xlu1 %1930 }
 0xc76   :  { %3141 = vrcp.f32 %v1931_v11 }
 0xc79   :  { %v1999_v61 = vpop.permute.xlu1 %1998 }
 0xc7a   :  { %v2004_v63 = vsel %vm630_vm3, %v1999_v61, 0 }
 0xc7b   :  { %2944 = vmatpush3.bf16.msra.mxu0 %v2004_v63 }
 0xc7c   :  { %2955 = vmatprep.subr.bf16.mxu0 %v3506_v62 }
 0xc7d   :  { %v2047_v43 = vpop.permute.xlu1 %2046 }
 0xc7e   :  { %v2052_v45 = vsel %vm630_vm3, %v2047_v43, 0 }
 0xc7f   :  { %2950 = vmatpush3.bf16.msra.mxu1 %v2052_v45 }
 0xc80   :  { %v3142_v46 = vpop.eup %3141  ;;  %2961 = vmatprep.subr.bf16.mxu1 %v3061_v59 }
 0xc81   :  { %v1943_v48 = vmul.f32 %v3142_v46, %v3134_v31  ;;  %v2652_v46 = vld [vmem:[#allocation13] ss:$0 sm:$0xff] }
 0xc82   :  { %2952 = vmatmul.mubr.msk.bf16.vlgmr.msra.gmra.mrb[56].mxu1 %vm383_vm2, %v1948_v47 }
 0xc83   :  { %v1947_v50 = vpack.c.bf16 %v1943_v48, %v1943_v48  ;;  %2962 = vmatpush3.bf16.msra.mxu1 %v3061_v59 }
 0xc84   :  { %2963 = vmatprep.subr.bf16.mxu1 %v3062_v10 }
 0xc85   :  { %2946 = vmatmul.mubr.msk.bf16.vlgmr.msra.gmra.mrb[64].mxu0 %vm383_vm2, %v1947_v50 }
 0xc86   :  { %2957 = vmatprep.mubr.msk.bf16.mxu0 %vm3507_vm1, %v3506_v62 }
 0xc87   :  { %2964 = vmatpush3.bf16.msra.mxu1 %v3062_v10 }
 0xcae   :  { %v1937_v17 = vpop.xlane.xlu1 %1936 }
 0xcaf   :  { %3143 = vrcp.f32 %v1937_v17 }
 0xcb2   :  { %v2095_v52 = vpop.permute.xlu1 %2094 }
 0xcb3   :  { %v2100_v22 = vsel %vm630_vm3, %v2095_v52, 0  ;;  %v3161_v52 = vld [vmem:[#allocation2] sm:$0xff] }
 0xcb4   :  { %2956 = vmatpush3.bf16.msra.mxu0 %v2100_v22 }
 0xcb6   :  { %v3036_v35 = vpop.permute.xlu1 %3035 }
 0xcb7   :  { %v3038_v9 = vunpack.i.h.bf16 %v3036_v35  ;;  %v3037_v49 = vunpack.i.l.bf16 %v3036_v35 }
 0xcb9   :  { %v3144_v53 = vpop.eup %3143  ;;  %v2193_v34 = vsel %vm383_vm2, %v3908_v12, %v3038_v9  ;;  %v2192_v41 = vsel %vm383_vm2, %v3904_v57, %v3037_v49 }
 0xcba   :  { %v1945_v54 = vmul.f32 %v3144_v53, %v3136_v5  ;;  %v3046_v8 = vpop.permute.xlu1 %3045 }
 0xcbb   :  { %v3048_v39 = vunpack.i.h.bf16 %v3046_v8  ;;  %v3047_v40 = vunpack.i.l.bf16 %v3046_v8 }
 0xcbc   :  { %v1949_v55 = vpack.c.bf16 %v1945_v54, %v1945_v54  ;;  %v3162_v54 = vld [vmem:[#allocation2 + $0x10] sm:$0xff] }
 0xcbd   :  { %v2197_v61 = vsel %vm2194_vm4, %v2192_v41, %v3047_v40  ;;  %v2198_v63 = vsel %vm2194_vm4, %v2193_v34, %v3048_v39  ;;  %v2657_v41 = vld [vmem:[#allocation14] ss:$0 sm:$0xff] }
 0xcbe   :  { %2958 = vmatmul.mubr.msk.bf16.vlgmr.msra.gmra.mrb[68].mxu0 %vm383_vm2, %v1949_v55 }
 0xd2f   :  { %v1992_v24 = vpop.f32.mrb[52].mxu1 }
 0xd30   :  { %v2941_v27 = vpop.f32.mrb[53].mxu1 }
 0xd31   :  { %v1995_v56 = vpop.f32.mrb[54].mxu1  ;;  %v3163_v27 = vld [vmem:[#allocation2 + $0x8] sm:$0xff] }
 0xd32   :  { %v2942_v58 = vpop.f32.mrb[55].mxu1 }
 0xd55   :  { %v2088_v60 = vpop.f32.mrb[56].mxu1 }
 0xd56   :  { %v2953_v0 = vpop.f32.mrb[57].mxu1 }
 0xd57   :  { %v2091_v62 = vpop.f32.mrb[58].mxu1 }
 0xd58   :  { %v2040_v1 = vpop.f32.mrb[64].mxu0  ;;  %v2954_v2 = vpop.f32.mrb[59].mxu1 }
 0xd59   :  { %v3049_v3 = vpack.i.bf16 %v2040_v1, %v1992_v24  ;;  %v2947_v4 = vpop.f32.mrb[65].mxu0 }
 0xd5a   :  { %v2043_v6 = vpop.f32.mrb[66].mxu0 }
 0xd5b   :  { %3050 = vrot.lane.b32.xlu0 %v3049_v3, %s3519_s27  ;;  %v2948_v7 = vpop.f32.mrb[67].mxu0 }
 0xd91   :  { %v2136_v13 = vpop.f32.mrb[68].mxu0 }
 0xd92   :  { %v3054_v14 = vpack.i.bf16 %v2136_v13, %v2088_v60  ;;  %v2959_v15 = vpop.f32.mrb[69].mxu0  ;;  %v3164_v60 = vld [vmem:[#allocation2 + $0x18] sm:$0xff] }
 0xd93   :  { %v2139_v16 = vpop.f32.mrb[70].mxu0 }
 0xd94   :  { %3055 = vrot.lane.b32.xlu1 %v3054_v14, %s3519_s27  ;;  %v2960_v18 = vpop.f32.mrb[71].mxu0 }
 0xdcd   :  { %v3051_v28 = vpop.permute.xlu0 %3050 }
 0xdce   :  { %v3053_v31 = vunpack.i.h.bf16 %v3051_v28  ;;  %v3052_v32 = vunpack.i.l.bf16 %v3051_v28 }
 0xdd0   :  { %v2201_v37 = vsel %vm2199_vm5, %v2196_v36, %v3053_v31  ;;  %v2200_v5 = vsel %vm2199_vm5, %v2195_v33, %v3052_v32  ;;  %v3063_v31 = vld [vmem:[#allocation17] sm:$0xff]   ;;  %v3064_v32 = vld [vmem:[#allocation17 + $0x8] sm:$0xff]  }
 0xdd1   :  { %v2204_v38 = vpack.c.bf16 %v2201_v37, %v2200_v5  ;;  %2969 = vmatprep.subr.bf16.mxu0 %v3063_v31 }
 0xdd2   :  { %2970 = vmatpush3.bf16.msra.mxu0 %v3063_v31 }
 0xdd3   :  { %2965 = vmatprep.mubr.msk.bf16.mxu1 %vm214_vm0, %v2204_v38  ;;  %2971 = vmatprep.subr.bf16.mxu0 %v3064_v32 }
 0xdd6   :  { %2972 = vmatpush3.bf16.msra.mxu0 %v3064_v32 }
 0xe06   :  { %v3056_v51 = vpop.permute.xlu1 %3055 }
 0xe07   :  { %v3058_v11 = vunpack.i.h.bf16 %v3056_v51  ;;  %v3057_v44 = vunpack.i.l.bf16 %v3056_v51 }
 0xe09   :  { %v2203_v42 = vsel %vm2199_vm5, %v2198_v63, %v3058_v11  ;;  %v2202_v43 = vsel %vm2199_vm5, %v2197_v61, %v3057_v44 }
 0xe0a   :  { %v2205_v45 = vpack.c.bf16 %v2203_v42, %v2202_v43  ;;  %v2658_v43 = vld [vmem:[#allocation16] ss:$0 sm:$0xff] }
 0xe0c   :  { %2966 = vmatmul.mubr.msk.bf16.vlgmr.msra.gmra.mrb[60].mxu1 %vm214_vm0, %v2205_v45 }
 0xedf   :  { %v2967_v47 = vpop.f32.mrb[60].mxu1 }
 0xee0   :  { %v2269_v48 = vpop.f32.mrb[61].mxu1  ;;  %v2278_v12 = vadd.f32 %v2967_v47, %v2652_v46 }
 0xee1   :  { %v2270_v50 = vadd.f32 %v2652_v46, %v2269_v48  ;;  %v2968_v17 = vpop.f32.mrb[62].mxu1 }
 0xee2   :  { %v2272_v57 = vpop.f32.mrb[63].mxu1  ;;  %v4100_v55 = vadd.f32 %v3162_v54, %v2278_v12  ;;  %v2281_v24 = vadd.f32 %v2968_v17, %v2652_v46 }
 0xee3   :  { %v4098_v22 = vadd.f32 %v3161_v52, %v2270_v50  ;;  %v2273_v53 = vadd.f32 %v2652_v46, %v2272_v57 }
 0xee4   :  { %v4108_v0 = vadd.f32 %v3164_v60, %v2281_v24  ;;  %v2296_v62 = vsel %vm214_vm0, %v4100_v55, 0.0  ;;  %v3068_v60 = vld [vmem:[#allocation20 + $0x18] sm:$0xff]  }
 0xee5   :  { %v4102_v56 = vadd.f32 %v3163_v27, %v2273_v53  ;;  %v2290_v58 = vsel %vm214_vm0, %v4098_v22, 0.0  ;;  %v3065_v27 = vld [vmem:[#allocation20] sm:$0xff]  }
 0xee6   :  { %2291 = vadd.xlane.f32.xlu0 %v2290_v58  ;;  %v2299_v1 = vsel %vm214_vm0, %v4108_v0, 0.0  ;;  %2977 = vmatprep.subr.bf16.mxu1 %v3065_v27  ;;  %v3066_v58 = vld [vmem:[#allocation20 + $0x8] sm:$0xff]  }
 0xee7   :  { %v2293_v59 = vsel %vm214_vm0, %v4102_v56, 0.0  ;;  %2978 = vmatpush3.bf16.msra.mxu1 %v3065_v27 }
 0xee8   :  { %2294 = vadd.xlane.f32.xlu1 %v2293_v59  ;;  %2979 = vmatprep.subr.bf16.mxu1 %v3066_v58  ;;  %v3067_v59 = vld [vmem:[#allocation20 + $0x10] sm:$0xff]  }
 0xeea   :  { %2297 = vadd.xlane.f32.xlu0 %v2296_v62  ;;  %v3069_v62 = vld [vmem:[#allocation20 + $0x20] sm:$0xff]  }
 0xeeb   :  { %2980 = vmatpush3.bf16.msra.mxu1 %v3066_v58 }
 0xeec   :  { %2981 = vmatprep.subr.bf16.mxu1 %v3067_v59 }
 0xeee   :  { %2300 = vadd.xlane.f32.xlu0 %v2299_v1  ;;  %v3070_v1 = vld [vmem:[#allocation20 + $0x28] sm:$0xff]  }
 0xeef   :  { %2982 = vmatpush3.bf16.msra.mxu1 %v3067_v59 }
 0xef0   :  { %2983 = vmatprep.subr.bf16.mxu1 %v3068_v60 }
 0xef3   :  { %2984 = vmatpush3.bf16.msra.mxu1 %v3068_v60 }
 0xef4   :  { %2985 = vmatprep.subr.bf16.mxu1 %v3069_v62 }
 0xef7   :  { %2986 = vmatpush3.bf16.msra.mxu1 %v3069_v62 }
 0xef8   :  { %2987 = vmatprep.subr.bf16.mxu1 %v3070_v1 }
 0xefb   :  { %2988 = vmatpush3.bf16.msra.mxu1 %v3070_v1 }
 0xf73   :  { %v2292_v2 = vpop.xlane.xlu0 %2291 }
 0xf74   :  { %v2302_v3 = vmul.f32 0.03125, %v2292_v2  ;;  %v3071_v2 = vld [vmem:[#allocation20 + $0x30] sm:$0xff]  }
 0xf75   :  { %v2295_v4 = vpop.xlane.xlu1 %2294  ;;  %2989 = vmatprep.subr.bf16.mxu1 %v3071_v2 }
 0xf76   :  { %v2306_v6 = vsub.f32 %v4098_v22, %v2302_v3  ;;  %v2303_v7 = vmul.f32 0.03125, %v2295_v4  ;;  %2990 = vmatpush3.bf16.msra.mxu1 %v3071_v2  ;;  %v3072_v3 = vld [vmem:[#allocation20 + $0x38] sm:$0xff]  }
 0xf77   :  { %v2298_v10 = vpop.xlane.xlu0 %2297  ;;  %2991 = vmatprep.subr.bf16.mxu1 %v3072_v3 }
 0xf78   :  { %v2307_v13 = vsub.f32 %v4102_v56, %v2303_v7  ;;  %v2304_v14 = vmul.f32 0.03125, %v2298_v10  ;;  %v2310_v15 = vmul.f32 %v2306_v6, %v2306_v6 }
 0xf7a   :  { %v2308_v16 = vsub.f32 %v4100_v55, %v2304_v14  ;;  %v2314_v18 = vsel %vm214_vm0, %v2310_v15, 0.0  ;;  %v2311_v19 = vmul.f32 %v2307_v13, %v2307_v13  ;;  %2992 = vmatpush3.bf16.msra.mxu1 %v3072_v3 }
 0xf7b   :  { %2315 = vadd.xlane.f32.xlu0 %v2314_v18  ;;  %v2301_v20 = vpop.xlane.xlu0 %2300 }
 0xf7c   :  { %v2305_v21 = vmul.f32 0.03125, %v2301_v20  ;;  %v2317_v23 = vsel %vm214_vm0, %v2311_v19, 0.0  ;;  %v2312_v25 = vmul.f32 %v2308_v16, %v2308_v16 }
 0xf7d   :  { %2318 = vadd.xlane.f32.xlu1 %v2317_v23 }
 0xf7e   :  { %v2309_v26 = vsub.f32 %v4108_v0, %v2305_v21  ;;  %v2320_v28 = vsel %vm214_vm0, %v2312_v25, 0.0 }
 0xf7f   :  { %2321 = vadd.xlane.f32.xlu0 %v2320_v28 }
 0xf80   :  { %v2313_v29 = vmul.f32 %v2309_v26, %v2309_v26 }
 0xf82   :  { %v2323_v30 = vsel %vm214_vm0, %v2313_v29, 0.0 }
 0xf83   :  { %2324 = vadd.xlane.f32.xlu1 %v2323_v30 }
0x1008   :  { %v2316_v33 = vpop.xlane.xlu0 %2315 }
0x1009   :  { %v2326_v36 = vmul.f32 0.03125, %v2316_v33 }
0x100a   :  { %v2319_v37 = vpop.xlane.xlu1 %2318 }
0x100b   :  { %v2330_v5 = vadd.f32 1e-05, %v2326_v36  ;;  %v2327_v38 = vmul.f32 0.03125, %v2319_v37 }
0x100c   :  { %v2322_v35 = vpop.xlane.xlu0 %2321 }
0x100d   :  { %3145 = vrsqrt.f32 %v2330_v5  ;;  %v2331_v8 = vadd.f32 1e-05, %v2327_v38  ;;  %v2328_v9 = vmul.f32 0.03125, %v2322_v35  ;;  %v2666_v35 = vld [vmem:[#allocation22] ss:$0 sm:$0xff] }
0x100f   :  { %3147 = vrsqrt.f32 %v2331_v8  ;;  %v2332_v49 = vadd.f32 1e-05, %v2328_v9 }
0x1010   :  { %v2325_v39 = vpop.xlane.xlu1 %2324 }
0x1011   :  { %3149 = vrsqrt.f32 %v2332_v49  ;;  %v2329_v40 = vmul.f32 0.03125, %v2325_v39 }
0x1013   :  { %v2333_v51 = vadd.f32 1e-05, %v2329_v40 }
0x1015   :  { %3151 = vrsqrt.f32 %v2333_v51 }
0x1017   :  { %v3146_v34 = vpop.eup %3145 }
0x1018   :  { %v2338_v11 = vmul.f32 %v3146_v34, %v2306_v6  ;;  %v2659_v6 = vld [vmem:[#allocation19] ss:$0 sm:$0xff] }
0x1019   :  { %v3148_v44 = vpop.eup %3147 }
0x101a   :  { %v2339_v61 = vmul.f32 %v3148_v44, %v2307_v13  ;;  %v2348_v63 = vmul.f32 %v2657_v41, %v2338_v11 }
0x101b   :  { %v3150_v42 = vpop.eup %3149 }
0x101c   :  { %v2340_v45 = vmul.f32 %v3150_v42, %v2308_v16  ;;  %v2349_v46 = vmul.f32 %v2657_v41, %v2339_v61  ;;  %v2358_v47 = vadd.f32 %v2658_v43, %v2348_v63 }
0x101e   :  { %v2359_v48 = vadd.f32 %v2658_v43, %v2349_v46  ;;  %v2350_v50 = vmul.f32 %v2657_v41, %v2340_v45 }
0x101f   :  { %v3152_v12 = vpop.eup %3151 }
0x1020   :  { %v2341_v17 = vmul.f32 %v3152_v12, %v2309_v26  ;;  %v2362_v57 = vpack.c.bf16 %v2359_v48, %v2358_v47  ;;  %v2360_v53 = vadd.f32 %v2658_v43, %v2350_v50 }
0x1022   :  { %v2351_v52 = vmul.f32 %v2657_v41, %v2341_v17  ;;  %2973 = vmatprep.mubr.msk.bf16.mxu0 %vm214_vm0, %v2362_v57 }
0x1024   :  { %v2361_v54 = vadd.f32 %v2658_v43, %v2351_v52 }
0x1026   :  { %v2363_v24 = vpack.c.bf16 %v2361_v54, %v2360_v53 }
0x1028   :  { %2974 = vmatmul.mubr.msk.bf16.vlgmr.msra.gmra.mrb[72].mxu0 %vm214_vm0, %v2363_v24 }
0x10fb   :  { %v2975_v4 = vpop.f32.mrb[72].mxu0 }
0x10fc   :  { %v2427_v7 = vpop.f32.mrb[73].mxu0  ;;  %v2436_v13 = vadd.f32 %v2975_v4, %v2659_v6 }
0x10fd   :  { %v2976_v10 = vpop.f32.mrb[74].mxu0  ;;  %v2428_v16 = vadd.f32 %v2659_v6, %v2427_v7 }
0x10fe   :  { %v2439_v14 = vadd.f32 %v2976_v10, %v2659_v6  ;;  %v2430_v15 = vpop.f32.mrb[75].mxu0 }
0x10ff   :  { %v2431_v18 = vadd.f32 %v2659_v6, %v2430_v15 }
0x1100   :  { %v2443_v19 = vpack.c.bf16 %v2439_v14, %v2436_v13 }
0x1101   :  { %v2442_v20 = vpack.c.bf16 %v2431_v18, %v2428_v16 }
0x1102   :  { %v2665_v21 = vmul.bf16 3218784218, %v2443_v19 }
0x1103   :  { %v2664_v23 = vmul.bf16 3218784218, %v2442_v20 }
0x1104   :  { %v2452_v25 = vmul.bf16 1069105081, %v2665_v21 }
0x1105   :  { %v2449_v26 = vmul.bf16 1069105081, %v2664_v23 }
0x1106   :  { %3153 = vpow.bf16 %v2452_v25 }
0x1107   :  { %3155 = vpow.bf16 %v2449_v26 }
0x1111   :  { %v3154_v28 = vpop.eup %3153 }
0x1112   :  { %v3156_v29 = vpop.eup %3155  ;;  %v2455_v30 = vadd.bf16 1065369472, %v3154_v28 }
0x1113   :  { %v2454_v31 = vadd.bf16 1065369472, %v3156_v29 }
0x1114   :  { %3157 = vrcp.bf16 %v2455_v30 }
0x1115   :  { %3159 = vrcp.bf16 %v2454_v31 }
0x111f   :  { %v3158_v32 = vpop.eup %3157 }
0x1120   :  { %v3160_v33 = vpop.eup %3159  ;;  %v2459_v36 = vmul.bf16 1065369472, %v3158_v32 }
0x1121   :  { %v2457_v37 = vmul.bf16 1065369472, %v3160_v33 }
0x1122   :  { %v2461_v38 = vmul.bf16 %v2459_v36, %v2443_v19 }
0x1123   :  { %v2460_v5 = vmul.bf16 %v2457_v37, %v2442_v20 }
0x1125   :  { %2993 = vmatprep.mubr.bf16.mxu1 %v2460_v5 }
0x1126   :  { %2994 = vmatmul.mubr.bf16.vlgmr.msra.gmra.mrb[64].mxu1 %v2461_v38 }
0x11f9   :  { %v2995_v8 = vpop.f32.mrb[64].mxu1 }
0x11fa   :  { %v2576_v9 = vadd.f32 %v2995_v8, %v2666_v35  ;;  %v2567_v49 = vpop.f32.mrb[65].mxu1 }
0x11fb   :  { %v2568_v39 = vadd.f32 %v2666_v35, %v2567_v49  ;;  %v2996_v40 = vpop.f32.mrb[66].mxu1 }
0x11fc   :  { %v2584_v51 = vadd.f32 %v2576_v9, %v4100_v55  ;;  %v2579_v34 = vadd.f32 %v2996_v40, %v2666_v35  ;;  %v2570_v41 = vpop.f32.mrb[67].mxu1 }
0x11fd   :  { %v2582_v11 = vadd.f32 %v2568_v39, %v4098_v22  ;;  %v2571_v44 = vadd.f32 %v2666_v35, %v2570_v41 }
0x11fe   :  { %2588 = vst.msk [vmem:[#allocation23 + $0x10] sm:$0xff] %vm214_vm0, %v2584_v51  ;;  %v2585_v61 = vadd.f32 %v2579_v34, %v4108_v0 }
0x11ff   :  { %2586 = vst.msk [vmem:[#allocation23] sm:$0xff] %vm214_vm0, %v2582_v11  ;;  %v2583_v63 = vadd.f32 %v2571_v44, %v4102_v56 }
0x1200   :  { %2589 = vst.msk [vmem:[#allocation23 + $0x18] sm:$0xff] %vm214_vm0, %v2585_v61 }
0x1201   :  { %2587 = vst.msk [vmem:[#allocation23 + $0x8] sm:$0xff] %vm214_vm0, %v2583_v63 }
0x1202   :  { %3462 = shalt.err (!%p3459_p10)
}
0x1203   :  { %s3463_s3 = scalar_lea.hbm %s4160_s13, 512 }
0x1204   :  { %p3464_p11 = scmp.ne.s32.totalorder %s4160_s13, %s3463_s3  ;;  %p3467_p12 = scmp.lt.u32.totalorder %s3463_s3, %s4160_s13 }
0x1206   :  { %p3469_p13 = pnand %p3467_p12, %p3464_p11 }
0x1208   :  { %3472 = shalt.err (!%p3469_p13)
}
0x1209   :  { %2601 = dma.vmem_to_hbm [thread:$0]  %s2596_s8, 512, %s4160_s13, [#allocation4], %s3498_s11, %s3498_s11, %s3499_s26  }
0x120a   :  { %3487 = dma.done.wait [#allocation4], 512  }
0x120b   :  { %3488 = vsyncadd [#allocation4], 4294966784 }
0x120c   :  { %2605 = vsyncpa [#allocation3], 1 }
0x120d   :  { %2606 = vsyncpa [#allocation6], 1 }
0x120e   :  { %2607 = vsyncpa [#allocation9], 1 }
0x120f   :  { %2608 = vsyncpa [#allocation12], 1 }
0x1210   :  { %2609 = vsyncpa [#allocation15], 1 }
0x1211   :  { %2610 = vsyncpa [#allocation18], 1 }
0x1212   :  { %2611 = vsyncpa [#allocation21], 1 }
0x1213   :  { %2612 = vsyncpa [#allocation4], 1 }

</bundles_post_ra>
